<compile_context>
chip_gen: v5e
topology: v5e:2x2
jax: 0.10.0
libtpu: 0.0.40
codegen_flags: <defaults>
</compile_context>

<pallas_src>
import jax
import jax.numpy as jnp
import numpy as np
from jax.experimental import pallas as pl
from jax.experimental.pallas import tpu as pltpu


# MXU operand dtype. float32 keeps the toy validation within 2e-3 of the f32 reference;
# flip to jnp.bfloat16 at real channel counts (halves staging VMEM, bf16-native MXU).
_DOT_DTYPE = jnp.float32
_EPS = 1e-5

# --- sub-pixel decomposition tables for kernel_size=4, stride=2, padding=1 ------------
# Down conv: kernel row kh reads full-res row 2a + kh - 1, which lives in parity image
# (kh+1)%2 at parity-row a + (kh-1)//2 (same mapping for columns).
_PAR = lambda k: (k + 1) % 2
_OFF = lambda k: (k - 1) // 2
# Transposed conv: output row 2a + pi receives contributions from h rows a + dr with
# kernel row kh, for (kh, dr) in _ROW_TAPS[pi] (same table for columns).
_ROW_TAPS = (((1, 0), (3, -1)), ((2, 0), (0, 1)))


# ----------------------------------- Pallas kernel ------------------------------------

def _unet_block_kernel(xp_ref, wdg_ref, bd_ref, wug_ref, bu_ref,
                       y_ref, stats_ref, dstage_ref, hpad_ref, ustage_ref):
    nb, _, hp2, wp2, cin = xp_ref.shape
    ho, wo = hp2 - 2, wp2 - 2
    ns = nb * ho * wo
    inner = wdg_ref.shape[2]
    outer = wug_ref.shape[2]

    # ---- down path: Conv2d(k4,s2,p1) as 4 fat matmuls (K = 4*Cin), + bias, ReLU ------
    # LeakyReLU(0.2) is applied inline on every tap window read (cheap VPU select hidden
    # under the MXU); the 4 kw taps of each kernel row are staged side-by-side in VMEM
    # so each matmul sees K = 4*Cin instead of 16 tiny K = Cin matmuls.
    h = jnp.zeros((ns, inner), jnp.float32)
    for kh in range(4):
        pr, dr = _PAR(kh), _OFF(kh)
        for kw in range(4):
            p, dc = pr * 2 + _PAR(kw), _OFF(kw)
            w = xp_ref[:, p, 1 + dr:1 + dr + ho, 1 + dc:1 + dc + wo, :]
            dstage_ref[:, :, :, kw * cin:(kw + 1) * cin] = jnp.where(
                w >= 0.0, w, 0.2 * w).astype(dstage_ref.dtype)
        h = h + jnp.dot(dstage_ref[...].reshape(ns, 4 * cin), wdg_ref[kh],
                        preferred_element_type=jnp.float32)
    h = jnp.maximum(h + bd_ref[...], 0.0)

    # ---- zero-padded relu(h): zero only the 1-px frame, then write the interior ------
    zr = jnp.zeros((nb, wp2, inner), hpad_ref.dtype)
    zc = jnp.zeros((nb, ho, inner), hpad_ref.dtype)
    hpad_ref[:, 0, :, :] = zr
    hpad_ref[:, ho + 1, :, :] = zr
    hpad_ref[:, 1:1 + ho, 0, :] = zc
    hpad_ref[:, 1:1 + ho, wo + 1, :] = zc
    hpad_ref[:, 1:1 + ho, 1:1 + wo, :] = (
        h.reshape(nb, ho, wo, inner).astype(hpad_ref.dtype))

    # ---- up path: ConvTranspose2d(k4,s2,p1), 4-phase sub-pixel, 1 fat matmul/phase ---
    ssum = jnp.zeros((1, outer), jnp.float32)
    ssq = jnp.zeros((1, outer), jnp.float32)
    for pi in range(2):
        for pj in range(2):
            t = 0
            for _kh, dr in _ROW_TAPS[pi]:
                for _kw, dc in _ROW_TAPS[pj]:
                    ustage_ref[:, :, :, t * inner:(t + 1) * inner] = (
                        hpad_ref[:, 1 + dr:1 + dr + ho, 1 + dc:1 + dc + wo, :])
                    t += 1
            y = jnp.dot(ustage_ref[...].reshape(ns, 4 * inner),
                        wug_ref[pi * 2 + pj],
                        preferred_element_type=jnp.float32) + bu_ref[...]
            # per-channel sum / sum-of-squares feed the cross-tile BatchNorm statistics;
            # y is stored un-normalized and dies right here (bounded vreg live range).
            ssum = ssum + jnp.sum(y, axis=0, keepdims=True)
            ssq = ssq + jnp.sum(y * y, axis=0, keepdims=True)
            y_ref[:, :, pi, :, pj, :] = y.reshape(nb, ho, wo, outer)
    stats_ref[0, 0:1, :] = ssum
    stats_ref[0, 1:2, :] = ssq


# ------------------------------------- JAX glue ----------------------------------------

def unet_innermost_forward(x, params):
    """UnetSkipConnectionBlock(innermost=True).forward: cat([x, model(x)], dim=1)."""
    N, Cin, H, W = x.shape
    assert H % 2 == 0 and W % 2 == 0
    wd, bd = params["down_w"], params["down_b"]     # (inner, Cin, 4, 4), (inner,)
    wu, bu = params["up_w"], params["up_b"]         # (inner, outer, 4, 4), (outer,)
    gamma, beta = params["bn_g"], params["bn_b"]    # (outer,), (outer,)
    inner = wd.shape[0]
    outer = wu.shape[1]
    Ho, Wo = H // 2, W // 2

    # Cheap XLA-side layout prep (1x input bytes, no im2col duplication): split x into
    # its 4 stride-2 parity sub-images, channels-last, and add the conv zero-pad once.
    x6 = x.reshape(N, Cin, Ho, 2, Wo, 2)
    xpar = x6.transpose(0, 3, 5, 2, 4, 1).reshape(N, 4, Ho, Wo, Cin)
    xp = jnp.pad(xpar, ((0, 0), (0, 0), (1, 1), (1, 1), (0, 0)))

    # Per-tap weights regrouped for the fat (K = 4*C) matmuls.
    wd_g = wd.transpose(2, 3, 1, 0).reshape(4, 4 * Cin, inner).astype(_DOT_DTYPE)
    wu_t = wu.transpose(2, 3, 0, 1)                              # (kh, kw, inner, outer)
    wu_g = jnp.stack([
        jnp.concatenate([wu_t[kh, kw]
                         for kh, _ in _ROW_TAPS[pi]
                         for kw, _ in _ROW_TAPS[pj]], axis=0)
        for pi in range(2) for pj in range(2)], axis=0).astype(_DOT_DTYPE)
    bd2 = bd.reshape(1, inner).astype(jnp.float32)
    bu2 = bu.reshape(1, outer).astype(jnp.float32)

    # Batch-tile size: fit a ~24 MiB working set (v7x: 64 MiB physical per-TC VMEM,
    # double-buffered in/out blocks, weights + scratch resident), and keep >=2 grid
    # steps when possible so the DMA/compute pipeline and the v7x 2-core "parallel"
    # sharding actually engage.
    dsz = jnp.dtype(_DOT_DTYPE).itemsize
    per_sample = (2 * 4 * (Ho + 2) * (Wo + 2) * Cin * 4          # input block, 2x buffered
                  + 2 * H * W * outer * 4                        # y output block, 2x buffered
                  + (Ho + 2) * (Wo + 2) * inner * dsz            # hpad scratch
                  + Ho * Wo * 4 * (Cin + inner) * dsz            # fat-operand staging
                  + 3 * Ho * Wo * 4 * max(inner, outer) * 4)     # transient values (fudge)
    nb = max(1, min(N // 2 if N > 1 else 1,
                    (24 * 1024 * 1024) // max(1, per_sample)))
    while N % nb:
        nb -= 1
    grid = (N // nb,)

    y_sds = jax.ShapeDtypeStruct((N, Ho, 2, Wo, 2, outer), jnp.float32)
    s_sds = jax.ShapeDtypeStruct((grid[0], 2, outer), jnp.float32)

    y_pre, stats = pl.pallas_call(
        _unet_block_kernel,
        out_shape=(y_sds, s_sds),
        grid=grid,
        in_specs=[
            pl.BlockSpec((nb, 4, Ho + 2, Wo + 2, Cin), lambda i: (i, 0, 0, 0, 0)),
            pl.BlockSpec((4, 4 * Cin, inner), lambda i: (0, 0, 0)),
            pl.BlockSpec((1, inner), lambda i: (0, 0)),
            pl.BlockSpec((4, 4 * inner, outer), lambda i: (0, 0, 0)),
            pl.BlockSpec((1, outer), lambda i: (0, 0)),
        ],
        out_specs=(
            pl.BlockSpec((nb, Ho, 2, Wo, 2, outer), lambda i: (i, 0, 0, 0, 0, 0)),
            pl.BlockSpec((1, 2, outer), lambda i: (i, 0, 0)),
        ),
        scratch_shapes=[
            pltpu.VMEM((nb, Ho, Wo, 4 * Cin), _DOT_DTYPE),         # down fat operand
            pltpu.VMEM((nb, Ho + 2, Wo + 2, inner), _DOT_DTYPE),   # zero-padded relu(h)
            pltpu.VMEM((nb, Ho, Wo, 4 * inner), _DOT_DTYPE),       # up fat operand
        ],
        compiler_params=pltpu.CompilerParams(
            dimension_semantics=("parallel",),
            vmem_limit_bytes=48 * 1024 * 1024),
    )(xp, wd_g, bd2, wu_g, bu2)

    # Tiny cross-tile BN reduction + fold (train-mode biased variance, eps = 1e-5).
    cnt = float(N * H * W)
    mean = jnp.sum(stats[:, 0, :], axis=0) / cnt
    var = jnp.sum(stats[:, 1, :], axis=0) / cnt - mean * mean
    scale = gamma * jax.lax.rsqrt(var + _EPS)
    shift = beta - mean * scale

    # Single fused epilogue pass: normalize (forced by whole-batch BN statistics) +
    # NHWC->NCHW transpose (required by the NCHW return contract) + skip concat.
    y = y_pre.reshape(N, H, W, outer) * scale + shift            # reshape is free
    return jnp.concatenate([x, jnp.transpose(y, (0, 3, 1, 2))], axis=1)


# ------------------------------------- reference ---------------------------------------

def reference_forward(x, params):
    wd, bd = params["down_w"], params["down_b"]
    wu, bu = params["up_w"], params["up_b"]
    gamma, beta = params["bn_g"], params["bn_b"]
    h = jnp.where(x >= 0, x, 0.2 * x)
    h = jax.lax.conv_general_dilated(
        h, wd, window_strides=(2, 2), padding=((1, 1), (1, 1)),
        dimension_numbers=("NCHW", "OIHW", "NCHW"),
        precision=jax.lax.Precision.HIGHEST) + bd[None, :, None, None]
    h = jnp.maximum(h, 0.0)
    w_eff = jnp.flip(wu, axis=(2, 3)).transpose(1, 0, 2, 3)
    y = jax.lax.conv_general_dilated(
        h, w_eff, window_strides=(1, 1), padding=((2, 2), (2, 2)),
        lhs_dilation=(2, 2),
        dimension_numbers=("NCHW", "OIHW", "NCHW"),
        precision=jax.lax.Precision.HIGHEST) + bu[None, :, None, None]
    mean = jnp.mean(y, axis=(0, 2, 3), keepdims=True)
    var = jnp.mean((y - mean) ** 2, axis=(0, 2, 3), keepdims=True)
    y = (y - mean) * jax.lax.rsqrt(var + _EPS)
    y = y * gamma[None, :, None, None] + beta[None, :, None, None]
    return jnp.concatenate([x, y], axis=1)


# --------------------------------------- main -------------------------------------------

if __name__ == "__main__":
    N, outer_nc, inner_nc, H, W = 2, 4, 8, 16, 16
    input_nc = outer_nc  # innermost block: input_nc defaults to outer_nc

    key = jax.random.PRNGKey(0)
    kx, k1, k2, k3, k4 = jax.random.split(key, 5)
    params = {
        "down_w": 0.1 * jax.random.normal(k1, (inner_nc, input_nc, 4, 4), jnp.float32),
        "down_b": 0.05 * jax.random.normal(k2, (inner_nc,), jnp.float32),
        "up_w": 0.1 * jax.random.normal(k3, (inner_nc, outer_nc, 4, 4), jnp.float32),
        "up_b": 0.05 * jax.random.normal(k4, (outer_nc,), jnp.float32),
        "bn_g": jnp.ones((outer_nc,), jnp.float32),     # PyTorch BN default affine
        "bn_b": jnp.zeros((outer_nc,), jnp.float32),
    }
    x = jax.random.normal(kx, (N, input_nc, H, W), jnp.float32)

    fwd = jax.jit(unet_innermost_forward)
    out = jax.block_until_ready(fwd(x, params))
    assert out.shape == (N, input_nc + outer_nc, H, W), out.shape

    ref = jax.block_until_ready(reference_forward(x, params))
    np.testing.assert_allclose(np.asarray(out), np.asarray(ref), rtol=2e-3, atol=2e-3)

    print("KERNEL_OK")
</pallas_src>

<mosaic_0001>
module attributes {stable_mosaic.version = 11 : i64} {
  func.func @_unet_block_kernel(%arg0: i32, %arg1: memref<1x4x10x10x4xf32, #tpu.memory_space<vmem>>, %arg2: memref<4x16x8xf32, #tpu.memory_space<vmem>>, %arg3: memref<1x8xf32, #tpu.memory_space<vmem>>, %arg4: memref<4x32x4xf32, #tpu.memory_space<vmem>>, %arg5: memref<1x4xf32, #tpu.memory_space<vmem>>, %arg6: memref<1x8x2x8x2x4xf32, #tpu.memory_space<vmem>>, %arg7: memref<1x2x4xf32, #tpu.memory_space<vmem>>, %arg8: memref<1x8x8x16xf32, #tpu.memory_space<vmem>>, %arg9: memref<1x10x10x8xf32, #tpu.memory_space<vmem>>, %arg10: memref<1x8x8x32xf32, #tpu.memory_space<vmem>>) attributes {dimension_semantics = [#tpu.dimension_semantics<parallel>], iteration_bounds = array<i64: 2>, scalar_prefetch = 0 : i64, scratch_operands = 3 : i64, tpu.core_type = #tpu.core_type<tc>, window_params = [{transform_indices = @transform_0, window_bounds = array<i64: 1, 4, 10, 10, 4>}, {pipeline_mode = #tpu.pipeline_mode<synchronous>, transform_indices = @transform_1, window_bounds = array<i64: 4, 16, 8>}, {pipeline_mode = #tpu.pipeline_mode<synchronous>, transform_indices = @transform_2, window_bounds = array<i64: 1, 8>}, {pipeline_mode = #tpu.pipeline_mode<synchronous>, transform_indices = @transform_3, window_bounds = array<i64: 4, 32, 4>}, {pipeline_mode = #tpu.pipeline_mode<synchronous>, transform_indices = @transform_4, window_bounds = array<i64: 1, 4>}, {transform_indices = @transform_5, window_bounds = array<i64: 1, 8, 2, 8, 2, 4>}, {transform_indices = @transform_6, window_bounds = array<i64: 1, 2, 4>}]} {
    %cst = arith.constant 0.000000e+00 : f32
    %0 = vector.broadcast %cst : f32 to vector<64x8xf32>
    %c0 = arith.constant 0 : index
    %c3 = arith.constant 3 : index
    %c0_0 = arith.constant 0 : index
    %c0_1 = arith.constant 0 : index
    %c0_2 = arith.constant 0 : index
    %1 = vector.load %arg1[%c0, %c3, %c0_0, %c0_1, %c0_2] : memref<1x4x10x10x4xf32, #tpu.memory_space<vmem>>, vector<1x1x8x8x4xf32>
    %2 = vector.shape_cast %1 : vector<1x1x8x8x4xf32> to vector<1x8x8x4xf32>
    %cst_3 = arith.constant 0.000000e+00 : f32
    %3 = vector.broadcast %cst_3 : f32 to vector<1x8x8x4xf32>
    %4 = arith.cmpf oge, %2, %3 : vector<1x8x8x4xf32>
    %cst_4 = arith.constant 2.000000e-01 : f32
    %5 = vector.broadcast %cst_4 : f32 to vector<1x8x8x4xf32>
    %6 = arith.mulf %5, %2 : vector<1x8x8x4xf32>
    %7 = arith.select %4, %2, %6 : vector<1x8x8x4xi1>, vector<1x8x8x4xf32>
    %c0_5 = arith.constant 0 : index
    %c0_6 = arith.constant 0 : index
    %c0_7 = arith.constant 0 : index
    %c0_8 = arith.constant 0 : index
    %8 = vector.load %arg8[%c0_5, %c0_6, %c0_7, %c0_8] : memref<1x8x8x16xf32, #tpu.memory_space<vmem>>, vector<1x8x8x4xf32>
    tpu.vector_store %arg8[%c0_5, %c0_6, %c0_7, %c0_8], %7 {strides = array<i32>} : memref<1x8x8x16xf32, #tpu.memory_space<vmem>>, vector<1x8x8x4xf32>,
    %c0_9 = arith.constant 0 : index
    %c2 = arith.constant 2 : index
    %c0_10 = arith.constant 0 : index
    %c1 = arith.constant 1 : index
    %c0_11 = arith.constant 0 : index
    %9 = vector.load %arg1[%c0_9, %c2, %c0_10, %c1, %c0_11] : memref<1x4x10x10x4xf32, #tpu.memory_space<vmem>>, vector<1x1x8x8x4xf32>
    %10 = vector.shape_cast %9 : vector<1x1x8x8x4xf32> to vector<1x8x8x4xf32>
    %cst_12 = arith.constant 0.000000e+00 : f32
    %11 = vector.broadcast %cst_12 : f32 to vector<1x8x8x4xf32>
    %12 = arith.cmpf oge, %10, %11 : vector<1x8x8x4xf32>
    %cst_13 = arith.constant 2.000000e-01 : f32
    %13 = vector.broadcast %cst_13 : f32 to vector<1x8x8x4xf32>
    %14 = arith.mulf %13, %10 : vector<1x8x8x4xf32>
    %15 = arith.select %12, %10, %14 : vector<1x8x8x4xi1>, vector<1x8x8x4xf32>
    %c0_14 = arith.constant 0 : index
    %c0_15 = arith.constant 0 : index
    %c0_16 = arith.constant 0 : index
    %c4 = arith.constant 4 : index
    %16 = vector.load %arg8[%c0_14, %c0_15, %c0_16, %c4] : memref<1x8x8x16xf32, #tpu.memory_space<vmem>>, vector<1x8x8x4xf32>
    tpu.vector_store %arg8[%c0_14, %c0_15, %c0_16, %c4], %15 {strides = array<i32>} : memref<1x8x8x16xf32, #tpu.memory_space<vmem>>, vector<1x8x8x4xf32>,
    %c0_17 = arith.constant 0 : index
    %c3_18 = arith.constant 3 : index
    %c0_19 = arith.constant 0 : index
    %c1_20 = arith.constant 1 : index
    %c0_21 = arith.constant 0 : index
    %17 = vector.load %arg1[%c0_17, %c3_18, %c0_19, %c1_20, %c0_21] : memref<1x4x10x10x4xf32, #tpu.memory_space<vmem>>, vector<1x1x8x8x4xf32>
    %18 = vector.shape_cast %17 : vector<1x1x8x8x4xf32> to vector<1x8x8x4xf32>
    %cst_22 = arith.constant 0.000000e+00 : f32
    %19 = vector.broadcast %cst_22 : f32 to vector<1x8x8x4xf32>
    %20 = arith.cmpf oge, %18, %19 : vector<1x8x8x4xf32>
    %cst_23 = arith.constant 2.000000e-01 : f32
    %21 = vector.broadcast %cst_23 : f32 to vector<1x8x8x4xf32>
    %22 = arith.mulf %21, %18 : vector<1x8x8x4xf32>
    %23 = arith.select %20, %18, %22 : vector<1x8x8x4xi1>, vector<1x8x8x4xf32>
    %c0_24 = arith.constant 0 : index
    %c0_25 = arith.constant 0 : index
    %c0_26 = arith.constant 0 : index
    %c8 = arith.constant 8 : index
    %24 = vector.load %arg8[%c0_24, %c0_25, %c0_26, %c8] : memref<1x8x8x16xf32, #tpu.memory_space<vmem>>, vector<1x8x8x4xf32>
    tpu.vector_store %arg8[%c0_24, %c0_25, %c0_26, %c8], %23 {strides = array<i32>} : memref<1x8x8x16xf32, #tpu.memory_space<vmem>>, vector<1x8x8x4xf32>,
    %c0_27 = arith.constant 0 : index
    %c2_28 = arith.constant 2 : index
    %c0_29 = arith.constant 0 : index
    %c2_30 = arith.constant 2 : index
    %c0_31 = arith.constant 0 : index
    %25 = vector.load %arg1[%c0_27, %c2_28, %c0_29, %c2_30, %c0_31] : memref<1x4x10x10x4xf32, #tpu.memory_space<vmem>>, vector<1x1x8x8x4xf32>
    %26 = vector.shape_cast %25 : vector<1x1x8x8x4xf32> to vector<1x8x8x4xf32>
    %cst_32 = arith.constant 0.000000e+00 : f32
    %27 = vector.broadcast %cst_32 : f32 to vector<1x8x8x4xf32>
    %28 = arith.cmpf oge, %26, %27 : vector<1x8x8x4xf32>
    %cst_33 = arith.constant 2.000000e-01 : f32
    %29 = vector.broadcast %cst_33 : f32 to vector<1x8x8x4xf32>
    %30 = arith.mulf %29, %26 : vector<1x8x8x4xf32>
    %31 = arith.select %28, %26, %30 : vector<1x8x8x4xi1>, vector<1x8x8x4xf32>
    %c0_34 = arith.constant 0 : index
    %c0_35 = arith.constant 0 : index
    %c0_36 = arith.constant 0 : index
    %c12 = arith.constant 12 : index
    %32 = vector.load %arg8[%c0_34, %c0_35, %c0_36, %c12] : memref<1x8x8x16xf32, #tpu.memory_space<vmem>>, vector<1x8x8x4xf32>
    tpu.vector_store %arg8[%c0_34, %c0_35, %c0_36, %c12], %31 {strides = array<i32>} : memref<1x8x8x16xf32, #tpu.memory_space<vmem>>, vector<1x8x8x4xf32>,
    %c0_37 = arith.constant 0 : index
    %c0_38 = arith.constant 0 : index
    %c0_39 = arith.constant 0 : index
    %c0_40 = arith.constant 0 : index
    %33 = vector.load %arg8[%c0_37, %c0_38, %c0_39, %c0_40] : memref<1x8x8x16xf32, #tpu.memory_space<vmem>>, vector<1x8x8x16xf32>
    %34 = vector.shape_cast %33 : vector<1x8x8x16xf32> to vector<64x16xf32>
    %c0_41 = arith.constant 0 : index
    %c0_42 = arith.constant 0 : index
    %c0_43 = arith.constant 0 : index
    %35 = vector.load %arg2[%c0_41, %c0_42, %c0_43] : memref<4x16x8xf32, #tpu.memory_space<vmem>>, vector<1x16x8xf32>
    %36 = vector.shape_cast %35 : vector<1x16x8xf32> to vector<16x8xf32>
    %cst_44 = arith.constant dense<0.000000e+00> : vector<64x8xf32>
    %37 = tpu.matmul %34, %36, %cst_44 {dimension_numbers = #tpu.dot_dimension_numbers<[1], [0], [0], [1], [0, 0, 1, 1], [], []>} : vector<64x16xf32>, vector<16x8xf32>, vector<64x8xf32> -> vector<64x8xf32>
    %38 = arith.addf %0, %37 : vector<64x8xf32>
    %c0_45 = arith.constant 0 : index
    %c1_46 = arith.constant 1 : index
    %c1_47 = arith.constant 1 : index
    %c0_48 = arith.constant 0 : index
    %c0_49 = arith.constant 0 : index
    %39 = vector.load %arg1[%c0_45, %c1_46, %c1_47, %c0_48, %c0_49] : memref<1x4x10x10x4xf32, #tpu.memory_space<vmem>>, vector<1x1x8x8x4xf32>
    %40 = vector.shape_cast %39 : vector<1x1x8x8x4xf32> to vector<1x8x8x4xf32>
    %cst_50 = arith.constant 0.000000e+00 : f32
    %41 = vector.broadcast %cst_50 : f32 to vector<1x8x8x4xf32>
    %42 = arith.cmpf oge, %40, %41 : vector<1x8x8x4xf32>
    %cst_51 = arith.constant 2.000000e-01 : f32
    %43 = vector.broadcast %cst_51 : f32 to vector<1x8x8x4xf32>
    %44 = arith.mulf %43, %40 : vector<1x8x8x4xf32>
    %45 = arith.select %42, %40, %44 : vector<1x8x8x4xi1>, vector<1x8x8x4xf32>
    %c0_52 = arith.constant 0 : index
    %c0_53 = arith.constant 0 : index
    %c0_54 = arith.constant 0 : index
    %c0_55 = arith.constant 0 : index
    %46 = vector.load %arg8[%c0_52, %c0_53, %c0_54, %c0_55] : memref<1x8x8x16xf32, #tpu.memory_space<vmem>>, vector<1x8x8x4xf32>
    tpu.vector_store %arg8[%c0_52, %c0_53, %c0_54, %c0_55], %45 {strides = array<i32>} : memref<1x8x8x16xf32, #tpu.memory_space<vmem>>, vector<1x8x8x4xf32>,
    %c0_56 = arith.constant 0 : index
    %c0_57 = arith.constant 0 : index
    %c1_58 = arith.constant 1 : index
    %c1_59 = arith.constant 1 : index
    %c0_60 = arith.constant 0 : index
    %47 = vector.load %arg1[%c0_56, %c0_57, %c1_58, %c1_59, %c0_60] : memref<1x4x10x10x4xf32, #tpu.memory_space<vmem>>, vector<1x1x8x8x4xf32>
    %48 = vector.shape_cast %47 : vector<1x1x8x8x4xf32> to vector<1x8x8x4xf32>
    %cst_61 = arith.constant 0.000000e+00 : f32
    %49 = vector.broadcast %cst_61 : f32 to vector<1x8x8x4xf32>
    %50 = arith.cmpf oge, %48, %49 : vector<1x8x8x4xf32>
    %cst_62 = arith.constant 2.000000e-01 : f32
    %51 = vector.broadcast %cst_62 : f32 to vector<1x8x8x4xf32>
    %52 = arith.mulf %51, %48 : vector<1x8x8x4xf32>
    %53 = arith.select %50, %48, %52 : vector<1x8x8x4xi1>, vector<1x8x8x4xf32>
    %c0_63 = arith.constant 0 : index
    %c0_64 = arith.constant 0 : index
    %c0_65 = arith.constant 0 : index
    %c4_66 = arith.constant 4 : index
    %54 = vector.load %arg8[%c0_63, %c0_64, %c0_65, %c4_66] : memref<1x8x8x16xf32, #tpu.memory_space<vmem>>, vector<1x8x8x4xf32>
    tpu.vector_store %arg8[%c0_63, %c0_64, %c0_65, %c4_66], %53 {strides = array<i32>} : memref<1x8x8x16xf32, #tpu.memory_space<vmem>>, vector<1x8x8x4xf32>,
    %c0_67 = arith.constant 0 : index
    %c1_68 = arith.constant 1 : index
    %c1_69 = arith.constant 1 : index
    %c1_70 = arith.constant 1 : index
    %c0_71 = arith.constant 0 : index
    %55 = vector.load %arg1[%c0_67, %c1_68, %c1_69, %c1_70, %c0_71] : memref<1x4x10x10x4xf32, #tpu.memory_space<vmem>>, vector<1x1x8x8x4xf32>
    %56 = vector.shape_cast %55 : vector<1x1x8x8x4xf32> to vector<1x8x8x4xf32>
    %cst_72 = arith.constant 0.000000e+00 : f32
    %57 = vector.broadcast %cst_72 : f32 to vector<1x8x8x4xf32>
    %58 = arith.cmpf oge, %56, %57 : vector<1x8x8x4xf32>
    %cst_73 = arith.constant 2.000000e-01 : f32
    %59 = vector.broadcast %cst_73 : f32 to vector<1x8x8x4xf32>
    %60 = arith.mulf %59, %56 : vector<1x8x8x4xf32>
    %61 = arith.select %58, %56, %60 : vector<1x8x8x4xi1>, vector<1x8x8x4xf32>
    %c0_74 = arith.constant 0 : index
    %c0_75 = arith.constant 0 : index
    %c0_76 = arith.constant 0 : index
    %c8_77 = arith.constant 8 : index
    %62 = vector.load %arg8[%c0_74, %c0_75, %c0_76, %c8_77] : memref<1x8x8x16xf32, #tpu.memory_space<vmem>>, vector<1x8x8x4xf32>
    tpu.vector_store %arg8[%c0_74, %c0_75, %c0_76, %c8_77], %61 {strides = array<i32>} : memref<1x8x8x16xf32, #tpu.memory_space<vmem>>, vector<1x8x8x4xf32>,
    %c0_78 = arith.constant 0 : index
    %c0_79 = arith.constant 0 : index
    %c1_80 = arith.constant 1 : index
    %c2_81 = arith.constant 2 : index
    %c0_82 = arith.constant 0 : index
    %63 = vector.load %arg1[%c0_78, %c0_79, %c1_80, %c2_81, %c0_82] : memref<1x4x10x10x4xf32, #tpu.memory_space<vmem>>, vector<1x1x8x8x4xf32>
    %64 = vector.shape_cast %63 : vector<1x1x8x8x4xf32> to vector<1x8x8x4xf32>
    %cst_83 = arith.constant 0.000000e+00 : f32
    %65 = vector.broadcast %cst_83 : f32 to vector<1x8x8x4xf32>
    %66 = arith.cmpf oge, %64, %65 : vector<1x8x8x4xf32>
    %cst_84 = arith.constant 2.000000e-01 : f32
    %67 = vector.broadcast %cst_84 : f32 to vector<1x8x8x4xf32>
    %68 = arith.mulf %67, %64 : vector<1x8x8x4xf32>
    %69 = arith.select %66, %64, %68 : vector<1x8x8x4xi1>, vector<1x8x8x4xf32>
    %c0_85 = arith.constant 0 : index
    %c0_86 = arith.constant 0 : index
    %c0_87 = arith.constant 0 : index
    %c12_88 = arith.constant 12 : index
    %70 = vector.load %arg8[%c0_85, %c0_86, %c0_87, %c12_88] : memref<1x8x8x16xf32, #tpu.memory_space<vmem>>, vector<1x8x8x4xf32>
    tpu.vector_store %arg8[%c0_85, %c0_86, %c0_87, %c12_88], %69 {strides = array<i32>} : memref<1x8x8x16xf32, #tpu.memory_space<vmem>>, vector<1x8x8x4xf32>,
    %c0_89 = arith.constant 0 : index
    %c0_90 = arith.constant 0 : index
    %c0_91 = arith.constant 0 : index
    %c0_92 = arith.constant 0 : index
    %71 = vector.load %arg8[%c0_89, %c0_90, %c0_91, %c0_92] : memref<1x8x8x16xf32, #tpu.memory_space<vmem>>, vector<1x8x8x16xf32>
    %72 = vector.shape_cast %71 : vector<1x8x8x16xf32> to vector<64x16xf32>
    %c1_93 = arith.constant 1 : index
    %c0_94 = arith.constant 0 : index
    %c0_95 = arith.constant 0 : index
    %73 = vector.load %arg2[%c1_93, %c0_94, %c0_95] : memref<4x16x8xf32, #tpu.memory_space<vmem>>, vector<1x16x8xf32>
    %74 = vector.shape_cast %73 : vector<1x16x8xf32> to vector<16x8xf32>
    %cst_96 = arith.constant dense<0.000000e+00> : vector<64x8xf32>
    %75 = tpu.matmul %72, %74, %cst_96 {dimension_numbers = #tpu.dot_dimension_numbers<[1], [0], [0], [1], [0, 0, 1, 1], [], []>} : vector<64x16xf32>, vector<16x8xf32>, vector<64x8xf32> -> vector<64x8xf32>
    %76 = arith.addf %38, %75 : vector<64x8xf32>
    %c0_97 = arith.constant 0 : index
    %c3_98 = arith.constant 3 : index
    %c1_99 = arith.constant 1 : index
    %c0_100 = arith.constant 0 : index
    %c0_101 = arith.constant 0 : index
    %77 = vector.load %arg1[%c0_97, %c3_98, %c1_99, %c0_100, %c0_101] : memref<1x4x10x10x4xf32, #tpu.memory_space<vmem>>, vector<1x1x8x8x4xf32>
    %78 = vector.shape_cast %77 : vector<1x1x8x8x4xf32> to vector<1x8x8x4xf32>
    %cst_102 = arith.constant 0.000000e+00 : f32
    %79 = vector.broadcast %cst_102 : f32 to vector<1x8x8x4xf32>
    %80 = arith.cmpf oge, %78, %79 : vector<1x8x8x4xf32>
    %cst_103 = arith.constant 2.000000e-01 : f32
    %81 = vector.broadcast %cst_103 : f32 to vector<1x8x8x4xf32>
    %82 = arith.mulf %81, %78 : vector<1x8x8x4xf32>
    %83 = arith.select %80, %78, %82 : vector<1x8x8x4xi1>, vector<1x8x8x4xf32>
    %c0_104 = arith.constant 0 : index
    %c0_105 = arith.constant 0 : index
    %c0_106 = arith.constant 0 : index
    %c0_107 = arith.constant 0 : index
    %84 = vector.load %arg8[%c0_104, %c0_105, %c0_106, %c0_107] : memref<1x8x8x16xf32, #tpu.memory_space<vmem>>, vector<1x8x8x4xf32>
    tpu.vector_store %arg8[%c0_104, %c0_105, %c0_106, %c0_107], %83 {strides = array<i32>} : memref<1x8x8x16xf32, #tpu.memory_space<vmem>>, vector<1x8x8x4xf32>,
    %c0_108 = arith.constant 0 : index
    %c2_109 = arith.constant 2 : index
    %c1_110 = arith.constant 1 : index
    %c1_111 = arith.constant 1 : index
    %c0_112 = arith.constant 0 : index
    %85 = vector.load %arg1[%c0_108, %c2_109, %c1_110, %c1_111, %c0_112] : memref<1x4x10x10x4xf32, #tpu.memory_space<vmem>>, vector<1x1x8x8x4xf32>
    %86 = vector.shape_cast %85 : vector<1x1x8x8x4xf32> to vector<1x8x8x4xf32>
    %cst_113 = arith.constant 0.000000e+00 : f32
    %87 = vector.broadcast %cst_113 : f32 to vector<1x8x8x4xf32>
    %88 = arith.cmpf oge, %86, %87 : vector<1x8x8x4xf32>
    %cst_114 = arith.constant 2.000000e-01 : f32
    %89 = vector.broadcast %cst_114 : f32 to vector<1x8x8x4xf32>
    %90 = arith.mulf %89, %86 : vector<1x8x8x4xf32>
    %91 = arith.select %88, %86, %90 : vector<1x8x8x4xi1>, vector<1x8x8x4xf32>
    %c0_115 = arith.constant 0 : index
    %c0_116 = arith.constant 0 : index
    %c0_117 = arith.constant 0 : index
    %c4_118 = arith.constant 4 : index
    %92 = vector.load %arg8[%c0_115, %c0_116, %c0_117, %c4_118] : memref<1x8x8x16xf32, #tpu.memory_space<vmem>>, vector<1x8x8x4xf32>
    tpu.vector_store %arg8[%c0_115, %c0_116, %c0_117, %c4_118], %91 {strides = array<i32>} : memref<1x8x8x16xf32, #tpu.memory_space<vmem>>, vector<1x8x8x4xf32>,
    %c0_119 = arith.constant 0 : index
    %c3_120 = arith.constant 3 : index
    %c1_121 = arith.constant 1 : index
    %c1_122 = arith.constant 1 : index
    %c0_123 = arith.constant 0 : index
    %93 = vector.load %arg1[%c0_119, %c3_120, %c1_121, %c1_122, %c0_123] : memref<1x4x10x10x4xf32, #tpu.memory_space<vmem>>, vector<1x1x8x8x4xf32>
    %94 = vector.shape_cast %93 : vector<1x1x8x8x4xf32> to vector<1x8x8x4xf32>
    %cst_124 = arith.constant 0.000000e+00 : f32
    %95 = vector.broadcast %cst_124 : f32 to vector<1x8x8x4xf32>
    %96 = arith.cmpf oge, %94, %95 : vector<1x8x8x4xf32>
    %cst_125 = arith.constant 2.000000e-01 : f32
    %97 = vector.broadcast %cst_125 : f32 to vector<1x8x8x4xf32>
    %98 = arith.mulf %97, %94 : vector<1x8x8x4xf32>
    %99 = arith.select %96, %94, %98 : vector<1x8x8x4xi1>, vector<1x8x8x4xf32>
    %c0_126 = arith.constant 0 : index
    %c0_127 = arith.constant 0 : index
    %c0_128 = arith.constant 0 : index
    %c8_129 = arith.constant 8 : index
    %100 = vector.load %arg8[%c0_126, %c0_127, %c0_128, %c8_129] : memref<1x8x8x16xf32, #tpu.memory_space<vmem>>, vector<1x8x8x4xf32>
    tpu.vector_store %arg8[%c0_126, %c0_127, %c0_128, %c8_129], %99 {strides = array<i32>} : memref<1x8x8x16xf32, #tpu.memory_space<vmem>>, vector<1x8x8x4xf32>,
    %c0_130 = arith.constant 0 : index
    %c2_131 = arith.constant 2 : index
    %c1_132 = arith.constant 1 : index
    %c2_133 = arith.constant 2 : index
    %c0_134 = arith.constant 0 : index
    %101 = vector.load %arg1[%c0_130, %c2_131, %c1_132, %c2_133, %c0_134] : memref<1x4x10x10x4xf32, #tpu.memory_space<vmem>>, vector<1x1x8x8x4xf32>
    %102 = vector.shape_cast %101 : vector<1x1x8x8x4xf32> to vector<1x8x8x4xf32>
    %cst_135 = arith.constant 0.000000e+00 : f32
    %103 = vector.broadcast %cst_135 : f32 to vector<1x8x8x4xf32>
    %104 = arith.cmpf oge, %102, %103 : vector<1x8x8x4xf32>
    %cst_136 = arith.constant 2.000000e-01 : f32
    %105 = vector.broadcast %cst_136 : f32 to vector<1x8x8x4xf32>
    %106 = arith.mulf %105, %102 : vector<1x8x8x4xf32>
    %107 = arith.select %104, %102, %106 : vector<1x8x8x4xi1>, vector<1x8x8x4xf32>
    %c0_137 = arith.constant 0 : index
    %c0_138 = arith.constant 0 : index
    %c0_139 = arith.constant 0 : index
    %c12_140 = arith.constant 12 : index
    %108 = vector.load %arg8[%c0_137, %c0_138, %c0_139, %c12_140] : memref<1x8x8x16xf32, #tpu.memory_space<vmem>>, vector<1x8x8x4xf32>
    tpu.vector_store %arg8[%c0_137, %c0_138, %c0_139, %c12_140], %107 {strides = array<i32>} : memref<1x8x8x16xf32, #tpu.memory_space<vmem>>, vector<1x8x8x4xf32>,
    %c0_141 = arith.constant 0 : index
    %c0_142 = arith.constant 0 : index
    %c0_143 = arith.constant 0 : index
    %c0_144 = arith.constant 0 : index
    %109 = vector.load %arg8[%c0_141, %c0_142, %c0_143, %c0_144] : memref<1x8x8x16xf32, #tpu.memory_space<vmem>>, vector<1x8x8x16xf32>
    %110 = vector.shape_cast %109 : vector<1x8x8x16xf32> to vector<64x16xf32>
    %c2_145 = arith.constant 2 : index
    %c0_146 = arith.constant 0 : index
    %c0_147 = arith.constant 0 : index
    %111 = vector.load %arg2[%c2_145, %c0_146, %c0_147] : memref<4x16x8xf32, #tpu.memory_space<vmem>>, vector<1x16x8xf32>
    %112 = vector.shape_cast %111 : vector<1x16x8xf32> to vector<16x8xf32>
    %cst_148 = arith.constant dense<0.000000e+00> : vector<64x8xf32>
    %113 = tpu.matmul %110, %112, %cst_148 {dimension_numbers = #tpu.dot_dimension_numbers<[1], [0], [0], [1], [0, 0, 1, 1], [], []>} : vector<64x16xf32>, vector<16x8xf32>, vector<64x8xf32> -> vector<64x8xf32>
    %114 = arith.addf %76, %113 : vector<64x8xf32>
    %c0_149 = arith.constant 0 : index
    %c1_150 = arith.constant 1 : index
    %c2_151 = arith.constant 2 : index
    %c0_152 = arith.constant 0 : index
    %c0_153 = arith.constant 0 : index
    %115 = vector.load %arg1[%c0_149, %c1_150, %c2_151, %c0_152, %c0_153] : memref<1x4x10x10x4xf32, #tpu.memory_space<vmem>>, vector<1x1x8x8x4xf32>
    %116 = vector.shape_cast %115 : vector<1x1x8x8x4xf32> to vector<1x8x8x4xf32>
    %cst_154 = arith.constant 0.000000e+00 : f32
    %117 = vector.broadcast %cst_154 : f32 to vector<1x8x8x4xf32>
    %118 = arith.cmpf oge, %116, %117 : vector<1x8x8x4xf32>
    %cst_155 = arith.constant 2.000000e-01 : f32
    %119 = vector.broadcast %cst_155 : f32 to vector<1x8x8x4xf32>
    %120 = arith.mulf %119, %116 : vector<1x8x8x4xf32>
    %121 = arith.select %118, %116, %120 : vector<1x8x8x4xi1>, vector<1x8x8x4xf32>
    %c0_156 = arith.constant 0 : index
    %c0_157 = arith.constant 0 : index
    %c0_158 = arith.constant 0 : index
    %c0_159 = arith.constant 0 : index
    %122 = vector.load %arg8[%c0_156, %c0_157, %c0_158, %c0_159] : memref<1x8x8x16xf32, #tpu.memory_space<vmem>>, vector<1x8x8x4xf32>
    tpu.vector_store %arg8[%c0_156, %c0_157, %c0_158, %c0_159], %121 {strides = array<i32>} : memref<1x8x8x16xf32, #tpu.memory_space<vmem>>, vector<1x8x8x4xf32>,
    %c0_160 = arith.constant 0 : index
    %c0_161 = arith.constant 0 : index
    %c2_162 = arith.constant 2 : index
    %c1_163 = arith.constant 1 : index
    %c0_164 = arith.constant 0 : index
    %123 = vector.load %arg1[%c0_160, %c0_161, %c2_162, %c1_163, %c0_164] : memref<1x4x10x10x4xf32, #tpu.memory_space<vmem>>, vector<1x1x8x8x4xf32>
    %124 = vector.shape_cast %123 : vector<1x1x8x8x4xf32> to vector<1x8x8x4xf32>
    %cst_165 = arith.constant 0.000000e+00 : f32
    %125 = vector.broadcast %cst_165 : f32 to vector<1x8x8x4xf32>
    %126 = arith.cmpf oge, %124, %125 : vector<1x8x8x4xf32>
    %cst_166 = arith.constant 2.000000e-01 : f32
    %127 = vector.broadcast %cst_166 : f32 to vector<1x8x8x4xf32>
    %128 = arith.mulf %127, %124 : vector<1x8x8x4xf32>
    %129 = arith.select %126, %124, %128 : vector<1x8x8x4xi1>, vector<1x8x8x4xf32>
    %c0_167 = arith.constant 0 : index
    %c0_168 = arith.constant 0 : index
    %c0_169 = arith.constant 0 : index
    %c4_170 = arith.constant 4 : index
    %130 = vector.load %arg8[%c0_167, %c0_168, %c0_169, %c4_170] : memref<1x8x8x16xf32, #tpu.memory_space<vmem>>, vector<1x8x8x4xf32>
    tpu.vector_store %arg8[%c0_167, %c0_168, %c0_169, %c4_170], %129 {strides = array<i32>} : memref<1x8x8x16xf32, #tpu.memory_space<vmem>>, vector<1x8x8x4xf32>,
    %c0_171 = arith.constant 0 : index
    %c1_172 = arith.constant 1 : index
    %c2_173 = arith.constant 2 : index
    %c1_174 = arith.constant 1 : index
    %c0_175 = arith.constant 0 : index
    %131 = vector.load %arg1[%c0_171, %c1_172, %c2_173, %c1_174, %c0_175] : memref<1x4x10x10x4xf32, #tpu.memory_space<vmem>>, vector<1x1x8x8x4xf32>
    %132 = vector.shape_cast %131 : vector<1x1x8x8x4xf32> to vector<1x8x8x4xf32>
    %cst_176 = arith.constant 0.000000e+00 : f32
    %133 = vector.broadcast %cst_176 : f32 to vector<1x8x8x4xf32>
    %134 = arith.cmpf oge, %132, %133 : vector<1x8x8x4xf32>
    %cst_177 = arith.constant 2.000000e-01 : f32
    %135 = vector.broadcast %cst_177 : f32 to vector<1x8x8x4xf32>
    %136 = arith.mulf %135, %132 : vector<1x8x8x4xf32>
    %137 = arith.select %134, %132, %136 : vector<1x8x8x4xi1>, vector<1x8x8x4xf32>
    %c0_178 = arith.constant 0 : index
    %c0_179 = arith.constant 0 : index
    %c0_180 = arith.constant 0 : index
    %c8_181 = arith.constant 8 : index
    %138 = vector.load %arg8[%c0_178, %c0_179, %c0_180, %c8_181] : memref<1x8x8x16xf32, #tpu.memory_space<vmem>>, vector<1x8x8x4xf32>
    tpu.vector_store %arg8[%c0_178, %c0_179, %c0_180, %c8_181], %137 {strides = array<i32>} : memref<1x8x8x16xf32, #tpu.memory_space<vmem>>, vector<1x8x8x4xf32>,
    %c0_182 = arith.constant 0 : index
    %c0_183 = arith.constant 0 : index
    %c2_184 = arith.constant 2 : index
    %c2_185 = arith.constant 2 : index
    %c0_186 = arith.constant 0 : index
    %139 = vector.load %arg1[%c0_182, %c0_183, %c2_184, %c2_185, %c0_186] : memref<1x4x10x10x4xf32, #tpu.memory_space<vmem>>, vector<1x1x8x8x4xf32>
    %140 = vector.shape_cast %139 : vector<1x1x8x8x4xf32> to vector<1x8x8x4xf32>
    %cst_187 = arith.constant 0.000000e+00 : f32
    %141 = vector.broadcast %cst_187 : f32 to vector<1x8x8x4xf32>
    %142 = arith.cmpf oge, %140, %141 : vector<1x8x8x4xf32>
    %cst_188 = arith.constant 2.000000e-01 : f32
    %143 = vector.broadcast %cst_188 : f32 to vector<1x8x8x4xf32>
    %144 = arith.mulf %143, %140 : vector<1x8x8x4xf32>
    %145 = arith.select %142, %140, %144 : vector<1x8x8x4xi1>, vector<1x8x8x4xf32>
    %c0_189 = arith.constant 0 : index
    %c0_190 = arith.constant 0 : index
    %c0_191 = arith.constant 0 : index
    %c12_192 = arith.constant 12 : index
    %146 = vector.load %arg8[%c0_189, %c0_190, %c0_191, %c12_192] : memref<1x8x8x16xf32, #tpu.memory_space<vmem>>, vector<1x8x8x4xf32>
    tpu.vector_store %arg8[%c0_189, %c0_190, %c0_191, %c12_192], %145 {strides = array<i32>} : memref<1x8x8x16xf32, #tpu.memory_space<vmem>>, vector<1x8x8x4xf32>,
    %c0_193 = arith.constant 0 : index
    %c0_194 = arith.constant 0 : index
    %c0_195 = arith.constant 0 : index
    %c0_196 = arith.constant 0 : index
    %147 = vector.load %arg8[%c0_193, %c0_194, %c0_195, %c0_196] : memref<1x8x8x16xf32, #tpu.memory_space<vmem>>, vector<1x8x8x16xf32>
    %148 = vector.shape_cast %147 : vector<1x8x8x16xf32> to vector<64x16xf32>
    %c3_197 = arith.constant 3 : index
    %c0_198 = arith.constant 0 : index
    %c0_199 = arith.constant 0 : index
    %149 = vector.load %arg2[%c3_197, %c0_198, %c0_199] : memref<4x16x8xf32, #tpu.memory_space<vmem>>, vector<1x16x8xf32>
    %150 = vector.shape_cast %149 : vector<1x16x8xf32> to vector<16x8xf32>
    %cst_200 = arith.constant dense<0.000000e+00> : vector<64x8xf32>
    %151 = tpu.matmul %148, %150, %cst_200 {dimension_numbers = #tpu.dot_dimension_numbers<[1], [0], [0], [1], [0, 0, 1, 1], [], []>} : vector<64x16xf32>, vector<16x8xf32>, vector<64x8xf32> -> vector<64x8xf32>
    %152 = arith.addf %114, %151 : vector<64x8xf32>
    %c0_201 = arith.constant 0 : index
    %c0_202 = arith.constant 0 : index
    %153 = vector.load %arg3[%c0_201, %c0_202] : memref<1x8xf32, #tpu.memory_space<vmem>>, vector<1x8xf32>
    %154 = vector.broadcast %153 : vector<1x8xf32> to vector<64x8xf32>
    %155 = arith.addf %152, %154 : vector<64x8xf32>
    %cst_203 = arith.constant 0.000000e+00 : f32
    %156 = vector.broadcast %cst_203 : f32 to vector<64x8xf32>
    %157 = arith.maximumf %155, %156 : vector<64x8xf32>
    %cst_204 = arith.constant 0.000000e+00 : f32
    %158 = vector.broadcast %cst_204 : f32 to vector<1x10x8xf32>
    %cst_205 = arith.constant 0.000000e+00 : f32
    %159 = vector.broadcast %cst_205 : f32 to vector<1x8x8xf32>
    %c0_206 = arith.constant 0 : index
    %c0_207 = arith.constant 0 : index
    %c0_208 = arith.constant 0 : index
    %c0_209 = arith.constant 0 : index
    %160 = vector.load %arg9[%c0_206, %c0_207, %c0_208, %c0_209] : memref<1x10x10x8xf32, #tpu.memory_space<vmem>>, vector<1x1x10x8xf32>
    %161 = vector.shape_cast %160 : vector<1x1x10x8xf32> to vector<1x10x8xf32>
    %162 = vector.shape_cast %158 : vector<1x10x8xf32> to vector<1x1x10x8xf32>
    tpu.vector_store %arg9[%c0_206, %c0_207, %c0_208, %c0_209], %162 {strides = array<i32>} : memref<1x10x10x8xf32, #tpu.memory_space<vmem>>, vector<1x1x10x8xf32>,
    %c0_210 = arith.constant 0 : index
    %c9 = arith.constant 9 : index
    %c0_211 = arith.constant 0 : index
    %c0_212 = arith.constant 0 : index
    %163 = vector.load %arg9[%c0_210, %c9, %c0_211, %c0_212] : memref<1x10x10x8xf32, #tpu.memory_space<vmem>>, vector<1x1x10x8xf32>
    %164 = vector.shape_cast %163 : vector<1x1x10x8xf32> to vector<1x10x8xf32>
    %165 = vector.shape_cast %158 : vector<1x10x8xf32> to vector<1x1x10x8xf32>
    tpu.vector_store %arg9[%c0_210, %c9, %c0_211, %c0_212], %165 {strides = array<i32>} : memref<1x10x10x8xf32, #tpu.memory_space<vmem>>, vector<1x1x10x8xf32>,
    %c0_213 = arith.constant 0 : index
    %c1_214 = arith.constant 1 : index
    %c0_215 = arith.constant 0 : index
    %c0_216 = arith.constant 0 : index
    %166 = vector.load %arg9[%c0_213, %c1_214, %c0_215, %c0_216] : memref<1x10x10x8xf32, #tpu.memory_space<vmem>>, vector<1x8x1x8xf32>
    %167 = vector.shape_cast %166 : vector<1x8x1x8xf32> to vector<1x8x8xf32>
    %168 = vector.shape_cast %159 : vector<1x8x8xf32> to vector<1x8x1x8xf32>
    tpu.vector_store %arg9[%c0_213, %c1_214, %c0_215, %c0_216], %168 {strides = array<i32>} : memref<1x10x10x8xf32, #tpu.memory_space<vmem>>, vector<1x8x1x8xf32>,
    %c0_217 = arith.constant 0 : index
    %c1_218 = arith.constant 1 : index
    %c9_219 = arith.constant 9 : index
    %c0_220 = arith.constant 0 : index
    %169 = vector.load %arg9[%c0_217, %c1_218, %c9_219, %c0_220] : memref<1x10x10x8xf32, #tpu.memory_space<vmem>>, vector<1x8x1x8xf32>
    %170 = vector.shape_cast %169 : vector<1x8x1x8xf32> to vector<1x8x8xf32>
    %171 = vector.shape_cast %159 : vector<1x8x8xf32> to vector<1x8x1x8xf32>
    tpu.vector_store %arg9[%c0_217, %c1_218, %c9_219, %c0_220], %171 {strides = array<i32>} : memref<1x10x10x8xf32, #tpu.memory_space<vmem>>, vector<1x8x1x8xf32>,
    %172 = vector.shape_cast %157 : vector<64x8xf32> to vector<1x8x8x8xf32>
    %c0_221 = arith.constant 0 : index
    %c1_222 = arith.constant 1 : index
    %c1_223 = arith.constant 1 : index
    %c0_224 = arith.constant 0 : index
    %173 = vector.load %arg9[%c0_221, %c1_222, %c1_223, %c0_224] : memref<1x10x10x8xf32, #tpu.memory_space<vmem>>, vector<1x8x8x8xf32>
    tpu.vector_store %arg9[%c0_221, %c1_222, %c1_223, %c0_224], %172 {strides = array<i32>} : memref<1x10x10x8xf32, #tpu.memory_space<vmem>>, vector<1x8x8x8xf32>,
    %cst_225 = arith.constant 0.000000e+00 : f32
    %174 = vector.broadcast %cst_225 : f32 to vector<1x4xf32>
    %cst_226 = arith.constant 0.000000e+00 : f32
    %175 = vector.broadcast %cst_226 : f32 to vector<1x4xf32>
    %c0_227 = arith.constant 0 : index
    %c1_228 = arith.constant 1 : index
    %c1_229 = arith.constant 1 : index
    %c0_230 = arith.constant 0 : index
    %176 = vector.load %arg9[%c0_227, %c1_228, %c1_229, %c0_230] : memref<1x10x10x8xf32, #tpu.memory_space<vmem>>, vector<1x8x8x8xf32>
    %c0_231 = arith.constant 0 : index
    %c0_232 = arith.constant 0 : index
    %c0_233 = arith.constant 0 : index
    %c0_234 = arith.constant 0 : index
    %177 = vector.load %arg10[%c0_231, %c0_232, %c0_233, %c0_234] : memref<1x8x8x32xf32, #tpu.memory_space<vmem>>, vector<1x8x8x8xf32>
    tpu.vector_store %arg10[%c0_231, %c0_232, %c0_233, %c0_234], %176 {strides = array<i32>} : memref<1x8x8x32xf32, #tpu.memory_space<vmem>>, vector<1x8x8x8xf32>,
    %c0_235 = arith.constant 0 : index
    %c1_236 = arith.constant 1 : index
    %c0_237 = arith.constant 0 : index
    %c0_238 = arith.constant 0 : index
    %178 = vector.load %arg9[%c0_235, %c1_236, %c0_237, %c0_238] : memref<1x10x10x8xf32, #tpu.memory_space<vmem>>, vector<1x8x8x8xf32>
    %c0_239 = arith.constant 0 : index
    %c0_240 = arith.constant 0 : index
    %c0_241 = arith.constant 0 : index
    %c8_242 = arith.constant 8 : index
    %179 = vector.load %arg10[%c0_239, %c0_240, %c0_241, %c8_242] : memref<1x8x8x32xf32, #tpu.memory_space<vmem>>, vector<1x8x8x8xf32>
    tpu.vector_store %arg10[%c0_239, %c0_240, %c0_241, %c8_242], %178 {strides = array<i32>} : memref<1x8x8x32xf32, #tpu.memory_space<vmem>>, vector<1x8x8x8xf32>,
    %c0_243 = arith.constant 0 : index
    %c0_244 = arith.constant 0 : index
    %c1_245 = arith.constant 1 : index
    %c0_246 = arith.constant 0 : index
    %180 = vector.load %arg9[%c0_243, %c0_244, %c1_245, %c0_246] : memref<1x10x10x8xf32, #tpu.memory_space<vmem>>, vector<1x8x8x8xf32>
    %c0_247 = arith.constant 0 : index
    %c0_248 = arith.constant 0 : index
    %c0_249 = arith.constant 0 : index
    %c16 = arith.constant 16 : index
    %181 = vector.load %arg10[%c0_247, %c0_248, %c0_249, %c16] : memref<1x8x8x32xf32, #tpu.memory_space<vmem>>, vector<1x8x8x8xf32>
    tpu.vector_store %arg10[%c0_247, %c0_248, %c0_249, %c16], %180 {strides = array<i32>} : memref<1x8x8x32xf32, #tpu.memory_space<vmem>>, vector<1x8x8x8xf32>,
    %c0_250 = arith.constant 0 : index
    %c0_251 = arith.constant 0 : index
    %c0_252 = arith.constant 0 : index
    %c0_253 = arith.constant 0 : index
    %182 = vector.load %arg9[%c0_250, %c0_251, %c0_252, %c0_253] : memref<1x10x10x8xf32, #tpu.memory_space<vmem>>, vector<1x8x8x8xf32>
    %c0_254 = arith.constant 0 : index
    %c0_255 = arith.constant 0 : index
    %c0_256 = arith.constant 0 : index
    %c24 = arith.constant 24 : index
    %183 = vector.load %arg10[%c0_254, %c0_255, %c0_256, %c24] : memref<1x8x8x32xf32, #tpu.memory_space<vmem>>, vector<1x8x8x8xf32>
    tpu.vector_store %arg10[%c0_254, %c0_255, %c0_256, %c24], %182 {strides = array<i32>} : memref<1x8x8x32xf32, #tpu.memory_space<vmem>>, vector<1x8x8x8xf32>,
    %c0_257 = arith.constant 0 : index
    %c0_258 = arith.constant 0 : index
    %c0_259 = arith.constant 0 : index
    %c0_260 = arith.constant 0 : index
    %184 = vector.load %arg10[%c0_257, %c0_258, %c0_259, %c0_260] : memref<1x8x8x32xf32, #tpu.memory_space<vmem>>, vector<1x8x8x32xf32>
    %185 = vector.shape_cast %184 : vector<1x8x8x32xf32> to vector<64x32xf32>
    %c0_261 = arith.constant 0 : index
    %c0_262 = arith.constant 0 : index
    %c0_263 = arith.constant 0 : index
    %186 = vector.load %arg4[%c0_261, %c0_262, %c0_263] : memref<4x32x4xf32, #tpu.memory_space<vmem>>, vector<1x32x4xf32>
    %187 = vector.shape_cast %186 : vector<1x32x4xf32> to vector<32x4xf32>
    %cst_264 = arith.constant dense<0.000000e+00> : vector<64x4xf32>
    %188 = tpu.matmul %185, %187, %cst_264 {dimension_numbers = #tpu.dot_dimension_numbers<[1], [0], [0], [1], [0, 0, 1, 1], [], []>} : vector<64x32xf32>, vector<32x4xf32>, vector<64x4xf32> -> vector<64x4xf32>
    %c0_265 = arith.constant 0 : index
    %c0_266 = arith.constant 0 : index
    %189 = vector.load %arg5[%c0_265, %c0_266] : memref<1x4xf32, #tpu.memory_space<vmem>>, vector<1x4xf32>
    %190 = vector.broadcast %189 : vector<1x4xf32> to vector<64x4xf32>
    %191 = arith.addf %188, %190 : vector<64x4xf32>
    %cst_267 = arith.constant dense<0.000000e+00> : vector<4xf32>
    %192 = vector.multi_reduction <add>, %191, %cst_267 [0] : vector<64x4xf32> to vector<4xf32>
    %193 = vector.shape_cast %192 : vector<4xf32> to vector<1x4xf32>
    %194 = arith.addf %174, %193 : vector<1x4xf32>
    %195 = arith.mulf %191, %191 : vector<64x4xf32>
    %cst_268 = arith.constant dense<0.000000e+00> : vector<4xf32>
    %196 = vector.multi_reduction <add>, %195, %cst_268 [0] : vector<64x4xf32> to vector<4xf32>
    %197 = vector.shape_cast %196 : vector<4xf32> to vector<1x4xf32>
    %198 = arith.addf %175, %197 : vector<1x4xf32>
    %199 = vector.shape_cast %191 : vector<64x4xf32> to vector<1x8x8x4xf32>
    %c0_269 = arith.constant 0 : index
    %c0_270 = arith.constant 0 : index
    %c0_271 = arith.constant 0 : index
    %c0_272 = arith.constant 0 : index
    %c0_273 = arith.constant 0 : index
    %c0_274 = arith.constant 0 : index
    %200 = vector.load %arg6[%c0_269, %c0_270, %c0_271, %c0_272, %c0_273, %c0_274] : memref<1x8x2x8x2x4xf32, #tpu.memory_space<vmem>>, vector<1x8x1x8x1x4xf32>
    %201 = vector.shape_cast %200 : vector<1x8x1x8x1x4xf32> to vector<1x8x8x4xf32>
    %202 = vector.shape_cast %199 : vector<1x8x8x4xf32> to vector<1x8x1x8x1x4xf32>
    tpu.vector_store %arg6[%c0_269, %c0_270, %c0_271, %c0_272, %c0_273, %c0_274], %202 {strides = array<i32>} : memref<1x8x2x8x2x4xf32, #tpu.memory_space<vmem>>, vector<1x8x1x8x1x4xf32>,
    %c0_275 = arith.constant 0 : index
    %c1_276 = arith.constant 1 : index
    %c1_277 = arith.constant 1 : index
    %c0_278 = arith.constant 0 : index
    %203 = vector.load %arg9[%c0_275, %c1_276, %c1_277, %c0_278] : memref<1x10x10x8xf32, #tpu.memory_space<vmem>>, vector<1x8x8x8xf32>
    %c0_279 = arith.constant 0 : index
    %c0_280 = arith.constant 0 : index
    %c0_281 = arith.constant 0 : index
    %c0_282 = arith.constant 0 : index
    %204 = vector.load %arg10[%c0_279, %c0_280, %c0_281, %c0_282] : memref<1x8x8x32xf32, #tpu.memory_space<vmem>>, vector<1x8x8x8xf32>
    tpu.vector_store %arg10[%c0_279, %c0_280, %c0_281, %c0_282], %203 {strides = array<i32>} : memref<1x8x8x32xf32, #tpu.memory_space<vmem>>, vector<1x8x8x8xf32>,
    %c0_283 = arith.constant 0 : index
    %c1_284 = arith.constant 1 : index
    %c2_285 = arith.constant 2 : index
    %c0_286 = arith.constant 0 : index
    %205 = vector.load %arg9[%c0_283, %c1_284, %c2_285, %c0_286] : memref<1x10x10x8xf32, #tpu.memory_space<vmem>>, vector<1x8x8x8xf32>
    %c0_287 = arith.constant 0 : index
    %c0_288 = arith.constant 0 : index
    %c0_289 = arith.constant 0 : index
    %c8_290 = arith.constant 8 : index
    %206 = vector.load %arg10[%c0_287, %c0_288, %c0_289, %c8_290] : memref<1x8x8x32xf32, #tpu.memory_space<vmem>>, vector<1x8x8x8xf32>
    tpu.vector_store %arg10[%c0_287, %c0_288, %c0_289, %c8_290], %205 {strides = array<i32>} : memref<1x8x8x32xf32, #tpu.memory_space<vmem>>, vector<1x8x8x8xf32>,
    %c0_291 = arith.constant 0 : index
    %c0_292 = arith.constant 0 : index
    %c1_293 = arith.constant 1 : index
    %c0_294 = arith.constant 0 : index
    %207 = vector.load %arg9[%c0_291, %c0_292, %c1_293, %c0_294] : memref<1x10x10x8xf32, #tpu.memory_space<vmem>>, vector<1x8x8x8xf32>
    %c0_295 = arith.constant 0 : index
    %c0_296 = arith.constant 0 : index
    %c0_297 = arith.constant 0 : index
    %c16_298 = arith.constant 16 : index
    %208 = vector.load %arg10[%c0_295, %c0_296, %c0_297, %c16_298] : memref<1x8x8x32xf32, #tpu.memory_space<vmem>>, vector<1x8x8x8xf32>
    tpu.vector_store %arg10[%c0_295, %c0_296, %c0_297, %c16_298], %207 {strides = array<i32>} : memref<1x8x8x32xf32, #tpu.memory_space<vmem>>, vector<1x8x8x8xf32>,
    %c0_299 = arith.constant 0 : index
    %c0_300 = arith.constant 0 : index
    %c2_301 = arith.constant 2 : index
    %c0_302 = arith.constant 0 : index
    %209 = vector.load %arg9[%c0_299, %c0_300, %c2_301, %c0_302] : memref<1x10x10x8xf32, #tpu.memory_space<vmem>>, vector<1x8x8x8xf32>
    %c0_303 = arith.constant 0 : index
    %c0_304 = arith.constant 0 : index
    %c0_305 = arith.constant 0 : index
    %c24_306 = arith.constant 24 : index
    %210 = vector.load %arg10[%c0_303, %c0_304, %c0_305, %c24_306] : memref<1x8x8x32xf32, #tpu.memory_space<vmem>>, vector<1x8x8x8xf32>
    tpu.vector_store %arg10[%c0_303, %c0_304, %c0_305, %c24_306], %209 {strides = array<i32>} : memref<1x8x8x32xf32, #tpu.memory_space<vmem>>, vector<1x8x8x8xf32>,
    %c0_307 = arith.constant 0 : index
    %c0_308 = arith.constant 0 : index
    %c0_309 = arith.constant 0 : index
    %c0_310 = arith.constant 0 : index
    %211 = vector.load %arg10[%c0_307, %c0_308, %c0_309, %c0_310] : memref<1x8x8x32xf32, #tpu.memory_space<vmem>>, vector<1x8x8x32xf32>
    %212 = vector.shape_cast %211 : vector<1x8x8x32xf32> to vector<64x32xf32>
    %c1_311 = arith.constant 1 : index
    %c0_312 = arith.constant 0 : index
    %c0_313 = arith.constant 0 : index
    %213 = vector.load %arg4[%c1_311, %c0_312, %c0_313] : memref<4x32x4xf32, #tpu.memory_space<vmem>>, vector<1x32x4xf32>
    %214 = vector.shape_cast %213 : vector<1x32x4xf32> to vector<32x4xf32>
    %cst_314 = arith.constant dense<0.000000e+00> : vector<64x4xf32>
    %215 = tpu.matmul %212, %214, %cst_314 {dimension_numbers = #tpu.dot_dimension_numbers<[1], [0], [0], [1], [0, 0, 1, 1], [], []>} : vector<64x32xf32>, vector<32x4xf32>, vector<64x4xf32> -> vector<64x4xf32>
    %c0_315 = arith.constant 0 : index
    %c0_316 = arith.constant 0 : index
    %216 = vector.load %arg5[%c0_315, %c0_316] : memref<1x4xf32, #tpu.memory_space<vmem>>, vector<1x4xf32>
    %217 = vector.broadcast %216 : vector<1x4xf32> to vector<64x4xf32>
    %218 = arith.addf %215, %217 : vector<64x4xf32>
    %cst_317 = arith.constant dense<0.000000e+00> : vector<4xf32>
    %219 = vector.multi_reduction <add>, %218, %cst_317 [0] : vector<64x4xf32> to vector<4xf32>
    %220 = vector.shape_cast %219 : vector<4xf32> to vector<1x4xf32>
    %221 = arith.addf %194, %220 : vector<1x4xf32>
    %222 = arith.mulf %218, %218 : vector<64x4xf32>
    %cst_318 = arith.constant dense<0.000000e+00> : vector<4xf32>
    %223 = vector.multi_reduction <add>, %222, %cst_318 [0] : vector<64x4xf32> to vector<4xf32>
    %224 = vector.shape_cast %223 : vector<4xf32> to vector<1x4xf32>
    %225 = arith.addf %198, %224 : vector<1x4xf32>
    %226 = vector.shape_cast %218 : vector<64x4xf32> to vector<1x8x8x4xf32>
    %c0_319 = arith.constant 0 : index
    %c0_320 = arith.constant 0 : index
    %c0_321 = arith.constant 0 : index
    %c0_322 = arith.constant 0 : index
    %c1_323 = arith.constant 1 : index
    %c0_324 = arith.constant 0 : index
    %227 = vector.load %arg6[%c0_319, %c0_320, %c0_321, %c0_322, %c1_323, %c0_324] : memref<1x8x2x8x2x4xf32, #tpu.memory_space<vmem>>, vector<1x8x1x8x1x4xf32>
    %228 = vector.shape_cast %227 : vector<1x8x1x8x1x4xf32> to vector<1x8x8x4xf32>
    %229 = vector.shape_cast %226 : vector<1x8x8x4xf32> to vector<1x8x1x8x1x4xf32>
    tpu.vector_store %arg6[%c0_319, %c0_320, %c0_321, %c0_322, %c1_323, %c0_324], %229 {strides = array<i32>} : memref<1x8x2x8x2x4xf32, #tpu.memory_space<vmem>>, vector<1x8x1x8x1x4xf32>,
    %c0_325 = arith.constant 0 : index
    %c1_326 = arith.constant 1 : index
    %c1_327 = arith.constant 1 : index
    %c0_328 = arith.constant 0 : index
    %230 = vector.load %arg9[%c0_325, %c1_326, %c1_327, %c0_328] : memref<1x10x10x8xf32, #tpu.memory_space<vmem>>, vector<1x8x8x8xf32>
    %c0_329 = arith.constant 0 : index
    %c0_330 = arith.constant 0 : index
    %c0_331 = arith.constant 0 : index
    %c0_332 = arith.constant 0 : index
    %231 = vector.load %arg10[%c0_329, %c0_330, %c0_331, %c0_332] : memref<1x8x8x32xf32, #tpu.memory_space<vmem>>, vector<1x8x8x8xf32>
    tpu.vector_store %arg10[%c0_329, %c0_330, %c0_331, %c0_332], %230 {strides = array<i32>} : memref<1x8x8x32xf32, #tpu.memory_space<vmem>>, vector<1x8x8x8xf32>,
    %c0_333 = arith.constant 0 : index
    %c1_334 = arith.constant 1 : index
    %c0_335 = arith.constant 0 : index
    %c0_336 = arith.constant 0 : index
    %232 = vector.load %arg9[%c0_333, %c1_334, %c0_335, %c0_336] : memref<1x10x10x8xf32, #tpu.memory_space<vmem>>, vector<1x8x8x8xf32>
    %c0_337 = arith.constant 0 : index
    %c0_338 = arith.constant 0 : index
    %c0_339 = arith.constant 0 : index
    %c8_340 = arith.constant 8 : index
    %233 = vector.load %arg10[%c0_337, %c0_338, %c0_339, %c8_340] : memref<1x8x8x32xf32, #tpu.memory_space<vmem>>, vector<1x8x8x8xf32>
    tpu.vector_store %arg10[%c0_337, %c0_338, %c0_339, %c8_340], %232 {strides = array<i32>} : memref<1x8x8x32xf32, #tpu.memory_space<vmem>>, vector<1x8x8x8xf32>,
    %c0_341 = arith.constant 0 : index
    %c2_342 = arith.constant 2 : index
    %c1_343 = arith.constant 1 : index
    %c0_344 = arith.constant 0 : index
    %234 = vector.load %arg9[%c0_341, %c2_342, %c1_343, %c0_344] : memref<1x10x10x8xf32, #tpu.memory_space<vmem>>, vector<1x8x8x8xf32>
    %c0_345 = arith.constant 0 : index
    %c0_346 = arith.constant 0 : index
    %c0_347 = arith.constant 0 : index
    %c16_348 = arith.constant 16 : index
    %235 = vector.load %arg10[%c0_345, %c0_346, %c0_347, %c16_348] : memref<1x8x8x32xf32, #tpu.memory_space<vmem>>, vector<1x8x8x8xf32>
    tpu.vector_store %arg10[%c0_345, %c0_346, %c0_347, %c16_348], %234 {strides = array<i32>} : memref<1x8x8x32xf32, #tpu.memory_space<vmem>>, vector<1x8x8x8xf32>,
    %c0_349 = arith.constant 0 : index
    %c2_350 = arith.constant 2 : index
    %c0_351 = arith.constant 0 : index
    %c0_352 = arith.constant 0 : index
    %236 = vector.load %arg9[%c0_349, %c2_350, %c0_351, %c0_352] : memref<1x10x10x8xf32, #tpu.memory_space<vmem>>, vector<1x8x8x8xf32>
    %c0_353 = arith.constant 0 : index
    %c0_354 = arith.constant 0 : index
    %c0_355 = arith.constant 0 : index
    %c24_356 = arith.constant 24 : index
    %237 = vector.load %arg10[%c0_353, %c0_354, %c0_355, %c24_356] : memref<1x8x8x32xf32, #tpu.memory_space<vmem>>, vector<1x8x8x8xf32>
    tpu.vector_store %arg10[%c0_353, %c0_354, %c0_355, %c24_356], %236 {strides = array<i32>} : memref<1x8x8x32xf32, #tpu.memory_space<vmem>>, vector<1x8x8x8xf32>,
    %c0_357 = arith.constant 0 : index
    %c0_358 = arith.constant 0 : index
    %c0_359 = arith.constant 0 : index
    %c0_360 = arith.constant 0 : index
    %238 = vector.load %arg10[%c0_357, %c0_358, %c0_359, %c0_360] : memref<1x8x8x32xf32, #tpu.memory_space<vmem>>, vector<1x8x8x32xf32>
    %239 = vector.shape_cast %238 : vector<1x8x8x32xf32> to vector<64x32xf32>
    %c2_361 = arith.constant 2 : index
    %c0_362 = arith.constant 0 : index
    %c0_363 = arith.constant 0 : index
    %240 = vector.load %arg4[%c2_361, %c0_362, %c0_363] : memref<4x32x4xf32, #tpu.memory_space<vmem>>, vector<1x32x4xf32>
    %241 = vector.shape_cast %240 : vector<1x32x4xf32> to vector<32x4xf32>
    %cst_364 = arith.constant dense<0.000000e+00> : vector<64x4xf32>
    %242 = tpu.matmul %239, %241, %cst_364 {dimension_numbers = #tpu.dot_dimension_numbers<[1], [0], [0], [1], [0, 0, 1, 1], [], []>} : vector<64x32xf32>, vector<32x4xf32>, vector<64x4xf32> -> vector<64x4xf32>
    %c0_365 = arith.constant 0 : index
    %c0_366 = arith.constant 0 : index
    %243 = vector.load %arg5[%c0_365, %c0_366] : memref<1x4xf32, #tpu.memory_space<vmem>>, vector<1x4xf32>
    %244 = vector.broadcast %243 : vector<1x4xf32> to vector<64x4xf32>
    %245 = arith.addf %242, %244 : vector<64x4xf32>
    %cst_367 = arith.constant dense<0.000000e+00> : vector<4xf32>
    %246 = vector.multi_reduction <add>, %245, %cst_367 [0] : vector<64x4xf32> to vector<4xf32>
    %247 = vector.shape_cast %246 : vector<4xf32> to vector<1x4xf32>
    %248 = arith.addf %221, %247 : vector<1x4xf32>
    %249 = arith.mulf %245, %245 : vector<64x4xf32>
    %cst_368 = arith.constant dense<0.000000e+00> : vector<4xf32>
    %250 = vector.multi_reduction <add>, %249, %cst_368 [0] : vector<64x4xf32> to vector<4xf32>
    %251 = vector.shape_cast %250 : vector<4xf32> to vector<1x4xf32>
    %252 = arith.addf %225, %251 : vector<1x4xf32>
    %253 = vector.shape_cast %245 : vector<64x4xf32> to vector<1x8x8x4xf32>
    %c0_369 = arith.constant 0 : index
    %c0_370 = arith.constant 0 : index
    %c1_371 = arith.constant 1 : index
    %c0_372 = arith.constant 0 : index
    %c0_373 = arith.constant 0 : index
    %c0_374 = arith.constant 0 : index
    %254 = vector.load %arg6[%c0_369, %c0_370, %c1_371, %c0_372, %c0_373, %c0_374] : memref<1x8x2x8x2x4xf32, #tpu.memory_space<vmem>>, vector<1x8x1x8x1x4xf32>
    %255 = vector.shape_cast %254 : vector<1x8x1x8x1x4xf32> to vector<1x8x8x4xf32>
    %256 = vector.shape_cast %253 : vector<1x8x8x4xf32> to vector<1x8x1x8x1x4xf32>
    tpu.vector_store %arg6[%c0_369, %c0_370, %c1_371, %c0_372, %c0_373, %c0_374], %256 {strides = array<i32>} : memref<1x8x2x8x2x4xf32, #tpu.memory_space<vmem>>, vector<1x8x1x8x1x4xf32>,
    %c0_375 = arith.constant 0 : index
    %c1_376 = arith.constant 1 : index
    %c1_377 = arith.constant 1 : index
    %c0_378 = arith.constant 0 : index
    %257 = vector.load %arg9[%c0_375, %c1_376, %c1_377, %c0_378] : memref<1x10x10x8xf32, #tpu.memory_space<vmem>>, vector<1x8x8x8xf32>
    %c0_379 = arith.constant 0 : index
    %c0_380 = arith.constant 0 : index
    %c0_381 = arith.constant 0 : index
    %c0_382 = arith.constant 0 : index
    %258 = vector.load %arg10[%c0_379, %c0_380, %c0_381, %c0_382] : memref<1x8x8x32xf32, #tpu.memory_space<vmem>>, vector<1x8x8x8xf32>
    tpu.vector_store %arg10[%c0_379, %c0_380, %c0_381, %c0_382], %257 {strides = array<i32>} : memref<1x8x8x32xf32, #tpu.memory_space<vmem>>, vector<1x8x8x8xf32>,
    %c0_383 = arith.constant 0 : index
    %c1_384 = arith.constant 1 : index
    %c2_385 = arith.constant 2 : index
    %c0_386 = arith.constant 0 : index
    %259 = vector.load %arg9[%c0_383, %c1_384, %c2_385, %c0_386] : memref<1x10x10x8xf32, #tpu.memory_space<vmem>>, vector<1x8x8x8xf32>
    %c0_387 = arith.constant 0 : index
    %c0_388 = arith.constant 0 : index
    %c0_389 = arith.constant 0 : index
    %c8_390 = arith.constant 8 : index
    %260 = vector.load %arg10[%c0_387, %c0_388, %c0_389, %c8_390] : memref<1x8x8x32xf32, #tpu.memory_space<vmem>>, vector<1x8x8x8xf32>
    tpu.vector_store %arg10[%c0_387, %c0_388, %c0_389, %c8_390], %259 {strides = array<i32>} : memref<1x8x8x32xf32, #tpu.memory_space<vmem>>, vector<1x8x8x8xf32>,
    %c0_391 = arith.constant 0 : index
    %c2_392 = arith.constant 2 : index
    %c1_393 = arith.constant 1 : index
    %c0_394 = arith.constant 0 : index
    %261 = vector.load %arg9[%c0_391, %c2_392, %c1_393, %c0_394] : memref<1x10x10x8xf32, #tpu.memory_space<vmem>>, vector<1x8x8x8xf32>
    %c0_395 = arith.constant 0 : index
    %c0_396 = arith.constant 0 : index
    %c0_397 = arith.constant 0 : index
    %c16_398 = arith.constant 16 : index
    %262 = vector.load %arg10[%c0_395, %c0_396, %c0_397, %c16_398] : memref<1x8x8x32xf32, #tpu.memory_space<vmem>>, vector<1x8x8x8xf32>
    tpu.vector_store %arg10[%c0_395, %c0_396, %c0_397, %c16_398], %261 {strides = array<i32>} : memref<1x8x8x32xf32, #tpu.memory_space<vmem>>, vector<1x8x8x8xf32>,
    %c0_399 = arith.constant 0 : index
    %c2_400 = arith.constant 2 : index
    %c2_401 = arith.constant 2 : index
    %c0_402 = arith.constant 0 : index
    %263 = vector.load %arg9[%c0_399, %c2_400, %c2_401, %c0_402] : memref<1x10x10x8xf32, #tpu.memory_space<vmem>>, vector<1x8x8x8xf32>
    %c0_403 = arith.constant 0 : index
    %c0_404 = arith.constant 0 : index
    %c0_405 = arith.constant 0 : index
    %c24_406 = arith.constant 24 : index
    %264 = vector.load %arg10[%c0_403, %c0_404, %c0_405, %c24_406] : memref<1x8x8x32xf32, #tpu.memory_space<vmem>>, vector<1x8x8x8xf32>
    tpu.vector_store %arg10[%c0_403, %c0_404, %c0_405, %c24_406], %263 {strides = array<i32>} : memref<1x8x8x32xf32, #tpu.memory_space<vmem>>, vector<1x8x8x8xf32>,
    %c0_407 = arith.constant 0 : index
    %c0_408 = arith.constant 0 : index
    %c0_409 = arith.constant 0 : index
    %c0_410 = arith.constant 0 : index
    %265 = vector.load %arg10[%c0_407, %c0_408, %c0_409, %c0_410] : memref<1x8x8x32xf32, #tpu.memory_space<vmem>>, vector<1x8x8x32xf32>
    %266 = vector.shape_cast %265 : vector<1x8x8x32xf32> to vector<64x32xf32>
    %c3_411 = arith.constant 3 : index
    %c0_412 = arith.constant 0 : index
    %c0_413 = arith.constant 0 : index
    %267 = vector.load %arg4[%c3_411, %c0_412, %c0_413] : memref<4x32x4xf32, #tpu.memory_space<vmem>>, vector<1x32x4xf32>
    %268 = vector.shape_cast %267 : vector<1x32x4xf32> to vector<32x4xf32>
    %cst_414 = arith.constant dense<0.000000e+00> : vector<64x4xf32>
    %269 = tpu.matmul %266, %268, %cst_414 {dimension_numbers = #tpu.dot_dimension_numbers<[1], [0], [0], [1], [0, 0, 1, 1], [], []>} : vector<64x32xf32>, vector<32x4xf32>, vector<64x4xf32> -> vector<64x4xf32>
    %c0_415 = arith.constant 0 : index
    %c0_416 = arith.constant 0 : index
    %270 = vector.load %arg5[%c0_415, %c0_416] : memref<1x4xf32, #tpu.memory_space<vmem>>, vector<1x4xf32>
    %271 = vector.broadcast %270 : vector<1x4xf32> to vector<64x4xf32>
    %272 = arith.addf %269, %271 : vector<64x4xf32>
    %cst_417 = arith.constant dense<0.000000e+00> : vector<4xf32>
    %273 = vector.multi_reduction <add>, %272, %cst_417 [0] : vector<64x4xf32> to vector<4xf32>
    %274 = vector.shape_cast %273 : vector<4xf32> to vector<1x4xf32>
    %275 = arith.addf %248, %274 : vector<1x4xf32>
    %276 = arith.mulf %272, %272 : vector<64x4xf32>
    %cst_418 = arith.constant dense<0.000000e+00> : vector<4xf32>
    %277 = vector.multi_reduction <add>, %276, %cst_418 [0] : vector<64x4xf32> to vector<4xf32>
    %278 = vector.shape_cast %277 : vector<4xf32> to vector<1x4xf32>
    %279 = arith.addf %252, %278 : vector<1x4xf32>
    %280 = vector.shape_cast %272 : vector<64x4xf32> to vector<1x8x8x4xf32>
    %c0_419 = arith.constant 0 : index
    %c0_420 = arith.constant 0 : index
    %c1_421 = arith.constant 1 : index
    %c0_422 = arith.constant 0 : index
    %c1_423 = arith.constant 1 : index
    %c0_424 = arith.constant 0 : index
    %281 = vector.load %arg6[%c0_419, %c0_420, %c1_421, %c0_422, %c1_423, %c0_424] : memref<1x8x2x8x2x4xf32, #tpu.memory_space<vmem>>, vector<1x8x1x8x1x4xf32>
    %282 = vector.shape_cast %281 : vector<1x8x1x8x1x4xf32> to vector<1x8x8x4xf32>
    %283 = vector.shape_cast %280 : vector<1x8x8x4xf32> to vector<1x8x1x8x1x4xf32>
    tpu.vector_store %arg6[%c0_419, %c0_420, %c1_421, %c0_422, %c1_423, %c0_424], %283 {strides = array<i32>} : memref<1x8x2x8x2x4xf32, #tpu.memory_space<vmem>>, vector<1x8x1x8x1x4xf32>,
    %c0_425 = arith.constant 0 : index
    %c0_426 = arith.constant 0 : index
    %c0_427 = arith.constant 0 : index
    %284 = vector.load %arg7[%c0_425, %c0_426, %c0_427] : memref<1x2x4xf32, #tpu.memory_space<vmem>>, vector<1x1x4xf32>
    %285 = vector.shape_cast %284 : vector<1x1x4xf32> to vector<1x4xf32>
    %286 = vector.shape_cast %275 : vector<1x4xf32> to vector<1x1x4xf32>
    tpu.vector_store %arg7[%c0_425, %c0_426, %c0_427], %286 {strides = array<i32>} : memref<1x2x4xf32, #tpu.memory_space<vmem>>, vector<1x1x4xf32>,
    %c0_428 = arith.constant 0 : index
    %c1_429 = arith.constant 1 : index
    %c0_430 = arith.constant 0 : index
    %287 = vector.load %arg7[%c0_428, %c1_429, %c0_430] : memref<1x2x4xf32, #tpu.memory_space<vmem>>, vector<1x1x4xf32>
    %288 = vector.shape_cast %287 : vector<1x1x4xf32> to vector<1x4xf32>
    %289 = vector.shape_cast %279 : vector<1x4xf32> to vector<1x1x4xf32>
    tpu.vector_store %arg7[%c0_428, %c1_429, %c0_430], %289 {strides = array<i32>} : memref<1x2x4xf32, #tpu.memory_space<vmem>>, vector<1x1x4xf32>,
    return
  }
  func.func @transform_0(%arg0: i32) -> (i32, i32, i32, i32, i32) {
    %c0_i32 = arith.constant 0 : i32
    %c0_i32_0 = arith.constant 0 : i32
    %c0_i32_1 = arith.constant 0 : i32
    %c0_i32_2 = arith.constant 0 : i32
    %c0_i32_3 = arith.constant 0 : i32
    return %arg0, %c0_i32, %c0_i32_0, %c0_i32_1, %c0_i32_2 : i32, i32, i32, i32, i32
  }
  func.func @transform_1(%arg0: i32) -> (i32, i32, i32) {
    %c0_i32 = arith.constant 0 : i32
    %c0_i32_0 = arith.constant 0 : i32
    %c0_i32_1 = arith.constant 0 : i32
    %c0_i32_2 = arith.constant 0 : i32
    return %c0_i32, %c0_i32_0, %c0_i32_1 : i32, i32, i32
  }
  func.func @transform_2(%arg0: i32) -> (i32, i32) {
    %c0_i32 = arith.constant 0 : i32
    %c0_i32_0 = arith.constant 0 : i32
    %c0_i32_1 = arith.constant 0 : i32
    return %c0_i32, %c0_i32_0 : i32, i32
  }
  func.func @transform_3(%arg0: i32) -> (i32, i32, i32) {
    %c0_i32 = arith.constant 0 : i32
    %c0_i32_0 = arith.constant 0 : i32
    %c0_i32_1 = arith.constant 0 : i32
    %c0_i32_2 = arith.constant 0 : i32
    return %c0_i32, %c0_i32_0, %c0_i32_1 : i32, i32, i32
  }
  func.func @transform_4(%arg0: i32) -> (i32, i32) {
    %c0_i32 = arith.constant 0 : i32
    %c0_i32_0 = arith.constant 0 : i32
    %c0_i32_1 = arith.constant 0 : i32
    return %c0_i32, %c0_i32_0 : i32, i32
  }
  func.func @transform_5(%arg0: i32) -> (i32, i32, i32, i32, i32, i32) {
    %c0_i32 = arith.constant 0 : i32
    %c0_i32_0 = arith.constant 0 : i32
    %c0_i32_1 = arith.constant 0 : i32
    %c0_i32_2 = arith.constant 0 : i32
    %c0_i32_3 = arith.constant 0 : i32
    %c0_i32_4 = arith.constant 0 : i32
    return %arg0, %c0_i32, %c0_i32_0, %c0_i32_1, %c0_i32_2, %c0_i32_3 : i32, i32, i32, i32, i32, i32
  }
  func.func @transform_6(%arg0: i32) -> (i32, i32, i32) {
    %c0_i32 = arith.constant 0 : i32
    %c0_i32_0 = arith.constant 0 : i32
    %c0_i32_1 = arith.constant 0 : i32
    return %arg0, %c0_i32, %c0_i32_0 : i32, i32, i32
  }
}

</mosaic_0001>

<bundles_post_ra>
// kernel: unet_innermost_forward.1
= control target key start
LH: loop header
LB: loop body
LE: loop exit
PB: predicated region body
PF: predicated region fallthrough
CT: control target
= control target key end

     0   :  { %s4101_s21 = smov 0   ;;  %s6251_s0 = inlined_call_operand.vmem [shape: f32[2,4,10,10,4], index: 0, kind: input, shape index: {}]   ;;  %s6252_s1 = inlined_call_operand.vmem [shape: f32[4,16,8], index: 1, kind: input, shape index: {}]   ;;  %s6253_s2 = inlined_call_operand.vmem [shape: f32[1,8], index: 2, kind: input, shape index: {}]   ;;  %s6254_s3 = inlined_call_operand.vmem [shape: f32[4,32,4], index: 3, kind: input, shape index: {}]   ;;  %s6255_s4 = inlined_call_operand.vmem [shape: f32[1,4], index: 4, kind: input, shape index: {}]   ;;  %s6256_s5 = inlined_call_operand.vmem [shape: f32[2,8,2,8,2,4], index: 5, kind: output, shape index: {0}]   ;;  %s6257_s6 = inlined_call_operand.vmem [shape: f32[2,2,4], index: 6, kind: output, shape index: {1}]  }
   0x1 LB: > { %s3678_s22 = sadd.s32 4294967295, %s4058_s21   ;;  %p3682_p0 = scmp.ge.s32.totalorder %s4058_s21, 1  ;;  %s4058_s21 = sphi %s4101_s21, %s17_s21  }
   0x2   : > { %p215_p1 = scmp.lt.s32.totalorder %s4058_s21, 3 }
   0x4   : > { %p216_p2 = pnand %p3682_p0, %p215_p1 }
   0x5   : > { %p249_p3 = scmp.lt.s32.totalorder (!%p216_p2), %s3678_s22, 1  ;;  %s4060_s27 = smov (!%p216_p2), 4  }
   0x6   : > { %219 = sbr.rel (%p216_p2) target bundleno = 973 (0x3cd), region = 40  ;;  %s4061_s28 = smov (!%p216_p2), 8  }
   0x7   : > { %s4062_s29 = smov (!%p216_p2), 12   ;;  %s4064_s24 = smov (!%p216_p2), 24  }
   0x8   : > { %s4065_s25 = smov (!%p216_p2), 16  }
   0xb   : > { %s6259_s22 = smov (!%p249_p3, %s3678_s22), 1 }
   0xc   : > { %s4028_s23 = smul.u32 640, %s6259_s22  ;;  %s4027_s18 = sshll.u32 %s6259_s22, 8 }
   0xd   : > { %s3686_s16 = sshll.u32 %s6259_s22, 1 }
   0xe   : > { %s4115_s26 = scalar_lea.vmem %s6251_s0, %s4028_s23  ;;  %s262_s19 = scalar_lea.vmem %s6257_s6, %s3686_s16 }
   0xf   : > { %v3697_v0 = vld [vmem:[%s4115_s26 + $0x161] sm:$0xff]  ;;  %v3698_v4 = vld [vmem:[%s4115_s26 + $0x171] sm:$0xff] }
  0x10   : > { %v3695_v1 = vld [vmem:[%s4115_s26 + $0x141] sm:$0xff]  ;;  %vm316_vm0 = vcmp.ge.f32.partialorder %v3697_v0, 0.0  ;;  %v324_v2 = vmul.f32 0.2, %v3697_v0  ;;  %v3696_v5 = vld [vmem:[%s4115_s26 + $0x151] sm:$0xff]  ;;  %vm317_vm2 = vcmp.ge.f32.partialorder %v3698_v4, 0.0 }
  0x11   : > { %vm314_vm1 = vcmp.ge.f32.partialorder %v3695_v1, 0.0  ;;  %v322_v3 = vmul.f32 0.2, %v3695_v1  ;;  %v3699_v8 = vld [vmem:[%s4115_s26 + $0x181] sm:$0xff]  ;;  %v325_v9 = vmul.f32 0.2, %v3698_v4 }
  0x12   : > { %v4121_v6 = vsel %vm316_vm0, %v3697_v0, %v324_v2  ;;  %v323_v10 = vmul.f32 0.2, %v3696_v5  ;;  %vm315_vm3 = vcmp.ge.f32.partialorder %v3696_v5, 0.0  ;;  %vm318_vm4 = vcmp.ge.f32.partialorder %v3699_v8, 0.0  ;;  %v3700_v12 = vld [vmem:[%s4115_s26 + $0x191] sm:$0xff]  ;;  %v3701_v17 = vld [vmem:[%s4115_s26 + $0x1a1] sm:$0xff] }
  0x13   : > { %v330_v7 = vsel %vm314_vm1, %v3695_v1, %v322_v3  ;;  %350 = vrot.lane.b32.xlu1 %v4121_v6, %s4060_s27  ;;  %v326_v11 = vmul.f32 0.2, %v3699_v8  ;;  %v4128_v13 = vsel %vm317_vm2, %v3698_v4, %v325_v9  ;;  %v3702_v16 = vld [vmem:[%s4115_s26 + $0x1b1] sm:$0xff]  ;;  %v327_v18 = vmul.f32 0.2, %v3700_v12  ;;  %v3703_v22 = vld [vmem:[%s4115_s26 + $0x1e1] sm:$0xff] }
  0x14   : > { %346 = vrot.lane.b32.xlu0 %v330_v7, %s4060_s27  ;;  %v4130_v14 = vsel %vm315_vm3, %v3696_v5, %v323_v10  ;;  %vm319_vm5 = vcmp.ge.f32.partialorder %v3700_v12, 0.0  ;;  %v329_v19 = vmul.f32 0.2, %v3702_v16  ;;  %v328_v20 = vmul.f32 0.2, %v3701_v17  ;;  %v3705_v25 = vld [vmem:[%s4115_s26 + $0x201] sm:$0xff] }
  0x15   : > { %v4132_v15 = vsel %vm318_vm4, %v3699_v8, %v326_v11  ;;  %vm321_vm6 = vcmp.ge.f32.partialorder %v3702_v16, 0.0  ;;  %vm320_vm7 = vcmp.ge.f32.partialorder %v3701_v17, 0.0  ;;  %v4142_v21 = vsel %vm319_vm5, %v3700_v12, %v327_v18  ;;  %v3704_v26 = vld [vmem:[%s4115_s26 + $0x1f1] sm:$0xff]  ;;  %v3707_v35 = vld [vmem:[%s4115_s26 + $0x221] sm:$0xff] }
  0x16   : > { %354 = vrot.lane.b32.xlu2 %v4132_v15, %s4060_s27  ;;  %v337_v23 = vsel %vm321_vm6, %v3702_v16, %v329_v19  ;;  %v4145_v24 = vsel %vm320_vm7, %v3701_v17, %v328_v20  ;;  %v395_v27 = vmul.f32 0.2, %v3703_v22  ;;  %vm387_vm8 = vcmp.ge.f32.partialorder %v3703_v22, 0.0  ;;  %v3706_v31 = vld [vmem:[%s4115_s26 + $0x211] sm:$0xff]  ;;  %v3709_v40 = vld [vmem:[%s4115_s26 + $0x241] sm:$0xff] }
  0x17   : > { %v397_v28 = vmul.f32 0.2, %v3705_v25  ;;  %v396_v29 = vmul.f32 0.2, %v3704_v26  ;;  %vm389_vm9 = vcmp.ge.f32.partialorder %v3705_v25, 0.0  ;;  %vm388_vm10 = vcmp.ge.f32.partialorder %v3704_v26, 0.0 }
  0x18   : > { %v403_v30 = vsel %vm387_vm8, %v3703_v22, %v395_v27  ;;  %v3708_v34 = vld [vmem:[%s4115_s26 + $0x231] sm:$0xff]  ;;  %v398_v36 = vmul.f32 0.2, %v3706_v31  ;;  %vm390_vm11 = vcmp.ge.f32.partialorder %v3706_v31, 0.0  ;;  %v399_v38 = vmul.f32 0.2, %v3707_v35 }
  0x19   : > { %v4155_v32 = vsel %vm389_vm9, %v3705_v25, %v397_v28  ;;  %v4157_v33 = vsel %vm388_vm10, %v3704_v26, %v396_v29  ;;  %v400_v37 = vmul.f32 0.2, %v3708_v34  ;;  %vm392_vm12 = vcmp.ge.f32.partialorder %v3708_v34, 0.0  ;;  %v3711_v43 = vld [vmem:[%s4115_s26 + $0x142] sm:$0xff]  ;;  %v3710_v44 = vld [vmem:[%s4115_s26 + $0x251] sm:$0xff] }
  0x1a   : > { %vm391_vm13 = vcmp.ge.f32.partialorder %v3707_v35, 0.0  ;;  %v4166_v39 = vsel %vm390_vm11, %v3706_v31, %v398_v36  ;;  %v401_v45 = vmul.f32 0.2, %v3709_v40  ;;  %vm393_vm14 = vcmp.ge.f32.partialorder %v3709_v40, 0.0  ;;  %v3712_v49 = vld [vmem:[%s4115_s26 + $0x152] sm:$0xff]  ;;  %v3713_v53 = vld [vmem:[%s4115_s26 + $0x162] sm:$0xff] }
  0x1b   : > { %352 = vrot.lane.b32.xlu1 %v4128_v13, %s4060_s27  ;;  %v4169_v41 = vsel %vm392_vm12, %v3708_v34, %v400_v37  ;;  %v4171_v42 = vsel %vm391_vm13, %v3707_v35, %v399_v38  ;;  %v468_v46 = vmul.f32 0.2, %v3711_v43  ;;  %v402_v47 = vmul.f32 0.2, %v3710_v44  ;;  %v3714_v52 = vld [vmem:[%s4115_s26 + $0x172] sm:$0xff]  ;;  %v3715_v58 = vld [vmem:[%s4115_s26 + $0x182] sm:$0xff] }
  0x1c   : > { %348 = vrot.lane.b32.xlu0 %v4130_v14, %s4060_s27  ;;  %vm460_vm15 = vcmp.ge.f32.partialorder %v3711_v43, 0.0  ;;  %vm394_vm0 = vcmp.ge.f32.partialorder %v3710_v44, 0.0  ;;  %v4181_v48 = vsel %vm393_vm14, %v3709_v40, %v401_v45  ;;  %v469_v54 = vmul.f32 0.2, %v3712_v49  ;;  %v3717_v61 = vld [vmem:[%s4115_s26 + $0x1a2] sm:$0xff]  ;;  %v3716_v62 = vld [vmem:[%s4115_s26 + $0x192] sm:$0xff] }
  0x1d   : > { %v476_v50 = vsel %vm460_vm15, %v3711_v43, %v468_v46  ;;  %v410_v51 = vsel %vm394_vm0, %v3710_v44, %v402_v47  ;;  %vm461_vm1 = vcmp.ge.f32.partialorder %v3712_v49, 0.0  ;;  %v471_v55 = vmul.f32 0.2, %v3714_v52  ;;  %v3727_v3 = vld [vmem:[%s4115_s26 + $0x11] sm:$0xff]  ;;  %v3728_v16 = vld [vmem:[%s4115_s26 + $0x21] sm:$0xff] }
  0x1e   : > { %356 = vrot.lane.b32.xlu2 %v4142_v21, %s4060_s27  ;;  %v470_v56 = vmul.f32 0.2, %v3713_v53  ;;  %vm463_vm2 = vcmp.ge.f32.partialorder %v3714_v52, 0.0  ;;  %vm462_vm3 = vcmp.ge.f32.partialorder %v3713_v53, 0.0  ;;  %v477_v57 = vsel %vm461_vm1, %v3712_v49, %v469_v54  ;;  %v3743_v7 = vld [vmem:[%s4115_s26 + $0x12] sm:$0xff]  ;;  %v3744_v19 = vld [vmem:[%s4115_s26 + $0x22] sm:$0xff] }
  0x1f   : > { %v4191_v59 = vsel %vm463_vm2, %v3714_v52, %v471_v55  ;;  %v472_v63 = vmul.f32 0.2, %v3715_v58  ;;  %vm464_vm4 = vcmp.ge.f32.partialorder %v3715_v58, 0.0  ;;  %v474_v0 = vmul.f32 0.2, %v3717_v61  ;;  %v3735_v8 = vld [vmem:[%s4115_s26 + $0xb1] sm:$0xff] }
  0x20   : > { %v4193_v60 = vsel %vm462_vm3, %v3713_v53, %v470_v56  ;;  %v473_v1 = vmul.f32 0.2, %v3716_v62  ;;  %vm466_vm5 = vcmp.ge.f32.partialorder %v3717_v61, 0.0  ;;  %vm465_vm6 = vcmp.ge.f32.partialorder %v3716_v62, 0.0  ;;  %v3736_v20 = vld [vmem:[%s4115_s26 + $0xc1] sm:$0xff]  ;;  %v3745_v29 = vld [vmem:[%s4115_s26 + $0x32] sm:$0xff] }
  0x21   : > { %v4202_v2 = vsel %vm464_vm4, %v3715_v58, %v472_v63  ;;  %v4205_v4 = vsel %vm466_vm5, %v3717_v61, %v474_v0  ;;  %v593_v9 = vmul.f32 0.2, %v3727_v3  ;;  %vm585_vm7 = vcmp.ge.f32.partialorder %v3727_v3, 0.0  ;;  %v3737_v31 = vld [vmem:[%s4115_s26 + $0xd1] sm:$0xff]  ;;  %v3687_v34 = vld [vmem:[%s4115_s26 + $0x1e0] sm:$0xff] }
  0x22   : > { %v4207_v5 = vsel %vm465_vm6, %v3716_v62, %v473_v1  ;;  %v737_v10 = vmul.f32 0.2, %v3743_v7  ;;  %v665_v11 = vmul.f32 0.2, %v3735_v8  ;;  %vm729_vm8 = vcmp.ge.f32.partialorder %v3743_v7, 0.0  ;;  %v3689_v38 = vld [vmem:[%s4115_s26 + $0x200] sm:$0xff] }
  0x23   : > { %360 = vrot.lane.b32.xlu1 %v337_v23, %s4060_s27  ;;  %vm657_vm9 = vcmp.ge.f32.partialorder %v3735_v8, 0.0  ;;  %v601_v12 = vsel %vm585_vm7, %v3727_v3, %v593_v9  ;;  %v594_v22 = vmul.f32 0.2, %v3728_v16  ;;  %vm586_vm10 = vcmp.ge.f32.partialorder %v3728_v16, 0.0  ;;  %v3691_v40 = vld [vmem:[%s4115_s26 + $0x220] sm:$0xff]  ;;  %v3692_v53 = vld [vmem:[%s4115_s26 + $0x230] sm:$0xff] }
  0x24   : > { %358 = vrot.lane.b32.xlu0 %v4145_v24, %s4060_s27  ;;  %v745_v17 = vsel %vm729_vm8, %v3743_v7, %v737_v10  ;;  %v673_v18 = vsel %vm657_vm9, %v3735_v8, %v665_v11  ;;  %v738_v23 = vmul.f32 0.2, %v3744_v19  ;;  %v666_v25 = vmul.f32 0.2, %v3736_v20  ;;  %v3690_v54 = vld [vmem:[%s4115_s26 + $0x210] sm:$0xff]  ;;  %v3730_v62 = vld [vmem:[%s4115_s26 + $0x41] sm:$0xff] }
  0x25   : > { %vm730_vm11 = vcmp.ge.f32.partialorder %v3744_v19, 0.0  ;;  %vm658_vm12 = vcmp.ge.f32.partialorder %v3736_v20, 0.0  ;;  %v4223_v26 = vsel %vm586_vm10, %v3728_v16, %v594_v22  ;;  %v739_v35 = vmul.f32 0.2, %v3745_v29  ;;  %v3693_v63 = vld [vmem:[%s4115_s26 + $0x240] sm:$0xff]  ;;  %v3694_v7 = vld [vmem:[%s4115_s26 + $0x250] sm:$0xff] }
  0x26   : > { %419 = vrot.lane.b32.xlu2 %v403_v30, %s4061_s28  ;;  %v4225_v27 = vsel %vm730_vm11, %v3744_v19, %v738_v23  ;;  %v4227_v28 = vsel %vm658_vm12, %v3736_v20, %v666_v25  ;;  %v3729_v30 = vld [vmem:[%s4115_s26 + $0x31] sm:$0xff]  ;;  %v280_v37 = vmul.f32 0.2, %v3687_v34  ;;  %vm296_vm14 = vcmask 31744   ;;  %v3738_v10 = vld [vmem:[%s4115_s26 + $0xe1] sm:$0xff] }
  0x27   : > { %v595_v36 = vmul.f32 0.2, %v3729_v30  ;;  %vm587_vm13 = vcmp.ge.f32.partialorder %v3729_v30, 0.0  ;;  %vm272_vm15 = vcmp.ge.f32.partialorder %v3687_v34, 0.0  ;;  %v667_v43 = vmul.f32 0.2, %v3737_v31 }
  0x28   : > { %v282_v44 = vmul.f32 0.2, %v3689_v38  ;;  %v288_v45 = vsel %vm272_vm15, %v3687_v34, %v280_v37  ;;  %v284_v46 = vmul.f32 0.2, %v3691_v40  ;;  %vm731_vm0 = vcmp.ge.f32.partialorder %v3745_v29, 0.0  ;;  %v3731_v23 = vld [vmem:[%s4115_s26 + $0x51] sm:$0xff] }
  0x29   : > { %vm659_vm1 = vcmp.ge.f32.partialorder %v3737_v31, 0.0  ;;  %vm274_vm2 = vcmp.ge.f32.partialorder %v3689_v38, 0.0  ;;  %297 = vst.msk [vmem:[#allocation2] sm:$0xff] %vm296_vm14, %v288_v45  ;;  %vm276_vm3 = vcmp.ge.f32.partialorder %v3691_v40, 0.0  ;;  %v4255_v49 = vsel %vm731_vm0, %v3745_v29, %v739_v35  ;;  %v534_v29 = vld [vmem:[%s6252_s1 + $0x8] sm:$0xff] }
  0x2a   : > { %v4251_v47 = vsel %vm276_vm3, %v3691_v40, %v284_v46  ;;  %v285_v55 = vmul.f32 0.2, %v3692_v53  ;;  %vm275_vm5 = vcmp.ge.f32.partialorder %v3690_v54, 0.0  ;;  %v283_v56 = vmul.f32 0.2, %v3690_v54  ;;  %908 = vmatpush.msra.mxu1 %v534_v29  ;;  %v3732_v46 = vld [vmem:[%s4115_s26 + $0x61] sm:$0xff] }
  0x2b   : > { %423 = vrot.lane.b32.xlu1 %v4155_v32, %s4061_s28  ;;  %301 = vst.msk [vmem:[#allocation2 + $0x20] sm:$0xff] %vm296_vm14, %v4251_v47  ;;  %vm277_vm6 = vcmp.ge.f32.partialorder %v3692_v53, 0.0  ;;  %vm370_vm7 = vcmask 64544   ;;  %v286_v1 = vmul.f32 0.2, %v3693_v63  ;;  %vm278_vm8 = vcmp.ge.f32.partialorder %v3693_v63, 0.0 }
  0x2c   : > { %421 = vrot.lane.b32.xlu0 %v4157_v33, %s4061_s28  ;;  %v4274_v58 = vsel %vm277_vm6, %v3692_v53, %v285_v55  ;;  %v4276_v61 = vsel %vm275_vm5, %v3690_v54, %v283_v56  ;;  %v596_v3 = vmul.f32 0.2, %v3730_v62  ;;  %vm588_vm9 = vcmp.ge.f32.partialorder %v3730_v62, 0.0  ;;  %v3740_v55 = vld [vmem:[%s4115_s26 + $0x101] sm:$0xff]  ;;  %v3741_v29 = vld [vmem:[%s4115_s26 + $0x111] sm:$0xff] }
  0x2d   : > { %302 = vst.msk [vmem:[#allocation2 + $0x28] sm:$0xff] %vm296_vm14, %v4274_v58  ;;  %vm279_vm10 = vcmp.ge.f32.partialorder %v3694_v7, 0.0  ;;  %v294_v8 = vsel %vm278_vm8, %v3693_v63, %v286_v1  ;;  %v668_v16 = vmul.f32 0.2, %v3738_v10  ;;  %vm660_vm12 = vcmp.ge.f32.partialorder %v3738_v10, 0.0 }
  0x2e   : > { %425 = vrot.lane.b32.xlu2 %v4166_v39, %s4061_s28  ;;  %300 = vst.msk [vmem:[#allocation2 + $0x18] sm:$0xff] %vm296_vm14, %v4276_v61  ;;  %vm589_vm15 = vcmp.ge.f32.partialorder %v3731_v23, 0.0  ;;  %vm590_vm3 = vcmp.ge.f32.partialorder %v3732_v46, 0.0  ;;  %vm662_vm6 = vcmp.ge.f32.partialorder %v3740_v55, 0.0 }
  0x2f   : > { %303 = vst.msk [vmem:[#allocation2 + $0x30] sm:$0xff] %vm296_vm14, %v294_v8 }
  0x33   : > { %429 = vrot.lane.b32.xlu1 %v4169_v41, %s4061_s28 }
  0x34   : > { %427 = vrot.lane.b32.xlu0 %v4171_v42, %s4061_s28 }
  0x36   : > { %431 = vrot.lane.b32.xlu2 %v4181_v48, %s4061_s28 }
  0x3b   : > { %492 = vrot.lane.b32.xlu1 %v476_v50, %s4062_s29  ;;  %v4257_v50 = vsel %vm659_vm1, %v3737_v31, %v667_v43  ;;  %v533_v31 = vld [vmem:[%s6252_s1] sm:$0xff] }
  0x3c   : > { %433 = vrot.lane.b32.xlu0 %v410_v51, %s4061_s28  ;;  %v3688_v51 = vld [vmem:[%s4115_s26 + $0x1f0] sm:$0xff]  ;;  %909 = vmatpush.msra.mxu1 %v533_v31 }
  0x3d   : > { %v281_v52 = vmul.f32 0.2, %v3688_v51  ;;  %vm273_vm4 = vcmp.ge.f32.partialorder %v3688_v51, 0.0 }
  0x3e   : > { %494 = vrot.lane.b32.xlu2 %v477_v57, %s4062_s29 }
  0x43   : > { %498 = vrot.lane.b32.xlu1 %v4191_v59, %s4062_s29 }
  0x44   : > { %496 = vrot.lane.b32.xlu0 %v4193_v60, %s4062_s29 }
  0x46   : > { %500 = vrot.lane.b32.xlu2 %v4202_v2, %s4062_s29 }
  0x4b   : > { %504 = vrot.lane.b32.xlu1 %v4205_v4, %s4062_s29 }
  0x4c   : > { %502 = vrot.lane.b32.xlu0 %v4207_v5, %s4062_s29 }
  0x4e   : > { %617 = vrot.lane.b32.xlu2 %v601_v12, %s4060_s27 }
  0x53   : > { %761 = vrot.lane.b32.xlu1 %v745_v17, %s4062_s29 }
  0x54   : > { %689 = vrot.lane.b32.xlu0 %v673_v18, %s4061_s28  ;;  %v4307_v18 = vsel %vm660_vm12, %v3738_v10, %v668_v16 }
  0x56   : > { %619 = vrot.lane.b32.xlu2 %v4223_v26, %s4060_s27 }
  0x5b   : > { %763 = vrot.lane.b32.xlu1 %v4225_v27, %s4062_s29 }
  0x5c   : > { %691 = vrot.lane.b32.xlu0 %v4227_v28, %s4061_s28 }
  0x5e   : > { %1017 = vrot.lane.b32.xlu2 %v4130_v14, %s4060_s27  ;;  %v4247_v14 = vsel %vm587_vm13, %v3729_v30, %v595_v36  ;;  %vm443_vm13 = vcmask 97344  }
  0x63   : > { %1161 = vrot.lane.b32.xlu1 %v477_v57, %s4062_s29  ;;  %v4270_v57 = vsel %vm273_vm4, %v3688_v51, %v281_v52 }
  0x64   : > { %1089 = vrot.lane.b32.xlu0 %v4157_v33, %s4061_s28  ;;  %v4249_v33 = vsel %vm274_vm2, %v3689_v38, %v282_v44  ;;  %298 = vst.msk [vmem:[#allocation2 + $0x8] sm:$0xff] %vm296_vm14, %v4270_v57  ;;  %vm516_vm2 = vcmask 130144  }
  0x65   : > { %299 = vst.msk [vmem:[#allocation2 + $0x10] sm:$0xff] %vm296_vm14, %v4249_v33 }
  0x66   : > { %621 = vrot.lane.b32.xlu2 %v4247_v14, %s4060_s27 }
  0x6b   : > { %765 = vrot.lane.b32.xlu1 %v4255_v49, %s4062_s29 }
  0x6c   : > { %693 = vrot.lane.b32.xlu0 %v4257_v50, %s4061_s28 }
  0x6e   : > { %1019 = vrot.lane.b32.xlu2 %v4121_v6, %s4060_s27  ;;  %v287_v6 = vmul.f32 0.2, %v3694_v7 }
  0x70   : > { %v355_v0 = vpop.permute.xlu2 %354  ;;  %v295_v9 = vsel %vm279_vm10, %v3694_v7, %v287_v6  ;;  %v3719_v7 = vld [vmem:[%s4115_s26 + $0xb0] sm:$0xff] }
  0x71   : > { %375 = vst.msk [vmem:[#allocation2 + $0x20] sm:$0xff] %vm370_vm7, %v355_v0  ;;  %v670_v0 = vmul.f32 0.2, %v3740_v55  ;;  %v3751_v6 = vld [vmem:[%s6252_s1 + $0x10] sm:$0xff]  ;;  %vm544_vm8 = vcmp.ge.f32.partialorder %v3719_v7, 0.0 }
  0x72   : > { %304 = vst.msk [vmem:[#allocation2 + $0x38] sm:$0xff] %vm296_vm14, %v295_v9 }
  0x73   : > { %1163 = vrot.lane.b32.xlu1 %v4193_v60, %s4062_s29  ;;  %v4293_v60 = vsel %vm588_vm9, %v3730_v62, %v596_v3  ;;  %v3752_v62 = vld [vmem:[%s6252_s1 + $0x18] sm:$0xff]  ;;  %v4396_v9 = vsel %vm662_vm6, %v3740_v55, %v670_v0  ;;  %vm804_vm9 = vcmask 130048   ;;  %v3742_v55 = vld [vmem:[%s4115_s26 + $0x121] sm:$0xff] }
  0x74   : > { %1091 = vrot.lane.b32.xlu0 %v4155_v32, %s4061_s28  ;;  %v3746_v32 = vld [vmem:[%s4115_s26 + $0x42] sm:$0xff]  ;;  %843 = vmatpush.msra.mxu0 %v3752_v62 }
  0x75   : > { %v740_v12 = vmul.f32 0.2, %v3746_v32  ;;  %vm732_vm11 = vcmp.ge.f32.partialorder %v3746_v32, 0.0 }
  0x76   : > { %1359 = vrot.lane.b32.xlu2 %v4223_v26, %s4060_s27  ;;  %v597_v26 = vmul.f32 0.2, %v3731_v23  ;;  %844 = vmatpush.msra.mxu0 %v3751_v6  ;;  %v3783_v6 = vld [vmem:[%s4115_s26 + $0x1b1] sm:$0xff] }
  0x77   : > { %v4305_v17 = vsel %vm732_vm11, %v3746_v32, %v740_v12 }
  0x78   : > { %v357_v11 = vpop.permute.xlu2 %356 }
  0x79   : > { %376 = vst.msk [vmem:[#allocation2 + $0x28] sm:$0xff] %vm370_vm7, %v357_v11 }
  0x7b   : > { %623 = vrot.lane.b32.xlu1 %v4293_v60, %s4060_s27 }
  0x7c   : > { %1431 = vrot.lane.b32.xlu0 %v4227_v28, %s4061_s28 }
  0x7e   : > { %1503 = vrot.lane.b32.xlu2 %v4225_v27, %s4062_s29 }
  0x80   : > { %v420_v19 = vpop.permute.xlu2 %419 }
  0x83   : > { %767 = vrot.lane.b32.xlu1 %v4305_v17, %s4062_s29 }
  0x84   : > { %695 = vrot.lane.b32.xlu0 %v4307_v18, %s4061_s28 }
  0x85   : > { %v351_v20 = vpop.permute.xlu1 %350 }
  0x86   : > { %v347_v22 = vpop.permute.xlu0 %346  ;;  %373 = vst.msk [vmem:[#allocation2 + $0x10] sm:$0xff] %vm370_vm7, %v351_v20  ;;  %1021 = vrot.lane.b32.xlu2 %v4128_v13, %s4060_s27  ;;  %v4330_v13 = vsel %vm589_vm15, %v3731_v23, %v597_v26  ;;  %vm663_vm15 = vcmp.ge.f32.partialorder %v3741_v29, 0.0 }
  0x87   : > { %371 = vst.msk [vmem:[#allocation2] sm:$0xff] %vm370_vm7, %v347_v22  ;;  %v3802_v22 = vld [vmem:[%s6252_s1 + $0x28] sm:$0xff] }
  0x88   : > { %444 = vst.msk [vmem:[#allocation2] sm:$0xff] %vm443_vm13, %v420_v19  ;;  %v426_v25 = vpop.permute.xlu2 %425  ;;  %1242 = vmatpush.msra.mxu2 %v3802_v22 }
  0x8b   : > { %1165 = vrot.lane.b32.xlu1 %v4191_v59, %s4062_s29  ;;  %v3747_v59 = vld [vmem:[%s4115_s26 + $0x52] sm:$0xff] }
  0x8c   : > { %1093 = vrot.lane.b32.xlu0 %v4166_v39, %s4061_s28  ;;  %v3739_v39 = vld [vmem:[%s4115_s26 + $0xf1] sm:$0xff]  ;;  %v741_v34 = vmul.f32 0.2, %v3747_v59  ;;  %vm733_vm0 = vcmp.ge.f32.partialorder %v3747_v59, 0.0 }
  0x8d   : > { %v353_v27 = vpop.permute.xlu1 %352  ;;  %v669_v35 = vmul.f32 0.2, %v3739_v39  ;;  %vm661_vm1 = vcmp.ge.f32.partialorder %v3739_v39, 0.0 }
  0x8e   : > { %v349_v28 = vpop.permute.xlu0 %348  ;;  %374 = vst.msk [vmem:[#allocation2 + $0x18] sm:$0xff] %vm370_vm7, %v353_v27  ;;  %1361 = vrot.lane.b32.xlu2 %v4247_v14, %s4060_s27  ;;  %v4346_v38 = vsel %vm733_vm0, %v3747_v59, %v741_v34  ;;  %v3733_v27 = vld [vmem:[%s4115_s26 + $0x71] sm:$0xff] }
  0x8f   : > { %372 = vst.msk [vmem:[#allocation2 + $0x8] sm:$0xff] %vm370_vm7, %v349_v28  ;;  %v4348_v40 = vsel %vm661_vm1, %v3739_v39, %v669_v35  ;;  %v599_v59 = vmul.f32 0.2, %v3733_v27  ;;  %vm591_vm12 = vcmp.ge.f32.partialorder %v3733_v27, 0.0  ;;  %v3749_v35 = vld [vmem:[%s4115_s26 + $0x72] sm:$0xff] }
  0x90   : > { %447 = vst.msk [vmem:[#allocation2 + $0x18] sm:$0xff] %vm443_vm13, %v426_v25  ;;  %v432_v30 = vpop.permute.xlu2 %431  ;;  %vm735_vm0 = vcmp.ge.f32.partialorder %v3749_v35, 0.0 }
  0x93   : > { %625 = vrot.lane.b32.xlu1 %v4330_v13, %s4060_s27 }
  0x94   : > { %1433 = vrot.lane.b32.xlu0 %v4257_v50, %s4061_s28  ;;  %v598_v50 = vmul.f32 0.2, %v3732_v46 }
  0x95   : > { %v361_v36 = vpop.permute.xlu1 %360 }
  0x96   : > { %v359_v37 = vpop.permute.xlu0 %358  ;;  %378 = vst.msk [vmem:[#allocation2 + $0x38] sm:$0xff] %vm370_vm7, %v361_v36  ;;  %1505 = vrot.lane.b32.xlu2 %v4255_v49, %s4062_s29  ;;  %v3720_v49 = vld [vmem:[%s4115_s26 + $0xc0] sm:$0xff] }
  0x97   : > { %377 = vst.msk [vmem:[#allocation2 + $0x30] sm:$0xff] %vm370_vm7, %v359_v37  ;;  %v553_v51 = vmul.f32 0.2, %v3720_v49  ;;  %vm545_vm4 = vcmp.ge.f32.partialorder %v3720_v49, 0.0  ;;  %v743_v37 = vmul.f32 0.2, %v3749_v35 }
  0x98   : > { %450 = vst.msk [vmem:[#allocation2 + $0x30] sm:$0xff] %vm443_vm13, %v432_v30  ;;  %v495_v43 = vpop.permute.xlu2 %494  ;;  %v671_v30 = vmul.f32 0.2, %v3741_v29 }
  0x99   : > { %v4369_v54 = vsel %vm545_vm4, %v3720_v49, %v553_v51  ;;  %vm664_vm4 = vcmp.ge.f32.partialorder %v3742_v55, 0.0 }
  0x9a   : > { %v4448_v36 = vsel %vm663_vm15, %v3741_v29, %v671_v30 }
  0x9b   : > { %769 = vrot.lane.b32.xlu1 %v4346_v38, %s4062_s29 }
  0x9c   : > { %697 = vrot.lane.b32.xlu0 %v4348_v40, %s4061_s28 }
  0x9d   : > { %v424_v44 = vpop.permute.xlu1 %423 }
  0x9e   : > { %v422_v45 = vpop.permute.xlu0 %421  ;;  %446 = vst.msk [vmem:[#allocation2 + $0x10] sm:$0xff] %vm443_vm13, %v424_v44  ;;  %1023 = vrot.lane.b32.xlu2 %v4132_v15, %s4060_s27  ;;  %v4372_v15 = vsel %vm590_vm3, %v3732_v46, %v598_v50  ;;  %v4459_v50 = vsel %vm735_vm0, %v3749_v35, %v743_v37 }
  0x9f   : > { %445 = vst.msk [vmem:[#allocation2 + $0x8] sm:$0xff] %vm443_vm13, %v422_v45 }
  0xa0   : > { %518 = vst.msk [vmem:[#allocation2 + $0x8] sm:$0xff] %vm516_vm2, %v495_v43  ;;  %v501_v14 = vpop.permute.xlu2 %500  ;;  %v3722_v43 = vld [vmem:[%s4115_s26 + $0xe0] sm:$0xff] }
  0xa1   : > { %vm547_vm1 = vcmp.ge.f32.partialorder %v3722_v43, 0.0  ;;  %v555_v44 = vmul.f32 0.2, %v3722_v43 }
  0xa3   : > { %1167 = vrot.lane.b32.xlu1 %v4202_v2, %s4062_s29  ;;  %v3748_v2 = vld [vmem:[%s4115_s26 + $0x62] sm:$0xff] }
  0xa4   : > { %1095 = vrot.lane.b32.xlu0 %v4171_v42, %s4061_s28  ;;  %v742_v63 = vmul.f32 0.2, %v3748_v2  ;;  %vm734_vm5 = vcmp.ge.f32.partialorder %v3748_v2, 0.0 }
  0xa5   : > { %v430_v52 = vpop.permute.xlu1 %429 }
  0xa6   : > { %v428_v53 = vpop.permute.xlu0 %427  ;;  %449 = vst.msk [vmem:[#allocation2 + $0x28] sm:$0xff] %vm443_vm13, %v430_v52  ;;  %1363 = vrot.lane.b32.xlu2 %v4293_v60, %s4060_s27  ;;  %v4394_v8 = vsel %vm734_vm5, %v3748_v2, %v742_v63  ;;  %v552_v60 = vmul.f32 0.2, %v3719_v7  ;;  %v672_v63 = vmul.f32 0.2, %v3742_v55 }
  0xa7   : > { %448 = vst.msk [vmem:[#allocation2 + $0x20] sm:$0xff] %vm443_vm13, %v428_v53  ;;  %v526_v42 = vld [vmem:[#allocation2 + $0x8] sm:$0xff] }
  0xa8   : > { %521 = vst.msk [vmem:[#allocation2 + $0x20] sm:$0xff] %vm516_vm2, %v501_v14  ;;  %v618_v56 = vpop.permute.xlu2 %617  ;;  %v560_v16 = vsel %vm544_vm8, %v3719_v7, %v552_v60  ;;  %v4504_v7 = vsel %vm664_vm4, %v3742_v55, %v672_v63  ;;  %vm991_vm8 = vcmp.ge.f32.partialorder %v3783_v6, 0.0 }
  0xa9   : > { %569 = vst.msk [vmem:[#allocation2 + $0x8] sm:$0xff] %vm296_vm14, %v4369_v54 }
  0xab   : > { %627 = vrot.lane.b32.xlu1 %v4372_v15, %s4060_s27 }
  0xac   : > { %1435 = vrot.lane.b32.xlu0 %v4307_v18, %s4061_s28  ;;  %v3718_v18 = vld [vmem:[%s4115_s26 + $0x1b2] sm:$0xff] }
  0xad   : > { %v493_v1 = vpop.permute.xlu1 %492  ;;  %v475_v23 = vmul.f32 0.2, %v3718_v18  ;;  %vm467_vm11 = vcmp.ge.f32.partialorder %v3718_v18, 0.0 }
  0xae   : > { %v434_v3 = vpop.permute.xlu0 %433  ;;  %517 = vst.msk [vmem:[#allocation2] sm:$0xff] %vm516_vm2, %v493_v1  ;;  %1507 = vrot.lane.b32.xlu2 %v4305_v17, %s4062_s29  ;;  %v3721_v17 = vld [vmem:[%s4115_s26 + $0xd0] sm:$0xff] }
  0xaf   : > { %451 = vst.msk [vmem:[#allocation2 + $0x38] sm:$0xff] %vm443_vm13, %v434_v3  ;;  %v554_v19 = vmul.f32 0.2, %v3721_v17  ;;  %vm546_vm10 = vcmp.ge.f32.partialorder %v3721_v17, 0.0  ;;  %v4430_v28 = vsel %vm467_vm11, %v3718_v18, %v475_v23 }
  0xb0   : > { %v620_v32 = vpop.permute.xlu2 %619 }
  0xb1   : > { %642 = vst.msk [vmem:[#allocation2 + $0x8] sm:$0xff] %vm370_vm7, %v620_v32  ;;  %v999_v32 = vmul.f32 0.2, %v3783_v6 }
  0xb3   : > { %771 = vrot.lane.b32.xlu1 %v4394_v8, %s4062_s29  ;;  %v1007_v22 = vsel %vm991_vm8, %v3783_v6, %v999_v32 }
  0xb4   : > { %699 = vrot.lane.b32.xlu0 %v4396_v9, %s4061_s28 }
  0xb5   : > { %v499_v10 = vpop.permute.xlu1 %498  ;;  %v525_v12 = vld [vmem:[#allocation2] sm:$0xff] }
  0xb6   : > { %v497_v11 = vpop.permute.xlu0 %496  ;;  %520 = vst.msk [vmem:[#allocation2 + $0x18] sm:$0xff] %vm516_vm2, %v499_v10  ;;  %3761 = vmatmul.msk.f32.vlgmr.msra.gmra.mxu1 %vm804_vm9, %v525_v12  ;;  %1025 = vrot.lane.b32.xlu2 %v4142_v21, %s4060_s27  ;;  %v4421_v21 = vsel %vm546_vm10, %v3721_v17, %v554_v19 }
  0xb7   : > { %519 = vst.msk [vmem:[#allocation2 + $0x10] sm:$0xff] %vm516_vm2, %v497_v11  ;;  %v3723_v11 = vld [vmem:[%s4115_s26 + $0xf0] sm:$0xff] }
  0xb8   : > { %568 = vst.msk [vmem:[#allocation2] sm:$0xff] %vm296_vm14, %v560_v16  ;;  %v1018_v20 = vpop.permute.xlu2 %1017  ;;  %vm548_vm6 = vcmp.ge.f32.partialorder %v3723_v11, 0.0 }
  0xb9   : > { %641 = vst.msk [vmem:[#allocation2] sm:$0xff] %vm370_vm7, %v618_v56 }
  0xbb   : > { %1169 = vrot.lane.b32.xlu1 %v4207_v5, %s4062_s29 }
  0xbc   : > { %1097 = vrot.lane.b32.xlu0 %v4169_v41, %s4061_s28  ;;  %v3801_v41 = vld [vmem:[%s6252_s1 + $0x20] sm:$0xff] }
  0xbd   : > { %v505_v25 = vpop.permute.xlu1 %504  ;;  %1243 = vmatpush.msra.mxu2 %v3801_v41  ;;  %v528_v14 = vld [vmem:[#allocation2 + $0x18] sm:$0xff] }
  0xbe   : > { %v503_v26 = vpop.permute.xlu0 %502  ;;  %523 = vst.msk [vmem:[#allocation2 + $0x30] sm:$0xff] %vm516_vm2, %v505_v25  ;;  %3762 = vmatmul.msk.f32.gmra.mxu1 %vm804_vm9, %v526_v42  ;;  %v527_v5 = vld [vmem:[#allocation2 + $0x10] sm:$0xff]  ;;  %1365 = vrot.lane.b32.xlu2 %v4330_v13, %s4060_s27  ;;  %v4444_v13 = vsel %vm591_vm12, %v3733_v27, %v599_v59  ;;  %v529_v42 = vld [vmem:[#allocation2 + $0x20] sm:$0xff] }
  0xbf   : > { %522 = vst.msk [vmem:[#allocation2 + $0x28] sm:$0xff] %vm516_vm2, %v503_v26  ;;  %v3792_v27 = vld [vmem:[%s4115_s26 + $0x261] sm:$0xff] }
  0xc0   : > { %570 = vst.msk [vmem:[#allocation2 + $0x10] sm:$0xff] %vm296_vm14, %v4421_v21  ;;  %v622_v39 = vpop.permute.xlu2 %621  ;;  %vm1064_vm12 = vcmp.ge.f32.partialorder %v3792_v27, 0.0 }
  0xc1   : > { %643 = vst.msk [vmem:[#allocation2 + $0x10] sm:$0xff] %vm370_vm7, %v622_v39  ;;  %v1072_v39 = vmul.f32 0.2, %v3792_v27 }
  0xc3   : > { %1437 = vrot.lane.b32.xlu1 %v4348_v40, %s4061_s28  ;;  %v1080_v35 = vsel %vm1064_vm12, %v3792_v27, %v1072_v39  ;;  %vm1641_vm12 = vcmask 58368  }
  0xc4   : > { %506 = vrot.lane.b32.xlu0 %v4430_v28, %s4062_s29 }
  0xc5   : > { %v762_v31 = vpop.permute.xlu1 %761  ;;  %v531_v18 = vld [vmem:[#allocation2 + $0x30] sm:$0xff] }
  0xc6   : > { %v690_v34 = vpop.permute.xlu0 %689  ;;  %3763 = vmatmul.msk.f32.gmra.mxu1 %vm804_vm9, %v527_v5  ;;  %629 = vrot.lane.b32.xlu2 %v4444_v13, %s4060_s27  ;;  %v530_v1 = vld [vmem:[#allocation2 + $0x28] sm:$0xff] }
  0xc7   : > { %713 = vst.msk [vmem:[#allocation2] sm:$0xff] %vm443_vm13, %v690_v34  ;;  %v3724_v34 = vld [vmem:[%s4115_s26 + $0x100] sm:$0xff] }
  0xc8   : > { %785 = vst.msk [vmem:[#allocation2] sm:$0xff] %vm516_vm2, %v762_v31  ;;  %v1020_v40 = vpop.permute.xlu2 %1019  ;;  %vm549_vm15 = vcmp.ge.f32.partialorder %v3724_v34, 0.0 }
  0xcb   : > { %701 = vrot.lane.b32.xlu1 %v4448_v36, %s4061_s28 }
  0xcc   : > { %1509 = vrot.lane.b32.xlu0 %v4346_v38, %s4062_s29  ;;  %v4463_v38 = vsel %vm547_vm1, %v3722_v43, %v555_v44 }
  0xcd   : > { %v764_v45 = vpop.permute.xlu1 %763  ;;  %571 = vst.msk [vmem:[#allocation2 + $0x18] sm:$0xff] %vm296_vm14, %v4463_v38 }
  0xce   : > { %v692_v46 = vpop.permute.xlu0 %691  ;;  %3764 = vmatmul.msk.f32.gmra.mxu1 %vm804_vm9, %v528_v14  ;;  %773 = vrot.lane.b32.xlu2 %v4459_v50, %s4062_s29 }
  0xcf   : > { %714 = vst.msk [vmem:[#allocation2 + $0x8] sm:$0xff] %vm443_vm13, %v692_v46  ;;  %v793_v49 = vld [vmem:[#allocation2] sm:$0xff] }
  0xd0   : > { %786 = vst.msk [vmem:[#allocation2 + $0x8] sm:$0xff] %vm516_vm2, %v764_v45  ;;  %3753 = vmatmul.msk.f32.vlgmr.msra.gmra.mxu0 %vm804_vm9, %v793_v49  ;;  %v1360_v51 = vpop.permute.xlu2 %1359  ;;  %v3826_v49 = vld [vmem:[%s4115_s26 + $0x91] sm:$0xff] }
  0xd1   : > { %968 = vst.msk [vmem:[#allocation2] sm:$0xff] %vm296_vm14, %v4270_v57  ;;  %v3844_v57 = vld [vmem:[%s6252_s1 + $0x38] sm:$0xff]  ;;  %vm1334_vm1 = vcmp.ge.f32.partialorder %v3826_v49, 0.0 }
  0xd2   : > { %1041 = vst.msk [vmem:[#allocation2] sm:$0xff] %vm370_vm7, %v1018_v20  ;;  %1584 = vmatpush.msra.mxu3 %v3844_v57  ;;  %v1342_v57 = vmul.f32 0.2, %v3826_v49 }
  0xd3   : > { %1099 = vrot.lane.b32.xlu1 %v4181_v48, %s4061_s28  ;;  %v3843_v48 = vld [vmem:[%s6252_s1 + $0x30] sm:$0xff] }
  0xd4   : > { %1027 = vrot.lane.b32.xlu0 %v4145_v24, %s4060_s27  ;;  %v3734_v24 = vld [vmem:[%s4115_s26 + $0x81] sm:$0xff]  ;;  %1585 = vmatpush.msra.mxu3 %v3843_v48  ;;  %v1350_v48 = vsel %vm1334_vm1, %v3826_v49, %v1342_v57 }
  0xd5   : > { %v1162_v52 = vpop.permute.xlu1 %1161  ;;  %v600_v56 = vmul.f32 0.2, %v3734_v24  ;;  %vm592_vm3 = vcmp.ge.f32.partialorder %v3734_v24, 0.0 }
  0xd6   : > { %v1090_v53 = vpop.permute.xlu0 %1089  ;;  %3765 = vmatmul.msk.f32.gmra.mxu1 %vm804_vm9, %v529_v42  ;;  %1171 = vrot.lane.b32.xlu2 %v4205_v4, %s4062_s29 }
  0xd7   : > { %1113 = vst.msk [vmem:[#allocation2] sm:$0xff] %vm443_vm13, %v1090_v53  ;;  %v794_v2 = vld [vmem:[#allocation2 + $0x8] sm:$0xff]  ;;  %v4499_v3 = vsel %vm592_vm3, %v3734_v24, %v600_v56 }
  0xd8   : > { %1185 = vst.msk [vmem:[#allocation2] sm:$0xff] %vm516_vm2, %v1162_v52  ;;  %3754 = vmatmul.msk.f32.gmra.mxu0 %vm804_vm9, %v794_v2  ;;  %v1504_v62 = vpop.permute.xlu2 %1503  ;;  %v3842_v2 = vld [vmem:[%s4115_s26 + $0x92] sm:$0xff] }
  0xd9   : > { %969 = vst.msk [vmem:[#allocation2 + $0x8] sm:$0xff] %vm296_vm14, %v4249_v33  ;;  %v1486_v55 = vmul.f32 0.2, %v3842_v2  ;;  %vm1478_vm4 = vcmp.ge.f32.partialorder %v3842_v2, 0.0 }
  0xda   : > { %1042 = vst.msk [vmem:[#allocation2 + $0x8] sm:$0xff] %vm370_vm7, %v1020_v40 }
  0xdb   : > { %1439 = vrot.lane.b32.xlu1 %v4396_v9, %s4061_s28  ;;  %v3791_v9 = vld [vmem:[%s4115_s26 + $0x251] sm:$0xff] }
  0xdc   : > { %1367 = vrot.lane.b32.xlu0 %v4372_v15, %s4060_s27  ;;  %v3750_v15 = vld [vmem:[%s4115_s26 + $0x82] sm:$0xff]  ;;  %v1071_v12 = vmul.f32 0.2, %v3791_v9  ;;  %vm1063_vm10 = vcmp.ge.f32.partialorder %v3791_v9, 0.0 }
  0xdd   : > { %v766_v33 = vpop.permute.xlu1 %765  ;;  %v744_v60 = vmul.f32 0.2, %v3750_v15  ;;  %vm736_vm5 = vcmp.ge.f32.partialorder %v3750_v15, 0.0 }
  0xde   : > { %v694_v0 = vpop.permute.xlu0 %693  ;;  %3766 = vmatmul.msk.f32.gmra.mxu1 %vm804_vm9, %v530_v1  ;;  %631 = vrot.lane.b32.xlu2 %v4499_v3, %s4060_s27  ;;  %v1079_v23 = vsel %vm1063_vm10, %v3791_v9, %v1071_v12 }
  0xdf   : > { %715 = vst.msk [vmem:[#allocation2 + $0x10] sm:$0xff] %vm443_vm13, %v694_v0  ;;  %v1193_v4 = vld [vmem:[#allocation2] sm:$0xff]  ;;  %v4520_v20 = vsel %vm736_vm5, %v3750_v15, %v744_v60 }
  0xe0   : > { %787 = vst.msk [vmem:[#allocation2 + $0x10] sm:$0xff] %vm516_vm2, %v766_v33  ;;  %3803 = vmatmul.msk.f32.vlgmr.msra.gmra.mxu2 %vm804_vm9, %v1193_v4  ;;  %v1022_v10 = vpop.permute.xlu2 %1021  ;;  %v1494_v33 = vsel %vm1478_vm4, %v3842_v2, %v1486_v55 }
  0xe1   : > { %1310 = vst.msk [vmem:[#allocation2] sm:$0xff] %vm296_vm14, %v4369_v54  ;;  %v556_v54 = vmul.f32 0.2, %v3723_v11 }
  0xe2   : > { %1383 = vst.msk [vmem:[#allocation2] sm:$0xff] %vm370_vm7, %v1360_v51 }
  0xe3   : > { %703 = vrot.lane.b32.xlu1 %v4504_v7, %s4061_s28 }
  0xe4   : > { %1511 = vrot.lane.b32.xlu0 %v4394_v8, %s4062_s29  ;;  %v4524_v8 = vsel %vm548_vm6, %v3723_v11, %v556_v54  ;;  %v3774_v54 = vld [vmem:[%s4115_s26 + $0x240] sm:$0xff] }
  0xe5   : > { %v1164_v16 = vpop.permute.xlu1 %1163  ;;  %572 = vst.msk [vmem:[#allocation2 + $0x20] sm:$0xff] %vm296_vm14, %v4524_v8  ;;  %vm949_vm6 = vcmp.ge.f32.partialorder %v3774_v54, 0.0 }
  0xe6   : > { %v1092_v17 = vpop.permute.xlu0 %1091  ;;  %3767 = vmatmul.msk.f32.gmra.mxu1 %vm804_vm9, %v531_v18  ;;  %775 = vrot.lane.b32.xlu2 %v4520_v20, %s4062_s29 }
  0xe7   : > { %1114 = vst.msk [vmem:[#allocation2 + $0x8] sm:$0xff] %vm443_vm13, %v1092_v17  ;;  %v795_v19 = vld [vmem:[#allocation2 + $0x10] sm:$0xff]  ;;  %v957_v17 = vmul.f32 0.2, %v3774_v54 }
  0xe8   : > { %1186 = vst.msk [vmem:[#allocation2 + $0x8] sm:$0xff] %vm516_vm2, %v1164_v16  ;;  %3755 = vmatmul.msk.f32.gmra.mxu0 %vm804_vm9, %v795_v19  ;;  %v1362_v25 = vpop.permute.xlu2 %1361 }
  0xe9   : > { %970 = vst.msk [vmem:[#allocation2 + $0x10] sm:$0xff] %vm296_vm14, %v4276_v61  ;;  %v3784_v61 = vld [vmem:[%s4115_s26 + $0x1c1] sm:$0xff] }
  0xea   : > { %1043 = vst.msk [vmem:[#allocation2 + $0x10] sm:$0xff] %vm370_vm7, %v1022_v10  ;;  %v1000_v59 = vmul.f32 0.2, %v3784_v61  ;;  %vm992_vm11 = vcmp.ge.f32.partialorder %v3784_v61, 0.0 }
  0xeb   : > { %1101 = vrot.lane.b32.xlu1 %v1079_v23, %s4061_s28 }
  0xec   : > { %1029 = vrot.lane.b32.xlu0 %v1007_v22, %s4060_s27 }
  0xed   : > { %v624_v26 = vpop.permute.xlu1 %623 }
  0xee   : > { %v1432_v41 = vpop.permute.xlu0 %1431  ;;  %644 = vst.msk [vmem:[#allocation2 + $0x18] sm:$0xff] %vm370_vm7, %v624_v26  ;;  %1173 = vrot.lane.b32.xlu2 %v4430_v28, %s4062_s29  ;;  %v3800_v28 = vld [vmem:[%s4115_s26 + $0x1c2] sm:$0xff] }
  0xef   : > { %v1194_v5 = vld [vmem:[#allocation2 + $0x8] sm:$0xff]  ;;  %1455 = vst.msk [vmem:[#allocation2] sm:$0xff] %vm443_vm13, %v1432_v41  ;;  %v1144_v37 = vmul.f32 0.2, %v3800_v28  ;;  %vm1136_vm0 = vcmp.ge.f32.partialorder %v3800_v28, 0.0 }
  0xf0   : > { %3804 = vmatmul.msk.f32.gmra.mxu2 %vm804_vm9, %v1194_v5  ;;  %1527 = vst.msk [vmem:[#allocation2] sm:$0xff] %vm516_vm2, %v1504_v62  ;;  %v1506_v29 = vpop.permute.xlu2 %1505  ;;  %v3726_v5 = vld [vmem:[%s4115_s26 + $0x120] sm:$0xff] }
  0xf1   : > { %1311 = vst.msk [vmem:[#allocation2 + $0x8] sm:$0xff] %vm296_vm14, %v4421_v21  ;;  %v1152_v14 = vsel %vm1136_vm0, %v3800_v28, %v1144_v37  ;;  %vm551_vm8 = vcmp.ge.f32.partialorder %v3726_v5, 0.0  ;;  %vm1647_vm0 = vcmask 57344  }
  0xf2   : > { %1384 = vst.msk [vmem:[#allocation2 + $0x8] sm:$0xff] %vm370_vm7, %v1362_v25 }
  0xf3   : > { %1441 = vrot.lane.b32.xlu1 %v4448_v36, %s4061_s28  ;;  %v557_v36 = vmul.f32 0.2, %v3724_v34 }
  0xf4   : > { %1369 = vrot.lane.b32.xlu0 %v4444_v13, %s4060_s27  ;;  %v1008_v13 = vsel %vm992_vm11, %v3784_v61, %v1000_v59  ;;  %v559_v61 = vmul.f32 0.2, %v3726_v5  ;;  %vm1639_vm11 = vcmask 64512  }
  0xf5   : > { %v768_v30 = vpop.permute.xlu1 %767  ;;  %v4557_v40 = vsel %vm549_vm15, %v3724_v34, %v557_v36 }
  0xf6   : > { %v696_v31 = vpop.permute.xlu0 %695  ;;  %1513 = vrot.lane.b32.xlu2 %v4459_v50, %s4062_s29  ;;  %573 = vst.msk [vmem:[#allocation2 + $0x28] sm:$0xff] %vm296_vm14, %v4557_v40  ;;  %v3834_v50 = vld [vmem:[%s4115_s26 + $0x131] sm:$0xff]  ;;  %v4626_v39 = vsel %vm551_vm8, %v3726_v5, %v559_v61 }
  0xf7   : > { %716 = vst.msk [vmem:[#allocation2 + $0x18] sm:$0xff] %vm443_vm13, %v696_v31  ;;  %v1535_v21 = vld [vmem:[#allocation2] sm:$0xff]  ;;  %v1414_v52 = vmul.f32 0.2, %v3834_v50  ;;  %vm1406_vm3 = vcmp.ge.f32.partialorder %v3834_v50, 0.0 }
  0xf8   : > { %788 = vst.msk [vmem:[#allocation2 + $0x18] sm:$0xff] %vm516_vm2, %v768_v30  ;;  %3845 = vmatmul.msk.f32.vlgmr.msra.gmra.mxu3 %vm804_vm9, %v1535_v21  ;;  %v1024_v43 = vpop.permute.xlu2 %1023  ;;  %v3775_v30 = vld [vmem:[%s4115_s26 + $0x250] sm:$0xff] }
  0xf9   : > { %v1422_v24 = vsel %vm1406_vm3, %v3834_v50, %v1414_v52  ;;  %v958_v21 = vmul.f32 0.2, %v3775_v30  ;;  %vm950_vm10 = vcmp.ge.f32.partialorder %v3775_v30, 0.0  ;;  %v3776_v50 = vld [vmem:[%s4115_s26 + $0x260] sm:$0xff]  ;;  %vm2089_vm3 = vcmask 24576  }
  0xfa   : > { %v959_v57 = vmul.f32 0.2, %v3776_v50  ;;  %vm951_vm15 = vcmp.ge.f32.partialorder %v3776_v50, 0.0 }
  0xfb   : > { %1103 = vrot.lane.b32.xlu1 %v1080_v35, %s4061_s28  ;;  %v966_v35 = vsel %vm950_vm10, %v3775_v30, %v958_v21 }
  0xfc   : > { %1031 = vrot.lane.b32.xlu0 %v1008_v13, %s4060_s27 }
  0xfd   : > { %v1166_v44 = vpop.permute.xlu1 %1165 }
  0xfe   : > { %v1094_v45 = vpop.permute.xlu0 %1093  ;;  %1175 = vrot.lane.b32.xlu2 %v1152_v14, %s4062_s29 }
  0xff   : > { %1115 = vst.msk [vmem:[#allocation2 + $0x10] sm:$0xff] %vm443_vm13, %v1094_v45  ;;  %v796_v46 = vld [vmem:[#allocation2 + $0x18] sm:$0xff]  ;;  %v4063_v45 = vmov 0.0  }
 0x100   : > { %1187 = vst.msk [vmem:[#allocation2 + $0x10] sm:$0xff] %vm516_vm2, %v1166_v44  ;;  %3756 = vmatmul.msk.f32.gmra.mxu0 %vm804_vm9, %v796_v46  ;;  %v1364_v51 = vpop.permute.xlu2 %1363 }
 0x101   : > { %971 = vst.msk [vmem:[#allocation2 + $0x18] sm:$0xff] %vm296_vm14, %v4251_v47 }
 0x102   : > { %1044 = vst.msk [vmem:[#allocation2 + $0x18] sm:$0xff] %vm370_vm7, %v1024_v43 }
 0x103   : > { %1443 = vrot.lane.b32.xlu1 %v4504_v7, %s4061_s28  ;;  %1640 = vst.msk [vmem:[#allocation3] sm:$0xff] %vm1639_vm11, %v4063_v45 }
 0x104   : > { %1371 = vrot.lane.b32.xlu0 %v4499_v3, %s4060_s27  ;;  %v3725_v3 = vld [vmem:[%s4115_s26 + $0x110] sm:$0xff]  ;;  %1644 = vst.msk [vmem:[#allocation3 + $0x90] sm:$0xff] %vm1639_vm11, %v4063_v45 }
 0x105   : > { %v626_v53 = vpop.permute.xlu1 %625  ;;  %v558_v7 = vmul.f32 0.2, %v3725_v3  ;;  %vm550_vm5 = vcmp.ge.f32.partialorder %v3725_v3, 0.0  ;;  %1642 = vst.msk [vmem:[#allocation3 + $0x8] sm:$0x3] %vm1641_vm12, %v4063_v45 }
 0x106   : > { %v1434_v42 = vpop.permute.xlu0 %1433  ;;  %645 = vst.msk [vmem:[#allocation2 + $0x20] sm:$0xff] %vm370_vm7, %v626_v53  ;;  %1515 = vrot.lane.b32.xlu2 %v4520_v20, %s4062_s29 }
 0x107   : > { %v1195_v47 = vld [vmem:[#allocation2 + $0x10] sm:$0xff]  ;;  %1456 = vst.msk [vmem:[#allocation2 + $0x8] sm:$0xff] %vm443_vm13, %v1434_v42  ;;  %v4598_v6 = vsel %vm550_vm5, %v3725_v3, %v558_v7 }
 0x108   : > { %3805 = vmatmul.msk.f32.gmra.mxu2 %vm804_vm9, %v1195_v47  ;;  %1528 = vst.msk [vmem:[#allocation2 + $0x8] sm:$0xff] %vm516_vm2, %v1506_v29  ;;  %v1508_v56 = vpop.permute.xlu2 %1507 }
 0x109   : > { %1312 = vst.msk [vmem:[#allocation2 + $0x10] sm:$0xff] %vm296_vm14, %v4463_v38 }
 0x10a   : > { %1385 = vst.msk [vmem:[#allocation2 + $0x10] sm:$0xff] %vm370_vm7, %v1364_v51  ;;  %v1786_v51 = vld [vmem:[#allocation3] sm:$0xff] }
 0x10b   : > { %1445 = vrot.lane.b32.xlu1 %v1422_v24, %s4061_s28  ;;  %574 = vst.msk [vmem:[#allocation2 + $0x30] sm:$0xff] %vm296_vm14, %v4598_v6 }
 0x10c   : > { %1373 = vrot.lane.b32.xlu0 %v1350_v48, %s4060_s27  ;;  %1645 = vst.msk [vmem:[#allocation3 + $0x98] sm:$0x3] %vm1641_vm12, %v4063_v45  ;;  %v1737_v52 = vld [vmem:[#allocation3 + $0x1] sm:$0xff]  ;;  %v967_v48 = vsel %vm951_vm15, %v3776_v50, %v959_v57 }
 0x10d   : > { %v770_v62 = vpop.permute.xlu1 %769  ;;  %v2266_v55 = vld [vmem:[#allocation3 + $0x2] sm:$0xff]  ;;  %1648 = vst.msk [vmem:[#allocation3 + $0x10] sm:$0x1] %vm1647_vm0, %v4063_v45 }
 0x10e   : > { %v698_v63 = vpop.permute.xlu0 %697  ;;  %1517 = vrot.lane.b32.xlu2 %v1494_v33, %s4062_s29  ;;  %1649 = vst.msk [vmem:[#allocation3 + $0x20] sm:$0x1] %vm1647_vm0, %v4063_v45 }
 0x10f   : > { %717 = vst.msk [vmem:[#allocation2 + $0x20] sm:$0xff] %vm443_vm13, %v698_v63  ;;  %v1536_v38 = vld [vmem:[#allocation2 + $0x8] sm:$0xff] }
 0x110   : > { %789 = vst.msk [vmem:[#allocation2 + $0x20] sm:$0xff] %vm516_vm2, %v770_v62  ;;  %3846 = vmatmul.msk.f32.gmra.mxu3 %vm804_vm9, %v1536_v38  ;;  %v1026_v0 = vpop.permute.xlu2 %1025 }
 0x111   : > { %1650 = vst.msk [vmem:[#allocation3 + $0x30] sm:$0x1] %vm1647_vm0, %v4063_v45 }
 0x112   : > { %1651 = vst.msk [vmem:[#allocation3 + $0x40] sm:$0x1] %vm1647_vm0, %v4063_v45 }
 0x113   : > { %1753 = vrot.lane.b32.xlu1 %v1737_v52, %s4065_s25  ;;  %1652 = vst.msk [vmem:[#allocation3 + $0x50] sm:$0x1] %vm1647_vm0, %v4063_v45 }
 0x114   : > { %1653 = vst.msk [vmem:[#allocation3 + $0x60] sm:$0x1] %vm1647_vm0, %v4063_v45 }
 0x115   : > { %v1168_v1 = vpop.permute.xlu1 %1167  ;;  %1654 = vst.msk [vmem:[#allocation3 + $0x70] sm:$0x1] %vm1647_vm0, %v4063_v45 }
 0x116   : > { %v1096_v4 = vpop.permute.xlu0 %1095  ;;  %1802 = vrot.lane.b32.xlu2 %v1786_v51, %s4064_s24  ;;  %1655 = vst.msk [vmem:[#allocation3 + $0x80] sm:$0x1] %vm1647_vm0, %v4063_v45 }
 0x117   : > { %1116 = vst.msk [vmem:[#allocation2 + $0x18] sm:$0xff] %vm443_vm13, %v1096_v4  ;;  %v797_v15 = vld [vmem:[#allocation2 + $0x20] sm:$0xff]  ;;  %v3818_v4 = vld [vmem:[%s4115_s26 + $0x130] sm:$0xff] }
 0x118   : > { %1188 = vst.msk [vmem:[#allocation2 + $0x18] sm:$0xff] %vm516_vm2, %v1168_v1  ;;  %3757 = vmatmul.msk.f32.gmra.mxu0 %vm804_vm9, %v797_v15  ;;  %v1366_v9 = vpop.permute.xlu2 %1365  ;;  %v1301_v15 = vmul.f32 0.2, %v3818_v4  ;;  %vm1293_vm1 = vcmp.ge.f32.partialorder %v3818_v4, 0.0 }
 0x119   : > { %972 = vst.msk [vmem:[#allocation2 + $0x20] sm:$0xff] %vm296_vm14, %v4274_v58 }
 0x11a   : > { %1045 = vst.msk [vmem:[#allocation2 + $0x20] sm:$0xff] %vm370_vm7, %v1026_v0 }
 0x11b   : > { %2234 = vrot.lane.b32.xlu1 %v1737_v52, %s4065_s25  ;;  %1656 = vst.msk [vmem:[#allocation3 + $0x19] sm:$0x1] %vm1647_vm0, %v4063_v45 }
 0x11c   : > { %1657 = vst.msk [vmem:[#allocation3 + $0x29] sm:$0x1] %vm1647_vm0, %v4063_v45 }
 0x11d   : > { %v628_v60 = vpop.permute.xlu1 %627  ;;  %1658 = vst.msk [vmem:[#allocation3 + $0x39] sm:$0x1] %vm1647_vm0, %v4063_v45 }
 0x11e   : > { %v1436_v32 = vpop.permute.xlu0 %1435  ;;  %646 = vst.msk [vmem:[#allocation2 + $0x28] sm:$0xff] %vm370_vm7, %v628_v60  ;;  %2282 = vrot.lane.b32.xlu2 %v2266_v55, %s4064_s24  ;;  %v1309_v60 = vsel %vm1293_vm1, %v3818_v4, %v1301_v15  ;;  %v1846_v4 = vld [vmem:[%s6254_s3 + $0x18] sm:$0xff]  ;;  %v1845_v15 = vld [vmem:[%s6254_s3 + $0x10] sm:$0xff] }
 0x11f   : > { %v1196_v10 = vld [vmem:[#allocation2 + $0x18] sm:$0xff]  ;;  %1457 = vst.msk [vmem:[#allocation2 + $0x10] sm:$0xff] %vm443_vm13, %v1436_v32  ;;  %1888 = vmatpush.msrb.mxu0 %v1846_v4 }
 0x120   : > { %3806 = vmatmul.msk.f32.gmra.mxu2 %vm804_vm9, %v1196_v10  ;;  %1529 = vst.msk [vmem:[#allocation2 + $0x10] sm:$0xff] %vm516_vm2, %v1508_v56  ;;  %v630_v58 = vpop.permute.xlu2 %629 }
 0x121   : > { %1313 = vst.msk [vmem:[#allocation2 + $0x18] sm:$0xff] %vm296_vm14, %v4524_v8  ;;  %v965_v8 = vsel %vm949_vm6, %v3774_v54, %v957_v17  ;;  %v4711_v54 = vld [vmem:[%s6253_s2] ss:$0 sm:$0xff]  ;;  %1889 = vmatpush.msrb.mxu0 %v1845_v15 }
 0x122   : > { %1386 = vst.msk [vmem:[#allocation2 + $0x18] sm:$0xff] %vm370_vm7, %v1366_v9 }
 0x123   : > { %647 = vst.msk [vmem:[#allocation2 + $0x30] sm:$0xff] %vm370_vm7, %v630_v58 }
 0x124   : > { %1659 = vst.msk [vmem:[#allocation3 + $0x49] sm:$0x1] %vm1647_vm0, %v4063_v45 }
 0x125   : > { %v772_v11 = vpop.permute.xlu1 %771  ;;  %1660 = vst.msk [vmem:[#allocation3 + $0x59] sm:$0x1] %vm1647_vm0, %v4063_v45 }
 0x126   : > { %v700_v12 = vpop.permute.xlu0 %699  ;;  %1661 = vst.msk [vmem:[#allocation3 + $0x69] sm:$0x1] %vm1647_vm0, %v4063_v45 }
 0x127   : > { %718 = vst.msk [vmem:[#allocation2 + $0x28] sm:$0xff] %vm443_vm13, %v700_v12  ;;  %v1537_v16 = vld [vmem:[#allocation2 + $0x10] sm:$0xff] }
 0x128   : > { %790 = vst.msk [vmem:[#allocation2 + $0x28] sm:$0xff] %vm516_vm2, %v772_v11  ;;  %3847 = vmatmul.msk.f32.gmra.mxu3 %vm804_vm9, %v1537_v16  ;;  %v774_v18 = vpop.permute.xlu2 %773 }
 0x129   : > { %1662 = vst.msk [vmem:[#allocation3 + $0x79] sm:$0x1] %vm1647_vm0, %v4063_v45 }
 0x12a   : > { %1663 = vst.msk [vmem:[#allocation3 + $0x89] sm:$0x1] %vm1647_vm0, %v4063_v45 }
 0x12d   : > { %v1170_v19 = vpop.permute.xlu1 %1169 }
 0x12e   : > { %v1098_v20 = vpop.permute.xlu0 %1097 }
 0x12f   : > { %1117 = vst.msk [vmem:[#allocation2 + $0x20] sm:$0xff] %vm443_vm13, %v1098_v20  ;;  %v798_v22 = vld [vmem:[#allocation2 + $0x28] sm:$0xff] }
 0x130   : > { %1189 = vst.msk [vmem:[#allocation2 + $0x20] sm:$0xff] %vm516_vm2, %v1170_v19  ;;  %3758 = vmatmul.msk.f32.gmra.mxu0 %vm804_vm9, %v798_v22  ;;  %v1172_v41 = vpop.permute.xlu2 %1171 }
 0x131   : > { %973 = vst.msk [vmem:[#allocation2 + $0x28] sm:$0xff] %vm296_vm14, %v965_v8 }
 0x133   : > { %v911_v32 = vpop.f32.mrf.mxu1 }
 0x135   : > { %v1438_v23 = vpop.permute.xlu1 %1437 }
 0x136   : > { %v507_v25 = vpop.permute.xlu0 %506  ;;  %1458 = vst.msk [vmem:[#allocation2 + $0x18] sm:$0xff] %vm443_vm13, %v1438_v23 }
 0x137   : > { %v1197_v26 = vld [vmem:[#allocation2 + $0x20] sm:$0xff]  ;;  %524 = vst.msk [vmem:[#allocation2 + $0x38] sm:$0xff] %vm516_vm2, %v507_v25 }
 0x138   : > { %3807 = vmatmul.msk.f32.gmra.mxu2 %vm804_vm9, %v1197_v26  ;;  %1314 = vst.msk [vmem:[#allocation2 + $0x20] sm:$0xff] %vm296_vm14, %v4557_v40  ;;  %v632_v31 = vpop.permute.xlu2 %631 }
 0x13b   : > { %v914_v61 = vpop.f32.mrf.mxu1 }
 0x13d   : > { %v702_v27 = vpop.permute.xlu1 %701 }
 0x13e   : > { %v1510_v29 = vpop.permute.xlu0 %1509  ;;  %719 = vst.msk [vmem:[#allocation2 + $0x30] sm:$0xff] %vm443_vm13, %v702_v27  ;;  %v532_v59 = vld [vmem:[#allocation2 + $0x38] sm:$0xff] }
 0x13f   : > { %1530 = vst.msk [vmem:[#allocation2 + $0x18] sm:$0xff] %vm516_vm2, %v1510_v29  ;;  %3768 = vmatmul.msk.f32.gmra.mxu1 %vm804_vm9, %v532_v59 }
 0x140   : > { %791 = vst.msk [vmem:[#allocation2 + $0x30] sm:$0xff] %vm516_vm2, %v774_v18  ;;  %v776_v37 = vpop.permute.xlu2 %775 }
 0x141   : > { %575 = vst.msk [vmem:[#allocation2 + $0x38] sm:$0xff] %vm296_vm14, %v4626_v39 }
 0x142   : > { %648 = vst.msk [vmem:[#allocation2 + $0x38] sm:$0xff] %vm370_vm7, %v632_v31 }
 0x145   : > { %v1100_v28 = vpop.permute.xlu1 %1099 }
 0x146   : > { %v1028_v34 = vpop.permute.xlu0 %1027  ;;  %v1538_v13 = vld [vmem:[#allocation2 + $0x18] sm:$0xff] }
 0x147   : > { %1046 = vst.msk [vmem:[#allocation2 + $0x28] sm:$0xff] %vm370_vm7, %v1028_v34  ;;  %3848 = vmatmul.msk.f32.gmra.mxu3 %vm804_vm9, %v1538_v13  ;;  %v799_v36 = vld [vmem:[#allocation2 + $0x30] sm:$0xff] }
 0x148   : > { %1118 = vst.msk [vmem:[#allocation2 + $0x28] sm:$0xff] %vm443_vm13, %v1100_v28  ;;  %3759 = vmatmul.msk.f32.gmra.mxu0 %vm804_vm9, %v799_v36  ;;  %v1174_v46 = vpop.permute.xlu2 %1173  ;;  %v917_v36 = vpop.f32.mrf.mxu1 }
 0x149   : > { %1190 = vst.msk [vmem:[#allocation2 + $0x28] sm:$0xff] %vm516_vm2, %v1172_v41 }
 0x14a   : > { %974 = vst.msk [vmem:[#allocation2 + $0x30] sm:$0xff] %vm296_vm14, %v966_v35 }
 0x14d   : > { %v1440_v40 = vpop.permute.xlu1 %1439  ;;  %v846_v7 = vpop.f32.mrf.mxu0 }
 0x14e   : > { %v1368_v43 = vpop.permute.xlu0 %1367  ;;  %v912_v11 = vadd.f32 %v911_v32, %v846_v7 }
 0x14f   : > { %1387 = vst.msk [vmem:[#allocation2 + $0x20] sm:$0xff] %vm370_vm7, %v1368_v43 }
 0x150   : > { %1459 = vst.msk [vmem:[#allocation2 + $0x20] sm:$0xff] %vm443_vm13, %v1440_v40  ;;  %v1198_v44 = vld [vmem:[#allocation2 + $0x28] sm:$0xff]  ;;  %v1514_v2 = vpop.permute.xlu2 %1513  ;;  %v920_v52 = vpop.f32.mrf.mxu1 }
 0x151   : > { %3808 = vmatmul.msk.f32.gmra.mxu2 %vm804_vm9, %v1198_v44  ;;  %1315 = vst.msk [vmem:[#allocation2 + $0x28] sm:$0xff] %vm296_vm14, %v4598_v6 }
 0x155   : > { %v704_v14 = vpop.permute.xlu1 %703  ;;  %v849_v5 = vpop.f32.mrf.mxu0 }
 0x156   : > { %v1512_v49 = vpop.permute.xlu0 %1511  ;;  %720 = vst.msk [vmem:[#allocation2 + $0x38] sm:$0xff] %vm443_vm13, %v704_v14  ;;  %v915_v29 = vadd.f32 %v914_v61, %v849_v5  ;;  %v3861_v61 = vld [vmem:[%s6254_s3 + $0x20] sm:$0xff] }
 0x157   : > { %1531 = vst.msk [vmem:[#allocation2 + $0x20] sm:$0xff] %vm516_vm2, %v1512_v49 }
 0x158   : > { %792 = vst.msk [vmem:[#allocation2 + $0x38] sm:$0xff] %vm516_vm2, %v776_v37  ;;  %v1176_v33 = vpop.permute.xlu2 %1175 }
 0x15d   : > { %v1102_v42 = vpop.permute.xlu1 %1101 }
 0x15e   : > { %v1030_v53 = vpop.permute.xlu0 %1029  ;;  %v1539_v47 = vld [vmem:[#allocation2 + $0x20] sm:$0xff] }
 0x15f   : > { %1047 = vst.msk [vmem:[#allocation2 + $0x30] sm:$0xff] %vm370_vm7, %v1030_v53  ;;  %3849 = vmatmul.msk.f32.gmra.mxu3 %vm804_vm9, %v1539_v47  ;;  %v800_v24 = vld [vmem:[#allocation2 + $0x38] sm:$0xff] }
 0x160   : > { %1119 = vst.msk [vmem:[#allocation2 + $0x30] sm:$0xff] %vm443_vm13, %v1102_v42  ;;  %3760 = vmatmul.msk.f32.gmra.mxu0 %vm804_vm9, %v800_v24  ;;  %v1516_v3 = vpop.permute.xlu2 %1515 }
 0x161   : > { %1191 = vst.msk [vmem:[#allocation2 + $0x30] sm:$0xff] %vm516_vm2, %v1174_v46 }
 0x162   : > { %975 = vst.msk [vmem:[#allocation2 + $0x38] sm:$0xff] %vm296_vm14, %v967_v48 }
 0x163   : > { %v1245_v10 = vpop.f32.mrf.mxu2 }
 0x164   : > { %v1269_v12 = vadd.f32 %v1245_v10, %v912_v11 }
 0x165   : > { %v1442_v62 = vpop.permute.xlu1 %1441  ;;  %v852_v35 = vpop.f32.mrf.mxu0 }
 0x166   : > { %v1370_v56 = vpop.permute.xlu0 %1369  ;;  %v918_v40 = vadd.f32 %v917_v36, %v852_v35 }
 0x167   : > { %1388 = vst.msk [vmem:[#allocation2 + $0x28] sm:$0xff] %vm370_vm7, %v1370_v56 }
 0x168   : > { %1460 = vst.msk [vmem:[#allocation2 + $0x28] sm:$0xff] %vm443_vm13, %v1442_v62  ;;  %v1199_v63 = vld [vmem:[#allocation2 + $0x30] sm:$0xff]  ;;  %v1518_v18 = vpop.permute.xlu2 %1517 }
 0x169   : > { %1532 = vst.msk [vmem:[#allocation2 + $0x28] sm:$0xff] %vm516_vm2, %v1514_v2  ;;  %3809 = vmatmul.msk.f32.gmra.mxu2 %vm804_vm9, %v1199_v63 }
 0x16a   : > { %1316 = vst.msk [vmem:[#allocation2 + $0x30] sm:$0xff] %vm296_vm14, %v4626_v39 }
 0x16d   : > { %v1104_v0 = vpop.permute.xlu1 %1103 }
 0x16e   : > { %v1032_v38 = vpop.permute.xlu0 %1031 }
 0x16f   : > { %1048 = vst.msk [vmem:[#allocation2 + $0x38] sm:$0xff] %vm370_vm7, %v1032_v38  ;;  %v923_v38 = vpop.f32.mrf.mxu1 }
 0x170   : > { %1120 = vst.msk [vmem:[#allocation2 + $0x38] sm:$0xff] %vm443_vm13, %v1104_v0  ;;  %v1540_v1 = vld [vmem:[#allocation2 + $0x28] sm:$0xff]  ;;  %v1803_v32 = vpop.permute.xlu2 %1802 }
 0x171   : > { %1192 = vst.msk [vmem:[#allocation2 + $0x38] sm:$0xff] %vm516_vm2, %v1176_v33  ;;  %3850 = vmatmul.msk.f32.gmra.mxu3 %vm804_vm9, %v1540_v1 }
 0x173   : > { %v1248_v27 = vpop.f32.mrf.mxu2 }
 0x174   : > { %v1270_v39 = vadd.f32 %v1248_v27, %v915_v29 }
 0x175   : > { %v1444_v9 = vpop.permute.xlu1 %1443 }
 0x176   : > { %v1372_v6 = vpop.permute.xlu0 %1371 }
 0x177   : > { %1389 = vst.msk [vmem:[#allocation2 + $0x30] sm:$0xff] %vm370_vm7, %v1372_v6 }
 0x178   : > { %1461 = vst.msk [vmem:[#allocation2 + $0x30] sm:$0xff] %vm443_vm13, %v1444_v9  ;;  %v1200_v58 = vld [vmem:[#allocation2 + $0x38] sm:$0xff]  ;;  %v1844_v9 = vld [vmem:[%s6254_s3 + $0x8] sm:$0xff] }
 0x179   : > { %1533 = vst.msk [vmem:[#allocation2 + $0x30] sm:$0xff] %vm516_vm2, %v1516_v3  ;;  %3810 = vmatmul.msk.f32.gmra.mxu2 %vm804_vm9, %v1200_v58  ;;  %1890 = vmatpush.msrb.mxu0 %v1844_v9  ;;  %v1843_v58 = vld [vmem:[%s6254_s3] sm:$0xff] }
 0x17a   : > { %1317 = vst.msk [vmem:[#allocation2 + $0x38] sm:$0xff] %vm296_vm14, %v1309_v60 }
 0x17b   : > { %v1587_v16 = vpop.f32.mrf.mxu3  ;;  %1891 = vmatpush.msrb.mxu0 %v1843_v58 }
 0x17c   : > { %v1611_v17 = vadd.f32 %v1587_v16, %v1269_v12  ;;  %v3864_v12 = vld [vmem:[%s6254_s3 + $0x38] sm:$0xff] }
 0x17d   : > { %v1446_v20 = vpop.permute.xlu1 %1445  ;;  %v855_v57 = vpop.f32.mrf.mxu0  ;;  %2367 = vmatpush.msrb.mxu1 %v3864_v12 }
 0x17e   : > { %v1374_v19 = vpop.permute.xlu0 %1373  ;;  %v1623_v8 = vadd.f32 %v4711_v54, %v1611_v17  ;;  %v921_v42 = vadd.f32 %v920_v52, %v855_v57 }
 0x17f   : > { %1390 = vst.msk [vmem:[#allocation2 + $0x38] sm:$0xff] %vm370_vm7, %v1374_v19  ;;  %v926_v19 = vpop.f32.mrf.mxu1  ;;  %vm1728_vm7 = vcmask 130112  }
 0x180   : > { %1462 = vst.msk [vmem:[#allocation2 + $0x38] sm:$0xff] %vm443_vm13, %v1446_v20  ;;  %v1541_v22 = vld [vmem:[#allocation2 + $0x30] sm:$0xff]  ;;  %v1631_v23 = vmax.f32 %v1623_v8, 0.0  ;;  %vm1777_vm13 = vcmask 195712  }
 0x181   : > { %1534 = vst.msk [vmem:[#allocation2 + $0x38] sm:$0xff] %vm516_vm2, %v1518_v18  ;;  %3851 = vmatmul.msk.f32.gmra.mxu3 %vm804_vm9, %v1541_v22  ;;  %v3863_v18 = vld [vmem:[%s6254_s3 + $0x30] sm:$0xff]  ;;  %vm1826_vm2 = vcmask 261312  }
 0x182   : > { %1664 = vst.msk [vmem:[#allocation3 + $0x11] sm:$0xff] %vm1639_vm11, %v1631_v23  ;;  %2368 = vmatpush.msrb.mxu1 %v3863_v18 }
 0x185   : > { %v1754_v17 = vpop.permute.xlu1 %1753 }
 0x188   : > { %v1542_v25 = vld [vmem:[#allocation2 + $0x38] sm:$0xff] }
 0x189   : > { %3852 = vmatmul.msk.f32.gmra.mxu3 %vm804_vm9, %v1542_v25  ;;  %v1787_v26 = vld [vmem:[#allocation3 + $0x10] sm:$0xff]  ;;  %v3862_v25 = vld [vmem:[%s6254_s3 + $0x28] sm:$0xff]  ;;  %vm1851_vm9 = vcmask 261120  }
 0x18a   : > { %v4726_v41 = vld [vmem:[#allocation3 + $0x11] sm:$0xff]  ;;  %1804 = vrot.lane.b32.xlu2 %v1787_v26, %s4064_s24  ;;  %1704 = vrot.lane.b32.xlu0 %v1787_v26, %s4061_s28 }
 0x18b   : > { %1755 = vrot.lane.b32.xlu1 %v4726_v41, %s4065_s25  ;;  %1680 = vst.msk [vmem:[#allocation4] sm:$0xff] %vm1639_vm11, %v4726_v41  ;;  %v2267_v59 = vld [vmem:[#allocation3 + $0x12] sm:$0xff]  ;;  %v1251_v37 = vpop.f32.mrf.mxu2  ;;  %2369 = vmatpush.msrb.mxu1 %v3862_v25 }
 0x18c   : > { %v1271_v44 = vadd.f32 %v1251_v37, %v918_v40 }
 0x18d   : > { %2370 = vmatpush.msrb.mxu1 %v3861_v61 }
 0x192   : > { %2284 = vrot.lane.b32.xlu2 %v2267_v59, %s4064_s24  ;;  %2186 = vrot.lane.b32.xlu0 %v2267_v59, %s4061_s28 }
 0x193   : > { %2236 = vrot.lane.b32.xlu1 %v4726_v41, %s4065_s25  ;;  %v1590_v30 = vpop.f32.mrf.mxu3 }
 0x194   : > { %v1612_v31 = vadd.f32 %v1590_v30, %v1270_v39  ;;  %v2235_v39 = vpop.permute.xlu1 %2234 }
 0x195   : > { %v858_v33 = vpop.f32.mrf.mxu0 }
 0x196   : > { %v1624_v21 = vadd.f32 %v4711_v54, %v1612_v31  ;;  %v924_v1 = vadd.f32 %v923_v38, %v858_v33 }
 0x198   : > { %v1632_v28 = vmax.f32 %v1624_v21, 0.0 }
 0x19a   : > { %1665 = vst.msk [vmem:[#allocation3 + $0x21] sm:$0xff] %vm1639_vm11, %v1632_v28  ;;  %3144 = vrot.lane.b32.xlu2 %v2267_v59, %s4061_s28  ;;  %2664 = vrot.lane.b32.xlu0 %v1787_v26, %s4061_s28  ;;  %v4835_v26 = vpop.permute.xlu2 %2282 }
 0x1a1   : > { %v1788_v34 = vld [vmem:[#allocation3 + $0x20] sm:$0xff] }
 0x1a2   : > { %v4742_v13 = vld [vmem:[#allocation3 + $0x21] sm:$0xff]  ;;  %1806 = vrot.lane.b32.xlu2 %v1788_v34, %s4064_s24  ;;  %1706 = vrot.lane.b32.xlu0 %v1788_v34, %s4061_s28 }
 0x1a3   : > { %1757 = vrot.lane.b32.xlu1 %v4742_v13, %s4065_s25  ;;  %1681 = vst.msk [vmem:[#allocation4 + $0x8] sm:$0xff] %vm1639_vm11, %v4742_v13  ;;  %v4750_v43 = vld [vmem:[#allocation3 + $0x22] sm:$0xff]  ;;  %v1254_v53 = vpop.f32.mrf.mxu2 }
 0x1a4   : > { %v1272_v47 = vadd.f32 %v1254_v53, %v921_v42  ;;  %v3876_v53 = vld [vmem:[%s6254_s3 + $0x58] sm:$0xff]  ;;  %v3875_v42 = vld [vmem:[%s6254_s3 + $0x50] sm:$0xff] }
 0x1a5   : > { %2846 = vmatpush.msrb.mxu2 %v3876_v53 }
 0x1a7   : > { %2847 = vmatpush.msrb.mxu2 %v3875_v42 }
 0x1aa   : > { %2286 = vrot.lane.b32.xlu2 %v4750_v43, %s4064_s24  ;;  %2188 = vrot.lane.b32.xlu0 %v4750_v43, %s4061_s28 }
 0x1ab   : > { %2713 = vrot.lane.b32.xlu1 %v4742_v13, %s4065_s25  ;;  %v1593_v45 = vpop.f32.mrf.mxu3 }
 0x1ac   : > { %v1613_v46 = vadd.f32 %v1593_v45, %v1271_v44 }
 0x1ad   : > { %v861_v16 = vpop.f32.mrf.mxu0 }
 0x1ae   : > { %v1625_v14 = vadd.f32 %v4711_v54, %v1613_v46  ;;  %v927_v8 = vadd.f32 %v926_v19, %v861_v16 }
 0x1b0   : > { %v1633_v49 = vmax.f32 %v1625_v14, 0.0 }
 0x1b2   : > { %1666 = vst.msk [vmem:[#allocation3 + $0x31] sm:$0xff] %vm1639_vm11, %v1633_v49  ;;  %2761 = vrot.lane.b32.xlu0 %v1788_v34, %s4064_s24 }
 0x1b3   : > { %2238 = vrot.lane.b32.xlu1 %v4742_v13, %s4065_s25 }
 0x1b9   : > { %v1789_v50 = vld [vmem:[#allocation3 + $0x30] sm:$0xff] }
 0x1ba   : > { %v4763_v51 = vld [vmem:[#allocation3 + $0x31] sm:$0xff]  ;;  %1808 = vrot.lane.b32.xlu2 %v1789_v50, %s4064_s24  ;;  %2666 = vrot.lane.b32.xlu0 %v1788_v34, %s4061_s28  ;;  %v929_v34 = vpop.f32.mrf.mxu1 }
 0x1bb   : > { %3192 = vrot.lane.b32.xlu1 %v4742_v13, %s4065_s25  ;;  %1682 = vst.msk [vmem:[#allocation4 + $0x10] sm:$0xff] %vm1639_vm11, %v4763_v51  ;;  %v4776_v48 = vld [vmem:[#allocation3 + $0x32] sm:$0xff]  ;;  %v1257_v0 = vpop.f32.mrf.mxu2 }
 0x1bc   : > { %v1273_v3 = vadd.f32 %v1257_v0, %v924_v1  ;;  %v3874_v0 = vld [vmem:[%s6254_s3 + $0x48] sm:$0xff]  ;;  %v3873_v1 = vld [vmem:[%s6254_s3 + $0x40] sm:$0xff] }
 0x1bd   : > { %2848 = vmatpush.msrb.mxu2 %v3874_v0 }
 0x1bf   : > { %2849 = vmatpush.msrb.mxu2 %v3873_v1 }
 0x1c2   : > { %1708 = vrot.lane.b32.xlu0 %v1789_v50, %s4061_s28 }
 0x1c3   : > { %1759 = vrot.lane.b32.xlu1 %v4763_v51, %s4065_s25 }
 0x1c5   : > { %v864_v21 = vpop.f32.mrf.mxu0 }
 0x1c6   : > { %v930_v36 = vadd.f32 %v929_v34, %v864_v21  ;;  %v3949_v21 = vld [vmem:[%s6254_s3 + $0x60] sm:$0xff] }
 0x1ca   : > { %v1596_v2 = vpop.f32.mrf.mxu3  ;;  %2190 = vrot.lane.b32.xlu0 %v4776_v48, %s4061_s28 }
 0x1cb   : > { %2715 = vrot.lane.b32.xlu1 %v4763_v51, %s4065_s25  ;;  %v1614_v24 = vadd.f32 %v1596_v2, %v1272_v47  ;;  %v932_v47 = vpop.f32.mrf.mxu1 }
 0x1cd   : > { %v1626_v55 = vadd.f32 %v4711_v54, %v1614_v24 }
 0x1cf   : > { %v1634_v56 = vmax.f32 %v1626_v55, 0.0 }
 0x1d1   : > { %1667 = vst.msk [vmem:[#allocation3 + $0x41] sm:$0xff] %vm1639_vm11, %v1634_v56 }
 0x1d2   : > { %2763 = vrot.lane.b32.xlu0 %v1789_v50, %s4064_s24 }
 0x1d4   : > { %v1260_v20 = vpop.f32.mrf.mxu2 }
 0x1d5   : > { %v1274_v5 = vadd.f32 %v1260_v20, %v927_v8 }
 0x1d8   : > { %v4783_v62 = vld [vmem:[#allocation3 + $0x41] sm:$0xff] }
 0x1d9   : > { %v4785_v63 = vld [vmem:[#allocation3 + $0x40] sm:$0xff]  ;;  %1761 = vrot.lane.b32.xlu1 %v4783_v62, %s4065_s25  ;;  %1683 = vst.msk [vmem:[#allocation4 + $0x18] sm:$0xff] %vm1639_vm11, %v4783_v62 }
 0x1da   : > { %1710 = vrot.lane.b32.xlu2 %v4785_v63, %s4061_s28  ;;  %1810 = vrot.lane.b32.xlu0 %v4785_v63, %s4064_s24  ;;  %v4814_v11 = vld [vmem:[#allocation3 + $0x42] sm:$0xff] }
 0x1dd   : > { %v867_v14 = vpop.f32.mrf.mxu0 }
 0x1de   : > { %v933_v55 = vadd.f32 %v932_v47, %v867_v14 }
 0x1e1   : > { %2240 = vrot.lane.b32.xlu1 %v4763_v51, %s4065_s25 }
 0x1e2   : > { %2288 = vrot.lane.b32.xlu2 %v4776_v48, %s4064_s24  ;;  %v1599_v7 = vpop.f32.mrf.mxu3  ;;  %3240 = vrot.lane.b32.xlu0 %v4750_v43, %s4064_s24 }
 0x1e3   : > { %v1615_v6 = vadd.f32 %v1599_v7, %v1273_v3 }
 0x1e4   : > { %v4852_v31 = vpop.permute.xlu2 %1804 }
 0x1e5   : > { %v1627_v60 = vadd.f32 %v4711_v54, %v1615_v6 }
 0x1e7   : > { %v1635_v10 = vmax.f32 %v1627_v60, 0.0 }
 0x1e9   : > { %1668 = vst.msk [vmem:[#allocation3 + $0x51] sm:$0xff] %vm1639_vm11, %v1635_v10  ;;  %2717 = vrot.lane.b32.xlu1 %v4783_v62, %s4065_s25 }
 0x1ea   : > { %2192 = vrot.lane.b32.xlu2 %v4814_v11, %s4061_s28  ;;  %2668 = vrot.lane.b32.xlu0 %v1789_v50, %s4061_s28 }
 0x1ec   : > { %v1263_v35 = vpop.f32.mrf.mxu2  ;;  %v4871_v50 = vpop.permute.xlu2 %2284 }
 0x1ed   : > { %v1275_v44 = vadd.f32 %v1263_v35, %v930_v36 }
 0x1f0   : > { %v4828_v22 = vld [vmem:[#allocation3 + $0x51] sm:$0xff] }
 0x1f1   : > { %v4830_v23 = vld [vmem:[#allocation3 + $0x50] sm:$0xff]  ;;  %1763 = vrot.lane.b32.xlu1 %v4828_v22, %s4065_s25  ;;  %1684 = vst.msk [vmem:[#allocation4 + $0x20] sm:$0xff] %vm1639_vm11, %v4828_v22 }
 0x1f2   : > { %1712 = vrot.lane.b32.xlu2 %v4830_v23, %s4061_s28  ;;  %2765 = vrot.lane.b32.xlu0 %v4785_v63, %s4064_s24  ;;  %v4903_v6 = vld [vmem:[#allocation3 + $0x52] sm:$0xff] }
 0x1f4   : > { %v1602_v27 = vpop.f32.mrf.mxu3 }
 0x1f5   : > { %v1616_v29 = vadd.f32 %v1602_v27, %v1274_v5 }
 0x1f7   : > { %v1628_v59 = vadd.f32 %v4711_v54, %v1616_v29 }
 0x1f9   : > { %v1636_v30 = vmax.f32 %v1628_v59, 0.0  ;;  %3194 = vrot.lane.b32.xlu1 %v4763_v51, %s4065_s25  ;;  %v3952_v59 = vld [vmem:[%s6254_s3 + $0x78] sm:$0xff] }
 0x1fa   : > { %1812 = vrot.lane.b32.xlu0 %v4830_v23, %s4064_s24  ;;  %3325 = vmatpush.msrb.mxu3 %v3952_v59 }
 0x1fb   : > { %1669 = vst.msk [vmem:[#allocation3 + $0x61] sm:$0xff] %vm1639_vm11, %v1636_v30  ;;  %v3950_v30 = vld [vmem:[%s6254_s3 + $0x68] sm:$0xff] }
 0x1fc   : > { %v1705_v28 = vpop.permute.xlu0 %1704  ;;  %v1266_v2 = vpop.f32.mrf.mxu2 }
 0x1fd   : > { %1729 = vst.msk [vmem:[#allocation4] sm:$0xff] %vm1728_vm7, %v1705_v28  ;;  %v1756_v45 = vpop.permute.xlu1 %1755  ;;  %v1276_v33 = vadd.f32 %v1266_v2, %v933_v55 }
 0x1fe   : > { %1778 = vst.msk [vmem:[#allocation4] sm:$0xff] %vm1777_vm13, %v1754_v17 }
 0x1ff   : > { %1827 = vst.msk [vmem:[#allocation4] sm:$0xff] %vm1826_vm2, %v1803_v32 }
 0x201   : > { %2242 = vrot.lane.b32.xlu1 %v4783_v62, %s4065_s25 }
 0x202   : > { %v4861_v37 = vld [vmem:[#allocation3 + $0x60] sm:$0xff]  ;;  %3242 = vrot.lane.b32.xlu0 %v4776_v48, %s4064_s24 }
 0x203   : > { %v4863_v40 = vld [vmem:[#allocation3 + $0x61] sm:$0xff]  ;;  %1714 = vrot.lane.b32.xlu2 %v4861_v37, %s4061_s28 }
 0x204   : > { %1685 = vst.msk [vmem:[#allocation4 + $0x28] sm:$0xff] %vm1639_vm11, %v4863_v40  ;;  %v1605_v46 = vpop.f32.mrf.mxu3  ;;  %v2187_v57 = vpop.permute.xlu0 %2186 }
 0x205   : > { %v1617_v49 = vadd.f32 %v1605_v46, %v1275_v44  ;;  %v2237_v4 = vpop.permute.xlu1 %2236 }
 0x206   : > { %v1835_v24 = vld [vmem:[#allocation4] sm:$0xff] }
 0x207   : > { %v1629_v52 = vadd.f32 %v4711_v54, %v1617_v49  ;;  %2162 = vst.msk [vmem:[#allocation4] sm:$0xff] %vm1639_vm11, %v4726_v41  ;;  %3853 = vmatmul.msk.f32.vlgmr.msrb.gmra.mxu0 %vm1851_vm9, %v1835_v24 }
 0x208   : > { %2210 = vst.msk [vmem:[#allocation4] sm:$0xff] %vm1728_vm7, %v2187_v57 }
 0x209   : > { %v1637_v56 = vmax.f32 %v1629_v52, 0.0  ;;  %2719 = vrot.lane.b32.xlu1 %v4828_v22, %s4065_s25  ;;  %2258 = vst.msk [vmem:[#allocation4] sm:$0xff] %vm1777_vm13, %v2235_v39  ;;  %v3951_v39 = vld [vmem:[%s6254_s3 + $0x70] sm:$0xff] }
 0x20a   : > { %2670 = vrot.lane.b32.xlu0 %v4785_v63, %s4061_s28  ;;  %2306 = vst.msk [vmem:[#allocation4] sm:$0xff] %vm1826_vm2, %v4835_v26  ;;  %v3145_v63 = vpop.permute.xlu2 %3144  ;;  %3326 = vmatpush.msrb.mxu3 %v3951_v39 }
 0x20b   : > { %1670 = vst.msk [vmem:[#allocation3 + $0x71] sm:$0xff] %vm1639_vm11, %v1637_v56  ;;  %3146 = vrot.lane.b32.xlu2 %v4750_v43, %s4061_s28 }
 0x20c   : > { %v1608_v38 = vpop.f32.mrf.mxu3  ;;  %v2665_v43 = vpop.permute.xlu0 %2664  ;;  %3327 = vmatpush.msrb.mxu3 %v3950_v30  ;;  %v5142_v30 = vld [vmem:[%s6255_s4] ss:$0 sm:$0xff] }
 0x20d   : > { %v1618_v3 = vadd.f32 %v1608_v38, %v1276_v33 }
 0x20e   : > { %3328 = vmatpush.msrb.mxu3 %v3949_v21 }
 0x20f   : > { %v1630_v15 = vadd.f32 %v4711_v54, %v1618_v3 }
 0x211   : > { %v1638_v7 = vmax.f32 %v1630_v15, 0.0  ;;  %1765 = vrot.lane.b32.xlu1 %v4863_v40, %s4065_s25  ;;  %v2314_v60 = vld [vmem:[#allocation4] sm:$0xff]  ;;  %v2704_v15 = vld [vmem:[#allocation3 + $0x91] sm:$0xff] }
 0x212   : > { %v4905_v9 = vld [vmem:[#allocation3 + $0x71] sm:$0xff]  ;;  %2767 = vrot.lane.b32.xlu0 %v4830_v23, %s4064_s24  ;;  %2640 = vst.msk [vmem:[#allocation4] sm:$0xff] %vm1639_vm11, %v4726_v41  ;;  %3865 = vmatmul.msk.f32.vlgmr.msrb.gmra.mxu1 %vm1851_vm9, %v2314_v60  ;;  %v1807_v10 = vpop.permute.xlu2 %1806 }
 0x213   : > { %1671 = vst.msk [vmem:[#allocation3 + $0x81] sm:$0xff] %vm1639_vm11, %v1638_v7  ;;  %2194 = vrot.lane.b32.xlu2 %v4903_v6, %s4061_s28  ;;  %v4939_v18 = vld [vmem:[#allocation3 + $0x70] sm:$0xff] }
 0x214   : > { %1686 = vst.msk [vmem:[#allocation4 + $0x30] sm:$0xff] %vm1639_vm11, %v4905_v9  ;;  %v1707_v32 = vpop.permute.xlu0 %1706 }
 0x215   : > { %v1758_v54 = vpop.permute.xlu1 %1757  ;;  %2688 = vst.msk [vmem:[#allocation4] sm:$0xff] %vm1728_vm7, %v2665_v43 }
 0x216   : > { %1730 = vst.msk [vmem:[#allocation4 + $0x8] sm:$0xff] %vm1728_vm7, %v1707_v32 }
 0x217   : > { %1779 = vst.msk [vmem:[#allocation4 + $0x8] sm:$0xff] %vm1777_vm13, %v1756_v45 }
 0x218   : > { %1828 = vst.msk [vmem:[#allocation4 + $0x8] sm:$0xff] %vm1826_vm2, %v4852_v31 }
 0x219   : > { %3196 = vrot.lane.b32.xlu1 %v4783_v62, %s4065_s25 }
 0x21a   : > { %v4924_v58 = vld [vmem:[#allocation3 + $0x81] sm:$0xff]  ;;  %1814 = vrot.lane.b32.xlu0 %v4861_v37, %s4064_s24  ;;  %v2287_v19 = vpop.permute.xlu2 %2286 }
 0x21b   : > { %2290 = vrot.lane.b32.xlu2 %v4814_v11, %s4064_s24  ;;  %1687 = vst.msk [vmem:[#allocation4 + $0x38] sm:$0xff] %vm1639_vm11, %v4924_v58  ;;  %v5004_v44 = vld [vmem:[#allocation3 + $0x80] sm:$0xff] }
 0x21c   : > { %v2189_v16 = vpop.permute.xlu0 %2188  ;;  %v5069_v0 = vld [vmem:[#allocation3 + $0x82] sm:$0xff] }
 0x21d   : > { %v2714_v12 = vpop.permute.xlu1 %2713 }
 0x21e   : > { %2737 = vst.msk [vmem:[#allocation4] sm:$0xff] %vm1777_vm13, %v2714_v12 }
 0x21f   : > { %v1836_v17 = vld [vmem:[#allocation4 + $0x8] sm:$0xff] }
 0x220   : > { %2163 = vst.msk [vmem:[#allocation4 + $0x8] sm:$0xff] %vm1639_vm11, %v4742_v13  ;;  %3854 = vmatmul.msk.f32.gmra.mxu0 %vm1851_vm9, %v1836_v17 }
 0x221   : > { %2211 = vst.msk [vmem:[#allocation4 + $0x8] sm:$0xff] %vm1728_vm7, %v2189_v16  ;;  %2244 = vrot.lane.b32.xlu1 %v4828_v22, %s4065_s25  ;;  %v5112_v16 = vld [vmem:[%s6255_s4] ss:$0 sm:$0xff] }
 0x222   : > { %2259 = vst.msk [vmem:[#allocation4 + $0x8] sm:$0xff] %vm1777_vm13, %v2237_v4  ;;  %3244 = vrot.lane.b32.xlu0 %v4814_v11, %s4064_s24  ;;  %v1809_v26 = vpop.permute.xlu2 %1808 }
 0x223   : > { %1716 = vrot.lane.b32.xlu2 %v4939_v18, %s4061_s28  ;;  %2307 = vst.msk [vmem:[#allocation4 + $0x8] sm:$0xff] %vm1826_vm2, %v4871_v50 }
 0x224   : > { %v2762_v8 = vpop.permute.xlu0 %2761 }
 0x225   : > { %v2239_v20 = vpop.permute.xlu1 %2238  ;;  %2785 = vst.msk [vmem:[#allocation4] sm:$0xff] %vm1826_vm2, %v2762_v8  ;;  %v2752_v8 = vld [vmem:[#allocation3 + $0x90] sm:$0xff] }
 0x229   : > { %2721 = vrot.lane.b32.xlu1 %v4863_v40, %s4065_s25 }
 0x22a   : > { %v2315_v25 = vld [vmem:[#allocation4 + $0x8] sm:$0xff]  ;;  %2672 = vrot.lane.b32.xlu0 %v4830_v23, %s4061_s28 }
 0x22b   : > { %3148 = vrot.lane.b32.xlu2 %v4776_v48, %s4061_s28  ;;  %3866 = vmatmul.msk.f32.gmra.mxu1 %vm1851_vm9, %v2315_v25  ;;  %2641 = vst.msk [vmem:[#allocation4 + $0x8] sm:$0xff] %vm1639_vm11, %v4742_v13  ;;  %v4966_v48 = vld [vmem:[#allocation3 + $0x62] sm:$0xff] }
 0x22c   : > { %v2793_v61 = vld [vmem:[#allocation4] sm:$0xff]  ;;  %v2667_v27 = vpop.permute.xlu0 %2666 }
 0x22d   : > { %v3193_v5 = vpop.permute.xlu1 %3192  ;;  %3120 = vst.msk [vmem:[#allocation4] sm:$0xff] %vm1639_vm11, %v4726_v41  ;;  %3877 = vmatmul.msk.f32.vlgmr.msrb.gmra.mxu2 %vm1851_vm9, %v2793_v61 }
 0x22e   : > { %3168 = vst.msk [vmem:[#allocation4] sm:$0xff] %vm1728_vm7, %v3145_v63 }
 0x22f   : > { %3216 = vst.msk [vmem:[#allocation4] sm:$0xff] %vm1777_vm13, %v3193_v5 }
 0x230   : > { %2689 = vst.msk [vmem:[#allocation4 + $0x8] sm:$0xff] %vm1728_vm7, %v2667_v27 }
 0x231   : > { %1767 = vrot.lane.b32.xlu1 %v4905_v9, %s4065_s25 }
 0x232   : > { %2769 = vrot.lane.b32.xlu0 %v4861_v37, %s4064_s24 }
 0x233   : > { %2196 = vrot.lane.b32.xlu2 %v4966_v48, %s4061_s28 }
 0x234   : > { %v1711_v41 = vpop.permute.xlu2 %1710  ;;  %v1709_v29 = vpop.permute.xlu0 %1708 }
 0x235   : > { %1732 = vst.msk [vmem:[#allocation4 + $0x18] sm:$0xff] %vm1728_vm7, %v1711_v41  ;;  %v1760_v23 = vpop.permute.xlu1 %1759 }
 0x236   : > { %1781 = vst.msk [vmem:[#allocation4 + $0x18] sm:$0xff] %vm1777_vm13, %v1760_v23 }
 0x237   : > { %1830 = vst.msk [vmem:[#allocation4 + $0x18] sm:$0xff] %vm1826_vm2, %v1809_v26 }
 0x238   : > { %1731 = vst.msk [vmem:[#allocation4 + $0x10] sm:$0xff] %vm1728_vm7, %v1709_v29 }
 0x239   : > { %1780 = vst.msk [vmem:[#allocation4 + $0x10] sm:$0xff] %vm1777_vm13, %v1758_v54  ;;  %3198 = vrot.lane.b32.xlu1 %v4828_v22, %s4065_s25 }
 0x23a   : > { %1829 = vst.msk [vmem:[#allocation4 + $0x10] sm:$0xff] %vm1826_vm2, %v1807_v10  ;;  %1816 = vrot.lane.b32.xlu0 %v4939_v18, %s4064_s24 }
 0x23b   : > { %2292 = vrot.lane.b32.xlu2 %v4903_v6, %s4064_s24 }
 0x23c   : > { %v2289_v31 = vpop.permute.xlu2 %2288  ;;  %v2191_v34 = vpop.permute.xlu0 %2190 }
 0x23d   : > { %v2716_v28 = vpop.permute.xlu1 %2715 }
 0x23e   : > { %2738 = vst.msk [vmem:[#allocation4 + $0x8] sm:$0xff] %vm1777_vm13, %v2716_v28  ;;  %v1838_v35 = vld [vmem:[#allocation4 + $0x18] sm:$0xff] }
 0x23f   : > { %2165 = vst.msk [vmem:[#allocation4 + $0x18] sm:$0xff] %vm1639_vm11, %v4783_v62 }
 0x241   : > { %v1837_v36 = vld [vmem:[#allocation4 + $0x10] sm:$0xff]  ;;  %2246 = vrot.lane.b32.xlu1 %v4863_v40, %s4065_s25 }
 0x242   : > { %2164 = vst.msk [vmem:[#allocation4 + $0x10] sm:$0xff] %vm1639_vm11, %v4763_v51  ;;  %3855 = vmatmul.msk.f32.gmra.mxu0 %vm1851_vm9, %v1837_v36  ;;  %3246 = vrot.lane.b32.xlu0 %v4903_v6, %s4064_s24 }
 0x243   : > { %2212 = vst.msk [vmem:[#allocation4 + $0x10] sm:$0xff] %vm1728_vm7, %v2191_v34  ;;  %1718 = vrot.lane.b32.xlu2 %v5004_v44, %s4061_s28 }
 0x244   : > { %2260 = vst.msk [vmem:[#allocation4 + $0x10] sm:$0xff] %vm1777_vm13, %v2239_v20  ;;  %v2193_v45 = vpop.permute.xlu2 %2192  ;;  %v2764_v46 = vpop.permute.xlu0 %2763 }
 0x245   : > { %2308 = vst.msk [vmem:[#allocation4 + $0x10] sm:$0xff] %vm1826_vm2, %v2287_v19 }
 0x246   : > { %2213 = vst.msk [vmem:[#allocation4 + $0x18] sm:$0xff] %vm1728_vm7, %v2193_v45 }
 0x247   : > { %2786 = vst.msk [vmem:[#allocation4 + $0x8] sm:$0xff] %vm1826_vm2, %v2764_v46 }
 0x249   : > { %2723 = vrot.lane.b32.xlu1 %v4905_v9, %s4065_s25 }
 0x24a   : > { %3856 = vmatmul.msk.f32.gmra.mxu0 %vm1851_vm9, %v1838_v35  ;;  %2674 = vrot.lane.b32.xlu0 %v4861_v37, %s4061_s28 }
 0x24b   : > { %3150 = vrot.lane.b32.xlu2 %v4814_v11, %s4061_s28  ;;  %v1762_v49 = vpop.permute.xlu1 %1761  ;;  %v5033_v11 = vld [vmem:[#allocation3 + $0x72] sm:$0xff] }
 0x24c   : > { %v2316_v14 = vld [vmem:[#allocation4 + $0x10] sm:$0xff]  ;;  %v1713_v50 = vpop.permute.xlu2 %1712  ;;  %v1811_v57 = vpop.permute.xlu0 %1810 }
 0x24d   : > { %3867 = vmatmul.msk.f32.gmra.mxu1 %vm1851_vm9, %v2316_v14  ;;  %1733 = vst.msk [vmem:[#allocation4 + $0x20] sm:$0xff] %vm1728_vm7, %v1713_v50  ;;  %v3231_v50 = vld [vmem:[#allocation3 + $0x92] sm:$0xff] }
 0x24e   : > { %1782 = vst.msk [vmem:[#allocation4 + $0x20] sm:$0xff] %vm1777_vm13, %v1762_v49  ;;  %v2794_v52 = vld [vmem:[#allocation4 + $0x8] sm:$0xff] }
 0x24f   : > { %1831 = vst.msk [vmem:[#allocation4 + $0x20] sm:$0xff] %vm1826_vm2, %v1811_v57  ;;  %3878 = vmatmul.msk.f32.gmra.mxu2 %vm1851_vm9, %v2794_v52 }
 0x250   : > { %2642 = vst.msk [vmem:[#allocation4 + $0x10] sm:$0xff] %vm1639_vm11, %v4763_v51 }
 0x251   : > { %3121 = vst.msk [vmem:[#allocation4 + $0x8] sm:$0xff] %vm1639_vm11, %v4742_v13  ;;  %3200 = vrot.lane.b32.xlu1 %v4863_v40, %s4065_s25 }
 0x252   : > { %3152 = vrot.lane.b32.xlu0 %v4903_v6, %s4061_s28 }
 0x253   : > { %2198 = vrot.lane.b32.xlu2 %v5033_v11, %s4061_s28  ;;  %v2241_v37 = vpop.permute.xlu1 %2240 }
 0x254   : > { %2261 = vst.msk [vmem:[#allocation4 + $0x18] sm:$0xff] %vm1777_vm13, %v2241_v37  ;;  %v3241_v53 = vpop.permute.xlu0 %3240 }
 0x255   : > { %2309 = vst.msk [vmem:[#allocation4 + $0x18] sm:$0xff] %vm1826_vm2, %v2289_v31 }
 0x256   : > { %v1839_v42 = vld [vmem:[#allocation4 + $0x20] sm:$0xff]  ;;  %3264 = vst.msk [vmem:[#allocation4] sm:$0xff] %vm1826_vm2, %v3241_v53 }
 0x257   : > { %3857 = vmatmul.msk.f32.gmra.mxu0 %vm1851_vm9, %v1839_v42  ;;  %2166 = vst.msk [vmem:[#allocation4 + $0x20] sm:$0xff] %vm1639_vm11, %v4828_v22 }
 0x259   : > { %2248 = vrot.lane.b32.xlu1 %v4905_v9, %s4065_s25 }
 0x25a   : > { %3248 = vrot.lane.b32.xlu0 %v4966_v48, %s4064_s24 }
 0x25b   : > { %2294 = vrot.lane.b32.xlu2 %v4966_v48, %s4064_s24  ;;  %v2718_v13 = vpop.permute.xlu1 %2717 }
 0x25c   : > { %v2317_v47 = vld [vmem:[#allocation4 + $0x18] sm:$0xff]  ;;  %v2669_v24 = vpop.permute.xlu0 %2668 }
 0x25d   : > { %v1715_v2 = vpop.permute.xlu2 %1714  ;;  %3868 = vmatmul.msk.f32.gmra.mxu1 %vm1851_vm9, %v2317_v47  ;;  %v3272_v55 = vld [vmem:[#allocation4] sm:$0xff]  ;;  %2690 = vst.msk [vmem:[#allocation4 + $0x10] sm:$0xff] %vm1728_vm7, %v2669_v24 }
 0x25e   : > { %1734 = vst.msk [vmem:[#allocation4 + $0x28] sm:$0xff] %vm1728_vm7, %v1715_v2  ;;  %3953 = vmatmul.msk.f32.vlgmr.msrb.gmra.mxu3 %vm1851_vm9, %v3272_v55 }
 0x25f   : > { %2739 = vst.msk [vmem:[#allocation4 + $0x10] sm:$0xff] %vm1777_vm13, %v2718_v13 }
 0x260   : > { %2643 = vst.msk [vmem:[#allocation4 + $0x18] sm:$0xff] %vm1639_vm11, %v4783_v62 }
 0x261   : > { %2725 = vrot.lane.b32.xlu1 %v4924_v58, %s4065_s25 }
 0x262   : > { %2676 = vrot.lane.b32.xlu0 %v4939_v18, %s4061_s28 }
 0x263   : > { %2771 = vrot.lane.b32.xlu2 %v4939_v18, %s4064_s24  ;;  %v1764_v56 = vpop.permute.xlu1 %1763 }
 0x264   : > { %1783 = vst.msk [vmem:[#allocation4 + $0x28] sm:$0xff] %vm1777_vm13, %v1764_v56  ;;  %v2766_v38 = vpop.permute.xlu0 %2765 }
 0x265   : > { %v3147_v33 = vpop.permute.xlu2 %3146  ;;  %2787 = vst.msk [vmem:[#allocation4 + $0x10] sm:$0xff] %vm1826_vm2, %v2766_v38 }
 0x266   : > { %3169 = vst.msk [vmem:[#allocation4 + $0x8] sm:$0xff] %vm1728_vm7, %v3147_v33 }
 0x269   : > { %3202 = vrot.lane.b32.xlu1 %v4905_v9, %s4065_s25 }
 0x26a   : > { %3154 = vrot.lane.b32.xlu0 %v4966_v48, %s4061_s28 }
 0x26b   : > { %2200 = vrot.lane.b32.xlu2 %v5069_v0, %s4061_s28  ;;  %v3195_v1 = vpop.permute.xlu1 %3194 }
 0x26c   : > { %3217 = vst.msk [vmem:[#allocation4 + $0x8] sm:$0xff] %vm1777_vm13, %v3195_v1  ;;  %v1813_v3 = vpop.permute.xlu0 %1812  ;;  %v2795_v43 = vld [vmem:[#allocation4 + $0x10] sm:$0xff] }
 0x26d   : > { %v2195_v4 = vpop.permute.xlu2 %2194  ;;  %1832 = vst.msk [vmem:[#allocation4 + $0x28] sm:$0xff] %vm1826_vm2, %v1813_v3  ;;  %3879 = vmatmul.msk.f32.gmra.mxu2 %vm1851_vm9, %v2795_v43 }
 0x26e   : > { %2214 = vst.msk [vmem:[#allocation4 + $0x20] sm:$0xff] %vm1728_vm7, %v2195_v4 }
 0x26f   : > { %3122 = vst.msk [vmem:[#allocation4 + $0x10] sm:$0xff] %vm1639_vm11, %v4763_v51 }
 0x271   : > { %2727 = vrot.lane.b32.xlu1 %v2704_v15, %s4065_s25 }
 0x272   : > { %2678 = vrot.lane.b32.xlu0 %v5004_v44, %s4061_s28 }
 0x273   : > { %2296 = vrot.lane.b32.xlu2 %v5033_v11, %s4064_s24  ;;  %v2243_v63 = vpop.permute.xlu1 %2242 }
 0x274   : > { %2262 = vst.msk [vmem:[#allocation4 + $0x20] sm:$0xff] %vm1777_vm13, %v2243_v63  ;;  %v3243_v6 = vpop.permute.xlu0 %3242  ;;  %v1840_v60 = vld [vmem:[#allocation4 + $0x28] sm:$0xff] }
 0x275   : > { %v2291_v7 = vpop.permute.xlu2 %2290  ;;  %3265 = vst.msk [vmem:[#allocation4 + $0x8] sm:$0xff] %vm1826_vm2, %v3243_v6  ;;  %3858 = vmatmul.msk.f32.gmra.mxu0 %vm1851_vm9, %v1840_v60 }
 0x276   : > { %2310 = vst.msk [vmem:[#allocation4 + $0x20] sm:$0xff] %vm1826_vm2, %v2291_v7 }
 0x277   : > { %2167 = vst.msk [vmem:[#allocation4 + $0x28] sm:$0xff] %vm1639_vm11, %v4863_v40 }
 0x279   : > { %3204 = vrot.lane.b32.xlu1 %v4924_v58, %s4065_s25 }
 0x27a   : > { %3156 = vrot.lane.b32.xlu0 %v5033_v11, %s4061_s28 }
 0x27b   : > { %2773 = vrot.lane.b32.xlu2 %v5004_v44, %s4064_s24  ;;  %v2720_v51 = vpop.permute.xlu1 %2719 }
 0x27c   : > { %v2671_v10 = vpop.permute.xlu0 %2670  ;;  %v3273_v12 = vld [vmem:[#allocation4 + $0x8] sm:$0xff] }
 0x27d   : > { %v1717_v54 = vpop.permute.xlu2 %1716  ;;  %v2318_v32 = vld [vmem:[#allocation4 + $0x20] sm:$0xff]  ;;  %2691 = vst.msk [vmem:[#allocation4 + $0x18] sm:$0xff] %vm1728_vm7, %v2671_v10  ;;  %3954 = vmatmul.msk.f32.gmra.mxu3 %vm1851_vm9, %v3273_v12 }
 0x27e   : > { %1735 = vst.msk [vmem:[#allocation4 + $0x30] sm:$0xff] %vm1728_vm7, %v1717_v54  ;;  %3869 = vmatmul.msk.f32.gmra.mxu1 %vm1851_vm9, %v2318_v32 }
 0x27f   : > { %2740 = vst.msk [vmem:[#allocation4 + $0x18] sm:$0xff] %vm1777_vm13, %v2720_v51 }
 0x280   : > { %2644 = vst.msk [vmem:[#allocation4 + $0x20] sm:$0xff] %vm1639_vm11, %v4828_v22 }
 0x281   : > { %3206 = vrot.lane.b32.xlu1 %v2704_v15, %s4065_s25  ;;  %s5120_s25 = scalar_lea.vmem %s6256_s5, %s4027_s18 }
 0x282   : > { %3158 = vrot.lane.b32.xlu0 %v5069_v0, %s4061_s28 }
 0x283   : > { %3250 = vrot.lane.b32.xlu2 %v5033_v11, %s4064_s24  ;;  %v1766_v17 = vpop.permute.xlu1 %1765 }
 0x284   : > { %1784 = vst.msk [vmem:[#allocation4 + $0x30] sm:$0xff] %vm1777_vm13, %v1766_v17  ;;  %v2768_v22 = vpop.permute.xlu0 %2767  ;;  %v1893_v19 = vpop.f32.mrf.mxu0 }
 0x285   : > { %v3149_v18 = vpop.permute.xlu2 %3148  ;;  %2788 = vst.msk [vmem:[#allocation4 + $0x18] sm:$0xff] %vm1826_vm2, %v2768_v22  ;;  %v1894_v20 = vadd.f32 %v5112_v16, %v1893_v19 }
 0x286   : > { %3170 = vst.msk [vmem:[#allocation4 + $0x10] sm:$0xff] %vm1728_vm7, %v3149_v18 }
 0x287   : > { %v1977_v25 = vrot.slane %v1894_v20, 1  ;;  %v1978_v26 = vrot.slane %v1894_v20, 2  ;;  %2090 = vst.msk [vmem:[%s5120_s25] sm:$0x1] %vm2089_vm3, %v1894_v20  ;;  %v1979_v5 = vrot.slane %v1894_v20, 3  ;;  %v1980_v61 = vrot.slane %v1894_v20, 4 }
 0x288   : > { %v1981_v27 = vrot.slane %v1894_v20, 5  ;;  %v1982_v48 = vrot.slane %v1894_v20, 6  ;;  %v1983_v23 = vrot.slane %v1894_v20, 7  ;;  %v1939_v42 = vmul.f32 %v1894_v20, %v1894_v20 }
 0x289   : > { %2091 = vst.msk [vmem:[%s5120_s25 + $0x2] sm:$0x1] %vm2089_vm3, %v1977_v25  ;;  %v1917_v47 = vsel %vm296_vm14, %v1894_v20, 0.0 }
 0x28a   : > { %2092 = vst.msk [vmem:[%s5120_s25 + $0x4] sm:$0x1] %vm2089_vm3, %v1978_v26  ;;  %v1947_v4 = vsel %vm296_vm14, %v1939_v42, 0.0 }
 0x28b   : > { %2775 = vrot.lane.b32.xlu2 %v2752_v8, %s4064_s24  ;;  %v3197_v41 = vpop.permute.xlu1 %3196  ;;  %2093 = vst.msk [vmem:[%s5120_s25 + $0x6] sm:$0x1] %vm2089_vm3, %v1979_v5 }
 0x28c   : > { %2094 = vst.msk [vmem:[%s5120_s25 + $0x8] sm:$0x1] %vm2089_vm3, %v1980_v61  ;;  %v1815_v59 = vpop.permute.xlu0 %1814  ;;  %v2796_v39 = vld [vmem:[#allocation4 + $0x18] sm:$0xff] }
 0x28d   : > { %v2197_v29 = vpop.permute.xlu2 %2196  ;;  %2095 = vst.msk [vmem:[%s5120_s25 + $0xa] sm:$0x1] %vm2089_vm3, %v1981_v27  ;;  %3880 = vmatmul.msk.f32.gmra.mxu2 %vm1851_vm9, %v2796_v39 }
 0x28e   : > { %2096 = vst.msk [vmem:[%s5120_s25 + $0xc] sm:$0x1] %vm2089_vm3, %v1982_v48 }
 0x28f   : > { %2097 = vst.msk [vmem:[%s5120_s25 + $0xe] sm:$0x1] %vm2089_vm3, %v1983_v23  ;;  %v2372_v31 = vpop.f32.mrf.mxu1  ;;  %v5239_v23 = vld [vmem:[%s6255_s4] ss:$0 sm:$0xff] }
 0x290   : > { %3218 = vst.msk [vmem:[#allocation4 + $0x10] sm:$0xff] %vm1777_vm13, %v3197_v41  ;;  %v5151_v21 = vadd.f32 %v5142_v30, %v2372_v31 }
 0x291   : > { %1833 = vst.msk [vmem:[#allocation4 + $0x30] sm:$0xff] %vm1826_vm2, %v1815_v59 }
 0x292   : > { %2215 = vst.msk [vmem:[#allocation4 + $0x28] sm:$0xff] %vm1728_vm7, %v2197_v29  ;;  %v2456_v34 = vrot.slane %v5151_v21, 1  ;;  %v2457_v35 = vrot.slane %v5151_v21, 2  ;;  %v2458_v36 = vrot.slane %v5151_v21, 3  ;;  %v2459_v44 = vrot.slane %v5151_v21, 4 }
 0x293   : > { %3252 = vrot.lane.b32.xlu2 %v5069_v0, %s4064_s24  ;;  %v2245_v28 = vpop.permute.xlu1 %2244  ;;  %2568 = vst.msk [vmem:[%s5120_s25 + $0x1] sm:$0x1] %vm2089_vm3, %v5151_v21  ;;  %v2460_v46 = vrot.slane %v5151_v21, 5  ;;  %v2461_v49 = vrot.slane %v5151_v21, 6  ;;  %v2462_v57 = vrot.slane %v5151_v21, 7  ;;  %v2418_v10 = vmul.f32 %v5151_v21, %v5151_v21 }
 0x294   : > { %2263 = vst.msk [vmem:[#allocation4 + $0x28] sm:$0xff] %vm1777_vm13, %v2245_v28  ;;  %v3245_v45 = vpop.permute.xlu0 %3244  ;;  %v2396_v18 = vsel %vm296_vm14, %v5151_v21, 0.0 }
 0x295   : > { %2569 = vst.msk [vmem:[%s5120_s25 + $0x3] sm:$0x1] %vm2089_vm3, %v2456_v34  ;;  %v2293_v14 = vpop.permute.xlu2 %2292  ;;  %v2426_v26 = vsel %vm296_vm14, %v2418_v10, 0.0 }
 0x296   : > { %2570 = vst.msk [vmem:[%s5120_s25 + $0x5] sm:$0x1] %vm2089_vm3, %v2457_v35 }
 0x297   : > { %2571 = vst.msk [vmem:[%s5120_s25 + $0x7] sm:$0x1] %vm2089_vm3, %v2458_v36 }
 0x298   : > { %2572 = vst.msk [vmem:[%s5120_s25 + $0x9] sm:$0x1] %vm2089_vm3, %v2459_v44  ;;  %v1841_v52 = vld [vmem:[#allocation4 + $0x30] sm:$0xff] }
 0x299   : > { %2573 = vst.msk [vmem:[%s5120_s25 + $0xb] sm:$0x1] %vm2089_vm3, %v2460_v46  ;;  %3859 = vmatmul.msk.f32.gmra.mxu0 %vm1851_vm9, %v1841_v52 }
 0x29a   : > { %2574 = vst.msk [vmem:[%s5120_s25 + $0xd] sm:$0x1] %vm2089_vm3, %v2461_v49 }
 0x29b   : > { %3254 = vrot.lane.b32.xlu2 %v3231_v50, %s4064_s24  ;;  %2575 = vst.msk [vmem:[%s5120_s25 + $0xf] sm:$0x1] %vm2089_vm3, %v2462_v57  ;;  %v2722_v11 = vpop.permute.xlu1 %2721 }
 0x29c   : > { %3266 = vst.msk [vmem:[#allocation4 + $0x10] sm:$0xff] %vm1826_vm2, %v3245_v45  ;;  %v2673_v37 = vpop.permute.xlu0 %2672 }
 0x29d   : > { %v1896_v53 = vpop.f32.mrf.mxu0  ;;  %2311 = vst.msk [vmem:[#allocation4 + $0x28] sm:$0xff] %vm1826_vm2, %v2293_v14  ;;  %v1719_v33 = vpop.permute.xlu2 %1718 }
 0x29e   : > { %v1897_v13 = vadd.f32 %v5112_v16, %v1896_v53  ;;  %2692 = vst.msk [vmem:[#allocation4 + $0x20] sm:$0xff] %vm1728_vm7, %v2673_v37 }
 0x29f   : > { %2741 = vst.msk [vmem:[#allocation4 + $0x20] sm:$0xff] %vm1777_vm13, %v2722_v11 }
 0x2a0   : > { %v1918_v2 = vsel %vm296_vm14, %v1897_v13, 0.0  ;;  %v1940_v24 = vmul.f32 %v1897_v13, %v1897_v13  ;;  %v1984_v55 = vrot.slane %v1897_v13, 1  ;;  %v1985_v56 = vrot.slane %v1897_v13, 2  ;;  %2098 = vst.msk [vmem:[%s5120_s25 + $0x20] sm:$0x1] %vm2089_vm3, %v1897_v13 }
 0x2a1   : > { %v5190_v38 = vadd.f32 %v1918_v2, %v1917_v47  ;;  %v1986_v0 = vrot.slane %v1897_v13, 3  ;;  %v1987_v1 = vrot.slane %v1897_v13, 4  ;;  %v1988_v43 = vrot.slane %v1897_v13, 5  ;;  %1736 = vst.msk [vmem:[#allocation4 + $0x38] sm:$0xff] %vm1728_vm7, %v1719_v33 }
 0x2a2   : > { %v1948_v3 = vsel %vm296_vm14, %v1940_v24, 0.0  ;;  %2099 = vst.msk [vmem:[%s5120_s25 + $0x22] sm:$0x1] %vm2089_vm3, %v1984_v55  ;;  %v1989_v63 = vrot.slane %v1897_v13, 6  ;;  %v1990_v7 = vrot.slane %v1897_v13, 7 }
 0x2a3   : > { %v5198_v15 = vadd.f32 %v1948_v3, %v1947_v4  ;;  %2100 = vst.msk [vmem:[%s5120_s25 + $0x24] sm:$0x1] %vm2089_vm3, %v1985_v56  ;;  %v3274_v6 = vld [vmem:[#allocation4 + $0x10] sm:$0xff]  ;;  %v1768_v54 = vpop.permute.xlu1 %1767 }
 0x2a4   : > { %2101 = vst.msk [vmem:[%s5120_s25 + $0x26] sm:$0x1] %vm2089_vm3, %v1986_v0  ;;  %3955 = vmatmul.msk.f32.gmra.mxu3 %vm1851_vm9, %v3274_v6  ;;  %v2319_v60 = vld [vmem:[#allocation4 + $0x28] sm:$0xff]  ;;  %v2770_v51 = vpop.permute.xlu0 %2769 }
 0x2a5   : > { %2102 = vst.msk [vmem:[%s5120_s25 + $0x28] sm:$0x1] %vm2089_vm3, %v1987_v1  ;;  %3870 = vmatmul.msk.f32.gmra.mxu1 %vm1851_vm9, %v2319_v60  ;;  %v3151_v17 = vpop.permute.xlu2 %3150 }
 0x2a6   : > { %2103 = vst.msk [vmem:[%s5120_s25 + $0x2a] sm:$0x1] %vm2089_vm3, %v1988_v43 }
 0x2a7   : > { %2104 = vst.msk [vmem:[%s5120_s25 + $0x2c] sm:$0x1] %vm2089_vm3, %v1989_v63 }
 0x2a8   : > { %2105 = vst.msk [vmem:[%s5120_s25 + $0x2e] sm:$0x1] %vm2089_vm3, %v1990_v7  ;;  %v2375_v32 = vpop.f32.mrf.mxu1 }
 0x2a9   : > { %v2376_v12 = vadd.f32 %v5142_v30, %v2375_v32  ;;  %1785 = vst.msk [vmem:[#allocation4 + $0x38] sm:$0xff] %vm1777_vm13, %v1768_v54 }
 0x2aa   : > { %2789 = vst.msk [vmem:[#allocation4 + $0x20] sm:$0xff] %vm1826_vm2, %v2770_v51 }
 0x2ab   : > { %v2397_v22 = vsel %vm296_vm14, %v2376_v12, 0.0  ;;  %v2419_v19 = vmul.f32 %v2376_v12, %v2376_v12  ;;  %v2463_v20 = vrot.slane %v2376_v12, 1  ;;  %3123 = vst.msk [vmem:[#allocation4 + $0x18] sm:$0xff] %vm1639_vm11, %v4783_v62  ;;  %v2464_v25 = vrot.slane %v2376_v12, 2  ;;  %v3199_v31 = vpop.permute.xlu1 %3198 }
 0x2ac   : > { %v5225_v8 = vadd.f32 %v2397_v22, %v2396_v18  ;;  %3171 = vst.msk [vmem:[#allocation4 + $0x18] sm:$0xff] %vm1728_vm7, %v3151_v17  ;;  %v2465_v61 = vrot.slane %v2376_v12, 3  ;;  %v2466_v48 = vrot.slane %v2376_v12, 4  ;;  %v2467_v62 = vrot.slane %v2376_v12, 5  ;;  %v1817_v41 = vpop.permute.xlu0 %1816 }
 0x2ad   : > { %v2427_v5 = vsel %vm296_vm14, %v2419_v19, 0.0  ;;  %2576 = vst.msk [vmem:[%s5120_s25 + $0x21] sm:$0x1] %vm2089_vm3, %v2376_v12  ;;  %v2468_v29 = vrot.slane %v2376_v12, 6  ;;  %v2469_v59 = vrot.slane %v2376_v12, 7  ;;  %v2199_v34 = vpop.permute.xlu2 %2198 }
 0x2ae   : > { %v5230_v27 = vadd.f32 %v2427_v5, %v2426_v26  ;;  %2577 = vst.msk [vmem:[%s5120_s25 + $0x23] sm:$0x1] %vm2089_vm3, %v2463_v20  ;;  %v3116_v26 = vld [vmem:[#allocation3 + $0x51] sm:$0xff] }
 0x2af   : > { %2578 = vst.msk [vmem:[%s5120_s25 + $0x25] sm:$0x1] %vm2089_vm3, %v2464_v25 }
 0x2b0   : > { %2579 = vst.msk [vmem:[%s5120_s25 + $0x27] sm:$0x1] %vm2089_vm3, %v2465_v61  ;;  %v2851_v39 = vpop.f32.mrf.mxu2 }
 0x2b1   : > { %2580 = vst.msk [vmem:[%s5120_s25 + $0x29] sm:$0x1] %vm2089_vm3, %v2466_v48  ;;  %v2797_v21 = vld [vmem:[#allocation4 + $0x20] sm:$0xff]  ;;  %v5251_v28 = vadd.f32 %v5239_v23, %v2851_v39 }
 0x2b2   : > { %2581 = vst.msk [vmem:[%s5120_s25 + $0x2b] sm:$0x1] %vm2089_vm3, %v2467_v62  ;;  %3881 = vmatmul.msk.f32.gmra.mxu2 %vm1851_vm9, %v2797_v21 }
 0x2b3   : > { %2582 = vst.msk [vmem:[%s5120_s25 + $0x2d] sm:$0x1] %vm2089_vm3, %v2468_v29  ;;  %v2935_v35 = vrot.slane %v5251_v28, 1  ;;  %v2936_v36 = vrot.slane %v5251_v28, 2  ;;  %v2937_v44 = vrot.slane %v5251_v28, 3  ;;  %v2938_v46 = vrot.slane %v5251_v28, 4  ;;  %v2247_v50 = vpop.permute.xlu1 %2246 }
 0x2b4   : > { %2583 = vst.msk [vmem:[%s5120_s25 + $0x2f] sm:$0x1] %vm2089_vm3, %v2469_v59  ;;  %v3247_v45 = vpop.permute.xlu0 %3246  ;;  %v2939_v14 = vrot.slane %v5251_v28, 5  ;;  %v2940_v49 = vrot.slane %v5251_v28, 6  ;;  %v2941_v57 = vrot.slane %v5251_v28, 7  ;;  %v2875_v39 = vsel %vm296_vm14, %v5251_v28, 0.0 }
 0x2b5   : > { %3219 = vst.msk [vmem:[#allocation4 + $0x18] sm:$0xff] %vm1777_vm13, %v3199_v31  ;;  %v2295_v53 = vpop.permute.xlu2 %2294 }
 0x2b6   : > { %1834 = vst.msk [vmem:[#allocation4 + $0x38] sm:$0xff] %vm1826_vm2, %v1817_v41 }
 0x2b7   : > { %2168 = vst.msk [vmem:[#allocation4 + $0x30] sm:$0xff] %vm1639_vm11, %v4905_v9 }
 0x2b8   : > { %2216 = vst.msk [vmem:[#allocation4 + $0x30] sm:$0xff] %vm1728_vm7, %v2199_v34 }
 0x2b9   : > { %3885 = vst.msk [vmem:[%s5120_s25 + $0x10] sm:$0x1] %vm2089_vm3, %v5251_v28 }
 0x2ba   : > { %3886 = vst.msk [vmem:[%s5120_s25 + $0x12] sm:$0x1] %vm2089_vm3, %v2935_v35 }
 0x2bb   : > { %3887 = vst.msk [vmem:[%s5120_s25 + $0x14] sm:$0x1] %vm2089_vm3, %v2936_v36  ;;  %v2724_v33 = vpop.permute.xlu1 %2723 }
 0x2bc   : > { %3888 = vst.msk [vmem:[%s5120_s25 + $0x16] sm:$0x1] %vm2089_vm3, %v2937_v44  ;;  %v2675_v2 = vpop.permute.xlu0 %2674 }
 0x2bd   : > { %3889 = vst.msk [vmem:[%s5120_s25 + $0x18] sm:$0x1] %vm2089_vm3, %v2938_v46  ;;  %v1842_v52 = vld [vmem:[#allocation4 + $0x38] sm:$0xff]  ;;  %v2772_v17 = vpop.permute.xlu2 %2771 }
 0x2be   : > { %3890 = vst.msk [vmem:[%s5120_s25 + $0x1a] sm:$0x1] %vm2089_vm3, %v2939_v14  ;;  %3860 = vmatmul.msk.f32.gmra.mxu0 %vm1851_vm9, %v1842_v52 }
 0x2bf   : > { %v1899_v11 = vpop.f32.mrf.mxu0  ;;  %3891 = vst.msk [vmem:[%s5120_s25 + $0x1c] sm:$0x1] %vm2089_vm3, %v2940_v49 }
 0x2c0   : > { %v1900_v37 = vadd.f32 %v5112_v16, %v1899_v11  ;;  %3892 = vst.msk [vmem:[%s5120_s25 + $0x1e] sm:$0x1] %vm2089_vm3, %v2941_v57 }
 0x2c1   : > { %2264 = vst.msk [vmem:[#allocation4 + $0x30] sm:$0xff] %vm1777_vm13, %v2247_v50 }
 0x2c2   : > { %v1920_v42 = vsel %vm296_vm14, %v1900_v37, 0.0  ;;  %v1941_v13 = vmul.f32 %v1900_v37, %v1900_v37  ;;  %3267 = vst.msk [vmem:[#allocation4 + $0x18] sm:$0xff] %vm1826_vm2, %v3247_v45  ;;  %v1991_v56 = vrot.slane %v1900_v37, 1  ;;  %v1993_v1 = vrot.slane %v1900_v37, 3 }
 0x2c3   : > { %v1921_v47 = vadd.f32 %v1920_v42, %v5190_v38  ;;  %2312 = vst.msk [vmem:[#allocation4 + $0x30] sm:$0xff] %vm1826_vm2, %v2295_v53  ;;  %v1992_v38 = vrot.slane %v1900_v37, 2  ;;  %v1994_v3 = vrot.slane %v1900_v37, 4  ;;  %v1995_v43 = vrot.slane %v1900_v37, 5  ;;  %v3201_v62 = vpop.permute.xlu1 %3200 }
 0x2c4   : > { %v1950_v24 = vsel %vm296_vm14, %v1941_v13, 0.0  ;;  %2645 = vst.msk [vmem:[#allocation4 + $0x28] sm:$0xff] %vm1639_vm11, %v4863_v40  ;;  %v1996_v7 = vrot.slane %v1900_v37, 6  ;;  %v1997_v51 = vrot.slane %v1900_v37, 7  ;;  %v3153_v20 = vpop.permute.xlu0 %3152 }
 0x2c5   : > { %v1951_v55 = vadd.f32 %v1950_v24, %v5198_v15  ;;  %2693 = vst.msk [vmem:[#allocation4 + $0x28] sm:$0xff] %vm1728_vm7, %v2675_v2 }
 0x2c6   : > { %2742 = vst.msk [vmem:[#allocation4 + $0x28] sm:$0xff] %vm1777_vm13, %v2724_v33 }
 0x2c7   : > { %v1902_v0 = vpop.f32.mrf.mxu0  ;;  %2106 = vst.msk [vmem:[%s5120_s25 + $0x40] sm:$0x1] %vm2089_vm3, %v1900_v37  ;;  %v2201_v37 = vpop.permute.xlu2 %2200 }
 0x2c8   : > { %v5300_v4 = vadd.f32 %v5112_v16, %v1902_v0  ;;  %2107 = vst.msk [vmem:[%s5120_s25 + $0x42] sm:$0x1] %vm2089_vm3, %v1991_v56 }
 0x2c9   : > { %2108 = vst.msk [vmem:[%s5120_s25 + $0x44] sm:$0x1] %vm2089_vm3, %v1992_v38  ;;  %v3275_v6 = vld [vmem:[#allocation4 + $0x18] sm:$0xff] }
 0x2ca   : > { %v1922_v40 = vsel %vm296_vm14, %v5300_v4, 0.0  ;;  %v1942_v15 = vmul.f32 %v5300_v4, %v5300_v4  ;;  %v2378_v63 = vpop.f32.mrf.mxu1  ;;  %2109 = vst.msk [vmem:[%s5120_s25 + $0x46] sm:$0x1] %vm2089_vm3, %v1993_v1  ;;  %3956 = vmatmul.msk.f32.gmra.mxu3 %vm1851_vm9, %v3275_v6  ;;  %v2320_v54 = vld [vmem:[#allocation4 + $0x30] sm:$0xff]  ;;  %v1998_v61 = vrot.slane %v5300_v4, 1  ;;  %v1999_v41 = vrot.slane %v5300_v4, 2 }
 0x2cb   : > { %v1923_v60 = vadd.f32 %v1922_v40, %v1921_v47  ;;  %v5317_v10 = vadd.f32 %v5142_v30, %v2378_v63  ;;  %2110 = vst.msk [vmem:[%s5120_s25 + $0x48] sm:$0x1] %vm2089_vm3, %v1994_v3  ;;  %3871 = vmatmul.msk.f32.gmra.mxu1 %vm1851_vm9, %v2320_v54  ;;  %v2001_v31 = vrot.slane %v5300_v4, 4  ;;  %v2002_v35 = vrot.slane %v5300_v4, 5 }
 0x2cc   : > { %v1952_v32 = vsel %vm296_vm14, %v1942_v15, 0.0  ;;  %2111 = vst.msk [vmem:[%s5120_s25 + $0x4a] sm:$0x1] %vm2089_vm3, %v1995_v43  ;;  %v2003_v44 = vrot.slane %v5300_v4, 6  ;;  %v2004_v14 = vrot.slane %v5300_v4, 7  ;;  %v2249_v15 = vpop.permute.xlu1 %2248  ;;  %v3249_v63 = vpop.permute.xlu0 %3248 }
 0x2cd   : > { %v1953_v12 = vadd.f32 %v1952_v32, %v1951_v55  ;;  %v2399_v18 = vsel %vm296_vm14, %v5317_v10, 0.0  ;;  %v2420_v22 = vmul.f32 %v5317_v10, %v5317_v10  ;;  %2112 = vst.msk [vmem:[%s5120_s25 + $0x4c] sm:$0x1] %vm2089_vm3, %v1996_v7  ;;  %v2470_v42 = vrot.slane %v5317_v10, 1 }
 0x2ce   : > { %v2400_v19 = vadd.f32 %v2399_v18, %v5225_v8  ;;  %2113 = vst.msk [vmem:[%s5120_s25 + $0x4e] sm:$0x1] %vm2089_vm3, %v1997_v51  ;;  %v2897_v8 = vmul.f32 %v5251_v28, %v5251_v28  ;;  %v2471_v47 = vrot.slane %v5317_v10, 2  ;;  %v2472_v24 = vrot.slane %v5317_v10, 3 }
 0x2cf   : > { %v2429_v25 = vsel %vm296_vm14, %v2420_v22, 0.0  ;;  %2790 = vst.msk [vmem:[#allocation4 + $0x28] sm:$0xff] %vm1826_vm2, %v2772_v17  ;;  %v2473_v56 = vrot.slane %v5317_v10, 4  ;;  %v2474_v33 = vrot.slane %v5317_v10, 5  ;;  %v2475_v1 = vrot.slane %v5317_v10, 6  ;;  %v2297_v7 = vpop.permute.xlu2 %2296 }
 0x2d0   : > { %v2430_v5 = vadd.f32 %v2429_v25, %v5230_v27  ;;  %3124 = vst.msk [vmem:[#allocation4 + $0x20] sm:$0xff] %vm1639_vm11, %v3116_v26  ;;  %v2000_v27 = vrot.slane %v5300_v4, 3  ;;  %v2905_v28 = vsel %vm296_vm14, %v2897_v8, 0.0  ;;  %v2476_v3 = vrot.slane %v5317_v10, 7 }
 0x2d1   : > { %3172 = vst.msk [vmem:[#allocation4 + $0x20] sm:$0xff] %vm1728_vm7, %v3153_v20 }
 0x2d2   : > { %v2854_v48 = vpop.f32.mrf.mxu2  ;;  %3220 = vst.msk [vmem:[#allocation4 + $0x20] sm:$0xff] %vm1777_vm13, %v3201_v62 }
 0x2d3   : > { %v5343_v29 = vadd.f32 %v5239_v23, %v2854_v48  ;;  %2114 = vst.msk [vmem:[%s5120_s25 + $0x60] sm:$0x1] %vm2089_vm3, %v5300_v4 }
 0x2d4   : > { %v1905_v59 = vpop.f32.mrf.mxu0  ;;  %2115 = vst.msk [vmem:[%s5120_s25 + $0x62] sm:$0x1] %vm2089_vm3, %v1998_v61  ;;  %v2677_v48 = vpop.permute.xlu0 %2676 }
 0x2d5   : > { %v2876_v21 = vsel %vm296_vm14, %v5343_v29, 0.0  ;;  %v2898_v34 = vmul.f32 %v5343_v29, %v5343_v29  ;;  %2116 = vst.msk [vmem:[%s5120_s25 + $0x64] sm:$0x1] %vm2089_vm3, %v1999_v41  ;;  %v5368_v46 = vadd.f32 %v5112_v16, %v1905_v59  ;;  %v2942_v6 = vrot.slane %v5343_v29, 1  ;;  %v2726_v62 = vpop.permute.xlu1 %2725 }
 0x2d6   : > { %v5360_v36 = vadd.f32 %v2876_v21, %v2875_v39  ;;  %2117 = vst.msk [vmem:[%s5120_s25 + $0x66] sm:$0x1] %vm2089_vm3, %v2000_v27  ;;  %v2798_v49 = vld [vmem:[#allocation4 + $0x28] sm:$0xff]  ;;  %v2944_v51 = vrot.slane %v5343_v29, 3  ;;  %v2945_v54 = vrot.slane %v5343_v29, 4  ;;  %v2946_v32 = vrot.slane %v5343_v29, 5 }
 0x2d7   : > { %v2906_v45 = vsel %vm296_vm14, %v2898_v34, 0.0  ;;  %2118 = vst.msk [vmem:[%s5120_s25 + $0x68] sm:$0x1] %vm2089_vm3, %v2001_v31  ;;  %3882 = vmatmul.msk.f32.gmra.mxu2 %vm1851_vm9, %v2798_v49  ;;  %v1924_v57 = vsel %vm296_vm14, %v5368_v46, 0.0  ;;  %v1943_v52 = vmul.f32 %v5368_v46, %v5368_v46  ;;  %v2005_v17 = vrot.slane %v5368_v46, 1  ;;  %v2774_v8 = vpop.permute.xlu2 %2773 }
 0x2d8   : > { %v5373_v50 = vadd.f32 %v2906_v45, %v2905_v28  ;;  %2119 = vst.msk [vmem:[%s5120_s25 + $0x6a] sm:$0x1] %vm2089_vm3, %v2002_v35  ;;  %v5384_v11 = vadd.f32 %v1924_v57, %v1923_v60  ;;  %v2943_v60 = vrot.slane %v5343_v29, 2  ;;  %v2006_v22 = vrot.slane %v5368_v46, 2  ;;  %v5506_v21 = vld [vmem:[%s6255_s4] ss:$0 sm:$0xff] }
 0x2d9   : > { %2120 = vst.msk [vmem:[%s5120_s25 + $0x6c] sm:$0x1] %vm2089_vm3, %v2003_v44  ;;  %v1954_v53 = vsel %vm296_vm14, %v1943_v52, 0.0  ;;  %v2007_v20 = vrot.slane %v5368_v46, 3  ;;  %v2008_v25 = vrot.slane %v5368_v46, 4  ;;  %v2009_v26 = vrot.slane %v5368_v46, 5 }
 0x2da   : > { %2121 = vst.msk [vmem:[%s5120_s25 + $0x6e] sm:$0x1] %vm2089_vm3, %v2004_v14  ;;  %v5392_v13 = vadd.f32 %v1954_v53, %v1953_v12  ;;  %v2381_v2 = vpop.f32.mrf.mxu1  ;;  %v2948_v12 = vrot.slane %v5343_v29, 7  ;;  %v2011_v61 = vrot.slane %v5368_v46, 7 }
 0x2db   : > { %2169 = vst.msk [vmem:[#allocation4 + $0x38] sm:$0xff] %vm1639_vm11, %v4924_v58  ;;  %v5400_v55 = vadd.f32 %v5142_v30, %v2381_v2 }
 0x2dc   : > { %2217 = vst.msk [vmem:[#allocation4 + $0x38] sm:$0xff] %vm1728_vm7, %v2201_v37  ;;  %v3155_v35 = vpop.permute.xlu0 %3154 }
 0x2dd   : > { %2584 = vst.msk [vmem:[%s5120_s25 + $0x41] sm:$0x1] %vm2089_vm3, %v5317_v10  ;;  %v2401_v38 = vsel %vm296_vm14, %v5400_v55, 0.0  ;;  %v2421_v0 = vmul.f32 %v5400_v55, %v5400_v55  ;;  %v2947_v10 = vrot.slane %v5343_v29, 6  ;;  %v2477_v41 = vrot.slane %v5400_v55, 1  ;;  %v3203_v53 = vpop.permute.xlu1 %3202 }
 0x2de   : > { %2585 = vst.msk [vmem:[%s5120_s25 + $0x43] sm:$0x1] %vm2089_vm3, %v2470_v42  ;;  %v5416_v4 = vadd.f32 %v2401_v38, %v2400_v19  ;;  %v2479_v27 = vrot.slane %v5400_v55, 3  ;;  %v2480_v39 = vrot.slane %v5400_v55, 4  ;;  %v2481_v31 = vrot.slane %v5400_v55, 5 }
 0x2df   : > { %2586 = vst.msk [vmem:[%s5120_s25 + $0x45] sm:$0x1] %vm2089_vm3, %v2471_v47  ;;  %v2431_v43 = vsel %vm296_vm14, %v2421_v0, 0.0  ;;  %v2482_v34 = vrot.slane %v5400_v55, 6  ;;  %v3251_v57 = vpop.permute.xlu2 %3250 }
 0x2e0   : > { %2587 = vst.msk [vmem:[%s5120_s25 + $0x47] sm:$0x1] %vm2089_vm3, %v2472_v24  ;;  %v5424_v40 = vadd.f32 %v2431_v43, %v2430_v5  ;;  %v2010_v5 = vrot.slane %v5368_v46, 6 }
 0x2e1   : > { %2588 = vst.msk [vmem:[%s5120_s25 + $0x49] sm:$0x1] %vm2089_vm3, %v2473_v56  ;;  %v3330_v28 = vpop.f32.mrf.mxu3 }
 0x2e2   : > { %2589 = vst.msk [vmem:[%s5120_s25 + $0x4b] sm:$0x1] %vm2089_vm3, %v2474_v33  ;;  %v3331_v42 = vadd.f32 %v5506_v21, %v3330_v28 }
 0x2e3   : > { %2590 = vst.msk [vmem:[%s5120_s25 + $0x4d] sm:$0x1] %vm2089_vm3, %v2475_v1 }
 0x2e4   : > { %2591 = vst.msk [vmem:[%s5120_s25 + $0x4f] sm:$0x1] %vm2089_vm3, %v2476_v3  ;;  %v3414_v33 = vrot.slane %v3331_v42, 1  ;;  %v3415_v0 = vrot.slane %v3331_v42, 2  ;;  %v3417_v1 = vrot.slane %v3331_v42, 4  ;;  %v2679_v3 = vpop.permute.xlu0 %2678  ;;  %v3418_v43 = vrot.slane %v3331_v42, 5 }
 0x2e5   : > { %2265 = vst.msk [vmem:[#allocation4 + $0x38] sm:$0xff] %vm1777_vm13, %v2249_v15  ;;  %v3419_v15 = vrot.slane %v3331_v42, 6 }
 0x2e6   : > { %3268 = vst.msk [vmem:[#allocation4 + $0x20] sm:$0xff] %vm1826_vm2, %v3249_v63  ;;  %v3420_v63 = vrot.slane %v3331_v42, 7 }
 0x2e7   : > { %2313 = vst.msk [vmem:[#allocation4 + $0x38] sm:$0xff] %vm1826_vm2, %v2297_v7  ;;  %v2728_v7 = vpop.permute.xlu1 %2727 }
 0x2e8   : > { %3893 = vst.msk [vmem:[%s5120_s25 + $0x30] sm:$0x1] %vm2089_vm3, %v5343_v29  ;;  %v2478_v29 = vrot.slane %v5400_v55, 2 }
 0x2e9   : > { %3894 = vst.msk [vmem:[%s5120_s25 + $0x32] sm:$0x1] %vm2089_vm3, %v2942_v6 }
 0x2ea   : > { %3895 = vst.msk [vmem:[%s5120_s25 + $0x34] sm:$0x1] %vm2089_vm3, %v2943_v60 }
 0x2eb   : > { %3896 = vst.msk [vmem:[%s5120_s25 + $0x36] sm:$0x1] %vm2089_vm3, %v2944_v51 }
 0x2ec   : > { %3897 = vst.msk [vmem:[%s5120_s25 + $0x38] sm:$0x1] %vm2089_vm3, %v2945_v54 }
 0x2ed   : > { %3898 = vst.msk [vmem:[%s5120_s25 + $0x3a] sm:$0x1] %vm2089_vm3, %v2946_v32  ;;  %v3276_v18 = vld [vmem:[#allocation4 + $0x20] sm:$0xff] }
 0x2ee   : > { %3899 = vst.msk [vmem:[%s5120_s25 + $0x3c] sm:$0x1] %vm2089_vm3, %v2947_v10  ;;  %3957 = vmatmul.msk.f32.gmra.mxu3 %vm1851_vm9, %v3276_v18  ;;  %v2321_v19 = vld [vmem:[#allocation4 + $0x38] sm:$0xff]  ;;  %v3157_v18 = vpop.permute.xlu0 %3156 }
 0x2ef   : > { %3900 = vst.msk [vmem:[%s5120_s25 + $0x3e] sm:$0x1] %vm2089_vm3, %v2948_v12  ;;  %3872 = vmatmul.msk.f32.gmra.mxu1 %vm1851_vm9, %v2321_v19 }
 0x2f0   : > { %2122 = vst.msk [vmem:[%s5120_s25 + $0x80] sm:$0x1] %vm2089_vm3, %v5368_v46  ;;  %v2857_v59 = vpop.f32.mrf.mxu2  ;;  %v2483_v46 = vrot.slane %v5400_v55, 7 }
 0x2f1   : > { %2123 = vst.msk [vmem:[%s5120_s25 + $0x82] sm:$0x1] %vm2089_vm3, %v2005_v17 }
 0x2f2   : > { %2124 = vst.msk [vmem:[%s5120_s25 + $0x84] sm:$0x1] %vm2089_vm3, %v2006_v22  ;;  %v1908_v49 = vpop.f32.mrf.mxu0  ;;  %v3118_v22 = vld [vmem:[#allocation3 + $0x71] sm:$0xff] }
 0x2f3   : > { %2125 = vst.msk [vmem:[%s5120_s25 + $0x86] sm:$0x1] %vm2089_vm3, %v2007_v20  ;;  %v5525_v37 = vadd.f32 %v5112_v16, %v1908_v49  ;;  %v3376_v20 = vmul.f32 %v3331_v42, %v3331_v42 }
 0x2f4   : > { %2126 = vst.msk [vmem:[%s5120_s25 + $0x88] sm:$0x1] %vm2089_vm3, %v2008_v25  ;;  %v3205_v25 = vpop.permute.xlu1 %3204 }
 0x2f5   : > { %2127 = vst.msk [vmem:[%s5120_s25 + $0x8a] sm:$0x1] %vm2089_vm3, %v2009_v26  ;;  %v1926_v2 = vsel %vm296_vm14, %v5525_v37, 0.0  ;;  %v1944_v24 = vmul.f32 %v5525_v37, %v5525_v37  ;;  %v3354_v26 = vsel %vm296_vm14, %v3331_v42, 0.0 }
 0x2f6   : > { %2128 = vst.msk [vmem:[%s5120_s25 + $0x8c] sm:$0x1] %vm2089_vm3, %v2010_v5  ;;  %v5543_v56 = vadd.f32 %v1926_v2, %v5384_v11  ;;  %v3416_v11 = vrot.slane %v3331_v42, 3  ;;  %v2016_v2 = vrot.slane %v5525_v37, 5 }
 0x2f7   : > { %2129 = vst.msk [vmem:[%s5120_s25 + $0x8e] sm:$0x1] %vm2089_vm3, %v2011_v61 }
 0x2f8   : > { %2646 = vst.msk [vmem:[#allocation4 + $0x30] sm:$0xff] %vm1639_vm11, %v4905_v9  ;;  %v5498_v9 = vadd.f32 %v5239_v23, %v2857_v59 }
 0x2f9   : > { %2694 = vst.msk [vmem:[#allocation4 + $0x30] sm:$0xff] %vm1728_vm7, %v2677_v48 }
 0x2fa   : > { %2743 = vst.msk [vmem:[#allocation4 + $0x30] sm:$0xff] %vm1777_vm13, %v2726_v62  ;;  %v2878_v44 = vsel %vm296_vm14, %v5498_v9, 0.0  ;;  %v2899_v45 = vmul.f32 %v5498_v9, %v5498_v9  ;;  %v2950_v5 = vrot.slane %v5498_v9, 2  ;;  %v2953_v59 = vrot.slane %v5498_v9, 5 }
 0x2fb   : > { %2791 = vst.msk [vmem:[#allocation4 + $0x30] sm:$0xff] %vm1826_vm2, %v2774_v8  ;;  %v5519_v14 = vadd.f32 %v2878_v44, %v5360_v36  ;;  %v2384_v6 = vpop.f32.mrf.mxu1  ;;  %v2951_v8 = vrot.slane %v5498_v9, 3 }
 0x2fc   : > { %2592 = vst.msk [vmem:[%s5120_s25 + $0x61] sm:$0x1] %vm2089_vm3, %v5400_v55  ;;  %v2908_v52 = vsel %vm296_vm14, %v2899_v45, 0.0  ;;  %v3117_v55 = vld [vmem:[#allocation3 + $0x61] sm:$0xff]  ;;  %v5564_v60 = vadd.f32 %v5142_v30, %v2384_v6  ;;  %v2012_v45 = vrot.slane %v5525_v37, 1 }
 0x2fd   : > { %2593 = vst.msk [vmem:[%s5120_s25 + $0x63] sm:$0x1] %vm2089_vm3, %v2477_v41  ;;  %v5531_v47 = vadd.f32 %v2908_v52, %v5373_v50  ;;  %v1956_v50 = vsel %vm296_vm14, %v1944_v24, 0.0  ;;  %v3384_v41 = vsel %vm296_vm14, %v3376_v20, 0.0  ;;  %v2014_v52 = vrot.slane %v5525_v37, 3 }
 0x2fe   : > { %2594 = vst.msk [vmem:[%s5120_s25 + $0x65] sm:$0x1] %vm2089_vm3, %v2478_v29  ;;  %v5549_v38 = vadd.f32 %v1956_v50, %v5392_v13  ;;  %v2776_v13 = vpop.permute.xlu2 %2775  ;;  %v2403_v54 = vsel %vm296_vm14, %v5564_v60, 0.0  ;;  %v2422_v32 = vmul.f32 %v5564_v60, %v5564_v60  ;;  %v2952_v29 = vrot.slane %v5498_v9, 4 }
 0x2ff   : > { %2595 = vst.msk [vmem:[%s5120_s25 + $0x67] sm:$0x1] %vm2089_vm3, %v2479_v27  ;;  %v5578_v10 = vadd.f32 %v2403_v54, %v5416_v4  ;;  %v2487_v6 = vrot.slane %v5564_v60, 4  ;;  %v2489_v54 = vrot.slane %v5564_v60, 6 }
 0x300   : > { %2596 = vst.msk [vmem:[%s5120_s25 + $0x69] sm:$0x1] %vm2089_vm3, %v2480_v39  ;;  %v2433_v12 = vsel %vm296_vm14, %v2422_v32, 0.0  ;;  %v3333_v19 = vpop.f32.mrf.mxu3 }
 0x301   : > { %2597 = vst.msk [vmem:[%s5120_s25 + $0x6b] sm:$0x1] %vm2089_vm3, %v2481_v31  ;;  %v5585_v17 = vadd.f32 %v2433_v12, %v5424_v40  ;;  %v2949_v40 = vrot.slane %v5498_v9, 1 }
 0x302   : > { %2598 = vst.msk [vmem:[%s5120_s25 + $0x6d] sm:$0x1] %vm2089_vm3, %v2482_v34  ;;  %v2799_v36 = vld [vmem:[#allocation4 + $0x30] sm:$0xff]  ;;  %v2954_v34 = vrot.slane %v5498_v9, 6 }
 0x303   : > { %2599 = vst.msk [vmem:[%s5120_s25 + $0x6f] sm:$0x1] %vm2089_vm3, %v2483_v46  ;;  %3883 = vmatmul.msk.f32.gmra.mxu2 %vm1851_vm9, %v2799_v36  ;;  %v2013_v46 = vrot.slane %v5525_v37, 2 }
 0x304   : > { %3125 = vst.msk [vmem:[#allocation4 + $0x28] sm:$0xff] %vm1639_vm11, %v3117_v55  ;;  %v2017_v55 = vrot.slane %v5525_v37, 6 }
 0x305   : > { %3173 = vst.msk [vmem:[#allocation4 + $0x28] sm:$0xff] %vm1728_vm7, %v3155_v35  ;;  %v2955_v35 = vrot.slane %v5498_v9, 7 }
 0x306   : > { %3221 = vst.msk [vmem:[#allocation4 + $0x28] sm:$0xff] %vm1777_vm13, %v3203_v53  ;;  %v3253_v4 = vpop.permute.xlu2 %3252 }
 0x307   : > { %3269 = vst.msk [vmem:[#allocation4 + $0x28] sm:$0xff] %vm1826_vm2, %v3251_v57 }
 0x308   : > { %3961 = vst.msk [vmem:[%s5120_s25 + $0x11] sm:$0x1] %vm2089_vm3, %v3331_v42  ;;  %v2015_v42 = vrot.slane %v5525_v37, 4 }
 0x309   : > { %3962 = vst.msk [vmem:[%s5120_s25 + $0x13] sm:$0x1] %vm2089_vm3, %v3414_v33 }
 0x30a   : > { %3963 = vst.msk [vmem:[%s5120_s25 + $0x15] sm:$0x1] %vm2089_vm3, %v3415_v0 }
 0x30b   : > { %3964 = vst.msk [vmem:[%s5120_s25 + $0x17] sm:$0x1] %vm2089_vm3, %v3416_v11 }
 0x30c   : > { %3965 = vst.msk [vmem:[%s5120_s25 + $0x19] sm:$0x1] %vm2089_vm3, %v3417_v1  ;;  %v3207_v1 = vpop.permute.xlu1 %3206 }
 0x30d   : > { %3966 = vst.msk [vmem:[%s5120_s25 + $0x1b] sm:$0x1] %vm2089_vm3, %v3418_v43 }
 0x30e   : > { %3967 = vst.msk [vmem:[%s5120_s25 + $0x1d] sm:$0x1] %vm2089_vm3, %v3419_v15  ;;  %v3277_v51 = vld [vmem:[#allocation4 + $0x28] sm:$0xff]  ;;  %v2484_v15 = vrot.slane %v5564_v60, 1 }
 0x30f   : > { %3968 = vst.msk [vmem:[%s5120_s25 + $0x1f] sm:$0x1] %vm2089_vm3, %v3420_v63  ;;  %3958 = vmatmul.msk.f32.gmra.mxu3 %vm1851_vm9, %v3277_v51  ;;  %v2486_v63 = vrot.slane %v5564_v60, 3  ;;  %v2488_v51 = vrot.slane %v5564_v60, 5 }
 0x310   : > { %2647 = vst.msk [vmem:[#allocation4 + $0x38] sm:$0xff] %vm1639_vm11, %v4924_v58  ;;  %v5591_v58 = vadd.f32 %v5506_v21, %v3333_v19  ;;  %v2860_v28 = vpop.f32.mrf.mxu2 }
 0x311   : > { %2695 = vst.msk [vmem:[#allocation4 + $0x38] sm:$0xff] %vm1728_vm7, %v2679_v3  ;;  %v5627_v44 = vadd.f32 %v5239_v23, %v2860_v28 }
 0x312   : > { %2744 = vst.msk [vmem:[#allocation4 + $0x38] sm:$0xff] %vm1777_vm13, %v2728_v7  ;;  %v3355_v61 = vsel %vm296_vm14, %v5591_v58, 0.0  ;;  %v3377_v48 = vmul.f32 %v5591_v58, %v5591_v58  ;;  %v3421_v19 = vrot.slane %v5591_v58, 1 }
 0x313   : > { %2792 = vst.msk [vmem:[#allocation4 + $0x38] sm:$0xff] %vm1826_vm2, %v2776_v13  ;;  %v5604_v62 = vadd.f32 %v3355_v61, %v3354_v26  ;;  %v2880_v49 = vsel %vm296_vm14, %v5627_v44, 0.0  ;;  %v2900_v57 = vmul.f32 %v5627_v44, %v5627_v44  ;;  %v3425_v26 = vrot.slane %v5591_v58, 5 }
 0x314   : > { %3126 = vst.msk [vmem:[#allocation4 + $0x30] sm:$0xff] %vm1639_vm11, %v3118_v22  ;;  %v3385_v27 = vsel %vm296_vm14, %v3377_v48, 0.0  ;;  %v5644_v53 = vadd.f32 %v2880_v49, %v5519_v14  ;;  %v2018_v14 = vrot.slane %v5525_v37, 7  ;;  %v2961_v28 = vrot.slane %v5627_v44, 6 }
 0x315   : > { %3174 = vst.msk [vmem:[#allocation4 + $0x30] sm:$0xff] %vm1728_vm7, %v3157_v18  ;;  %v5615_v39 = vadd.f32 %v3385_v27, %v3384_v41  ;;  %v2910_v36 = vsel %vm296_vm14, %v2900_v57, 0.0  ;;  %v2490_v18 = vrot.slane %v5564_v60, 7  ;;  %v2956_v27 = vrot.slane %v5627_v44, 1 }
 0x316   : > { %3222 = vst.msk [vmem:[#allocation4 + $0x30] sm:$0xff] %vm1777_vm13, %v3205_v25  ;;  %v5655_v24 = vadd.f32 %v2910_v36, %v5531_v47  ;;  %v1911_v50 = vpop.f32.mrf.mxu0  ;;  %v3159_v47 = vpop.permute.xlu0 %3158 }
 0x317   : > { %3270 = vst.msk [vmem:[#allocation4 + $0x30] sm:$0xff] %vm1826_vm2, %v3253_v4  ;;  %v5666_v33 = vadd.f32 %v5112_v16, %v1911_v50  ;;  %v3255_v16 = vpop.permute.xlu2 %3254  ;;  %v3423_v4 = vrot.slane %v5591_v58, 3 }
 0x318   : > { %3901 = vst.msk [vmem:[%s5120_s25 + $0x50] sm:$0x1] %vm2089_vm3, %v5498_v9 }
 0x319   : > { %3902 = vst.msk [vmem:[%s5120_s25 + $0x52] sm:$0x1] %vm2089_vm3, %v2949_v40  ;;  %v1928_v0 = vsel %vm296_vm14, %v5666_v33, 0.0  ;;  %v1945_v11 = vmul.f32 %v5666_v33, %v5666_v33  ;;  %v3424_v40 = vrot.slane %v5591_v58, 4  ;;  %v2019_v57 = vrot.slane %v5666_v33, 1 }
 0x31a   : > { %v2800_v31 = vld [vmem:[#allocation4 + $0x38] sm:$0xff]  ;;  %3903 = vst.msk [vmem:[%s5120_s25 + $0x54] sm:$0x1] %vm2089_vm3, %v2950_v5  ;;  %v5679_v3 = vadd.f32 %v1928_v0, %v5543_v56  ;;  %v2485_v56 = vrot.slane %v5564_v60, 2  ;;  %v3426_v5 = vrot.slane %v5591_v58, 6  ;;  %v2022_v36 = vrot.slane %v5666_v33, 4 }
 0x31b   : > { %3884 = vmatmul.msk.f32.gmra.mxu2 %vm1851_vm9, %v2800_v31  ;;  %3904 = vst.msk [vmem:[%s5120_s25 + $0x56] sm:$0x1] %vm2089_vm3, %v2951_v8  ;;  %v1958_v43 = vsel %vm296_vm14, %v1945_v11, 0.0  ;;  %v3427_v8 = vrot.slane %v5591_v58, 7  ;;  %v2025_v0 = vrot.slane %v5666_v33, 7 }
 0x31c   : > { %3905 = vst.msk [vmem:[%s5120_s25 + $0x58] sm:$0x1] %vm2089_vm3, %v2952_v29  ;;  %v5686_v13 = vadd.f32 %v1958_v43, %v5549_v38 }
 0x31d   : > { %3906 = vst.msk [vmem:[%s5120_s25 + $0x5a] sm:$0x1] %vm2089_vm3, %v2953_v59 }
 0x31e   : > { %3907 = vst.msk [vmem:[%s5120_s25 + $0x5c] sm:$0x1] %vm2089_vm3, %v2954_v34  ;;  %v3278_v9 = vld [vmem:[#allocation4 + $0x30] sm:$0xff]  ;;  %v2959_v34 = vrot.slane %v5627_v44, 4 }
 0x31f   : > { %3908 = vst.msk [vmem:[%s5120_s25 + $0x5e] sm:$0x1] %vm2089_vm3, %v2955_v35  ;;  %3959 = vmatmul.msk.f32.gmra.mxu3 %vm1851_vm9, %v3278_v9  ;;  %v2960_v35 = vrot.slane %v5627_v44, 5  ;;  %v2962_v9 = vrot.slane %v5627_v44, 7 }
 0x320   : > { %2130 = vst.msk [vmem:[%s5120_s25 + $0xa0] sm:$0x1] %vm2089_vm3, %v5525_v37  ;;  %v3119_v37 = vld [vmem:[#allocation3 + $0x81] sm:$0xff] }
 0x321   : > { %2131 = vst.msk [vmem:[%s5120_s25 + $0xa2] sm:$0x1] %vm2089_vm3, %v2012_v45 }
 0x322   : > { %2132 = vst.msk [vmem:[%s5120_s25 + $0xa4] sm:$0x1] %vm2089_vm3, %v2013_v46  ;;  %v2387_v7 = vpop.f32.mrf.mxu1 }
 0x323   : > { %2133 = vst.msk [vmem:[%s5120_s25 + $0xa6] sm:$0x1] %vm2089_vm3, %v2014_v52  ;;  %v5697_v38 = vadd.f32 %v5142_v30, %v2387_v7 }
 0x324   : > { %2134 = vst.msk [vmem:[%s5120_s25 + $0xa8] sm:$0x1] %vm2089_vm3, %v2015_v42 }
 0x325   : > { %2135 = vst.msk [vmem:[%s5120_s25 + $0xaa] sm:$0x1] %vm2089_vm3, %v2016_v2  ;;  %v2405_v32 = vsel %vm296_vm14, %v5697_v38, 0.0  ;;  %v2423_v12 = vmul.f32 %v5697_v38, %v5697_v38  ;;  %v4048_v2 = vld [vmem:[%s6255_s4] ss:$0 sm:$0xff]  ;;  %v2496_v7 = vrot.slane %v5697_v38, 6 }
 0x326   : > { %2136 = vst.msk [vmem:[%s5120_s25 + $0xac] sm:$0x1] %vm2089_vm3, %v2017_v55  ;;  %v5713_v30 = vadd.f32 %v2405_v32, %v5578_v10  ;;  %v3422_v10 = vrot.slane %v5591_v58, 2  ;;  %v2023_v55 = vrot.slane %v5666_v33, 5 }
 0x327   : > { %2137 = vst.msk [vmem:[%s5120_s25 + $0xae] sm:$0x1] %vm2089_vm3, %v2018_v14  ;;  %v2435_v22 = vsel %vm296_vm14, %v2423_v12, 0.0  ;;  %v3336_v25 = vpop.f32.mrf.mxu3  ;;  %v2024_v14 = vrot.slane %v5666_v33, 6 }
 0x328   : > { %3127 = vst.msk [vmem:[#allocation4 + $0x38] sm:$0xff] %vm1639_vm11, %v3119_v37  ;;  %v5722_v20 = vadd.f32 %v2435_v22, %v5585_v17  ;;  %v5736_v17 = vadd.f32 %v5506_v21, %v3336_v25 }
 0x329   : > { %3175 = vst.msk [vmem:[#allocation4 + $0x38] sm:$0xff] %vm1728_vm7, %v3159_v47 }
 0x32a   : > { %3223 = vst.msk [vmem:[#allocation4 + $0x38] sm:$0xff] %vm1777_vm13, %v3207_v1  ;;  %v3357_v61 = vsel %vm296_vm14, %v5736_v17, 0.0  ;;  %v3378_v48 = vmul.f32 %v5736_v17, %v5736_v17  ;;  %v2491_v1 = vrot.slane %v5697_v38, 1 }
 0x32b   : > { %3271 = vst.msk [vmem:[#allocation4 + $0x38] sm:$0xff] %vm1826_vm2, %v3255_v16  ;;  %v5752_v41 = vadd.f32 %v3357_v61, %v5604_v62  ;;  %v2958_v62 = vrot.slane %v5627_v44, 3 }
 0x32c   : > { %2600 = vst.msk [vmem:[%s5120_s25 + $0x81] sm:$0x1] %vm2089_vm3, %v5564_v60  ;;  %v3387_v29 = vsel %vm296_vm14, %v3378_v48, 0.0 }
 0x32d   : > { %2601 = vst.msk [vmem:[%s5120_s25 + $0x83] sm:$0x1] %vm2089_vm3, %v2484_v15  ;;  %v5761_v59 = vadd.f32 %v3387_v29, %v5615_v39  ;;  %v2494_v15 = vrot.slane %v5697_v38, 4 }
 0x32e   : > { %2602 = vst.msk [vmem:[%s5120_s25 + $0x85] sm:$0x1] %vm2089_vm3, %v2485_v56 }
 0x32f   : > { %2603 = vst.msk [vmem:[%s5120_s25 + $0x87] sm:$0x1] %vm2089_vm3, %v2486_v63  ;;  %v2495_v63 = vrot.slane %v5697_v38, 5 }
 0x330   : > { %2604 = vst.msk [vmem:[%s5120_s25 + $0x89] sm:$0x1] %vm2089_vm3, %v2487_v6 }
 0x331   : > { %2605 = vst.msk [vmem:[%s5120_s25 + $0x8b] sm:$0x1] %vm2089_vm3, %v2488_v51 }
 0x332   : > { %2606 = vst.msk [vmem:[%s5120_s25 + $0x8d] sm:$0x1] %vm2089_vm3, %v2489_v54  ;;  %v3279_v60 = vld [vmem:[#allocation4 + $0x38] sm:$0xff]  ;;  %v2497_v54 = vrot.slane %v5697_v38, 7 }
 0x333   : > { %2607 = vst.msk [vmem:[%s5120_s25 + $0x8f] sm:$0x1] %vm2089_vm3, %v2490_v18  ;;  %3960 = vmatmul.msk.f32.gmra.mxu3 %vm1851_vm9, %v3279_v60  ;;  %v3428_v18 = vrot.slane %v5736_v17, 1  ;;  %v3432_v60 = vrot.slane %v5736_v17, 5 }
 0x334   : > { %3969 = vst.msk [vmem:[%s5120_s25 + $0x31] sm:$0x1] %vm2089_vm3, %v5591_v58  ;;  %v2957_v58 = vrot.slane %v5627_v44, 2 }
 0x335   : > { %3970 = vst.msk [vmem:[%s5120_s25 + $0x33] sm:$0x1] %vm2089_vm3, %v3421_v19  ;;  %v2863_v31 = vpop.f32.mrf.mxu2  ;;  %v3431_v19 = vrot.slane %v5736_v17, 4 }
 0x336   : > { %3971 = vst.msk [vmem:[%s5120_s25 + $0x35] sm:$0x1] %vm2089_vm3, %v3422_v10  ;;  %v5774_v39 = vadd.f32 %v5239_v23, %v2863_v31  ;;  %v3434_v10 = vrot.slane %v5736_v17, 7 }
 0x337   : > { %3972 = vst.msk [vmem:[%s5120_s25 + $0x37] sm:$0x1] %vm2089_vm3, %v3423_v4 }
 0x338   : > { %3973 = vst.msk [vmem:[%s5120_s25 + $0x39] sm:$0x1] %vm2089_vm3, %v3424_v40  ;;  %v2882_v45 = vsel %vm296_vm14, %v5774_v39, 0.0  ;;  %v2901_v46 = vmul.f32 %v5774_v39, %v5774_v39  ;;  %v2963_v4 = vrot.slane %v5774_v39, 1  ;;  %v2964_v25 = vrot.slane %v5774_v39, 2 }
 0x339   : > { %3974 = vst.msk [vmem:[%s5120_s25 + $0x3b] sm:$0x1] %vm2089_vm3, %v3425_v26  ;;  %v5790_v23 = vadd.f32 %v2882_v45, %v5644_v53  ;;  %v2021_v53 = vrot.slane %v5666_v33, 3  ;;  %v2965_v40 = vrot.slane %v5774_v39, 3  ;;  %v2967_v26 = vrot.slane %v5774_v39, 5 }
 0x33a   : > { %3975 = vst.msk [vmem:[%s5120_s25 + $0x3d] sm:$0x1] %vm2089_vm3, %v3426_v5  ;;  %v2912_v49 = vsel %vm296_vm14, %v2901_v46, 0.0  ;;  %v2968_v5 = vrot.slane %v5774_v39, 6  ;;  %v2969_v61 = vrot.slane %v5774_v39, 7 }
 0x33b   : > { %3976 = vst.msk [vmem:[%s5120_s25 + $0x3f] sm:$0x1] %vm2089_vm3, %v3427_v8  ;;  %v5799_v52 = vadd.f32 %v2912_v49, %v5655_v24  ;;  %v1914_v42 = vpop.f32.mrf.mxu0 }
 0x33c   : > { %3909 = vst.msk [vmem:[%s5120_s25 + $0x70] sm:$0x1] %vm2089_vm3, %v5627_v44  ;;  %v2020_v44 = vrot.slane %v5666_v33, 2  ;;  %v5814_v24 = vadd.f32 %v4048_v2, %v1914_v42 }
 0x33d   : > { %3910 = vst.msk [vmem:[%s5120_s25 + $0x72] sm:$0x1] %vm2089_vm3, %v2956_v27 }
 0x33e   : > { %3911 = vst.msk [vmem:[%s5120_s25 + $0x74] sm:$0x1] %vm2089_vm3, %v2957_v58  ;;  %v1930_v50 = vsel %vm296_vm14, %v5814_v24, 0.0  ;;  %v1946_v47 = vmul.f32 %v5814_v24, %v5814_v24  ;;  %v2026_v48 = vrot.slane %v5814_v24, 1  ;;  %v2027_v8 = vrot.slane %v5814_v24, 2 }
 0x33f   : > { %3912 = vst.msk [vmem:[%s5120_s25 + $0x76] sm:$0x1] %vm2089_vm3, %v2958_v62  ;;  %v5830_v11 = vadd.f32 %v1930_v50, %v5679_v3  ;;  %v2493_v3 = vrot.slane %v5697_v38, 3  ;;  %v2028_v29 = vrot.slane %v5814_v24, 3  ;;  %v2029_v27 = vrot.slane %v5814_v24, 4 }
 0x340   : > { %3913 = vst.msk [vmem:[%s5120_s25 + $0x78] sm:$0x1] %vm2089_vm3, %v2959_v34  ;;  %v1960_v37 = vsel %vm296_vm14, %v1946_v47, 0.0  ;;  %v2030_v58 = vrot.slane %v5814_v24, 5  ;;  %v2031_v62 = vrot.slane %v5814_v24, 6  ;;  %v2032_v31 = vrot.slane %v5814_v24, 7 }
 0x341   : > { %3914 = vst.msk [vmem:[%s5120_s25 + $0x7a] sm:$0x1] %vm2089_vm3, %v2960_v35  ;;  %v5839_v16 = vadd.f32 %v1960_v37, %v5686_v13  ;;  %v5854_v13 = vld [vmem:[%s6255_s4] ss:$0 sm:$0xff]  ;;  %v1932_v34 = vrot.slane %v5830_v11, 4 }
 0x342   : > { %3915 = vst.msk [vmem:[%s5120_s25 + $0x7c] sm:$0x1] %vm2089_vm3, %v2961_v28 }
 0x343   : > { %3916 = vst.msk [vmem:[%s5120_s25 + $0x7e] sm:$0x1] %vm2089_vm3, %v2962_v9  ;;  %v1962_v35 = vrot.slane %v5839_v16, 4  ;;  %v1933_v9 = vadd.f32 %v1932_v34, %v5830_v11 }
 0x344   : > { %2138 = vst.msk [vmem:[%s5120_s25 + $0xc0] sm:$0x1] %vm2089_vm3, %v5666_v33  ;;  %v2492_v33 = vrot.slane %v5697_v38, 2 }
 0x345   : > { %2139 = vst.msk [vmem:[%s5120_s25 + $0xc2] sm:$0x1] %vm2089_vm3, %v2019_v57  ;;  %v1934_v50 = vrot.slane %v1933_v9, 2 }
 0x346   : > { %2140 = vst.msk [vmem:[%s5120_s25 + $0xc4] sm:$0x1] %vm2089_vm3, %v2020_v44 }
 0x347   : > { %2141 = vst.msk [vmem:[%s5120_s25 + $0xc6] sm:$0x1] %vm2089_vm3, %v2021_v53 }
 0x348   : > { %2142 = vst.msk [vmem:[%s5120_s25 + $0xc8] sm:$0x1] %vm2089_vm3, %v2022_v36  ;;  %v2390_v43 = vpop.f32.mrf.mxu1  ;;  %v1963_v36 = vadd.f32 %v1962_v35, %v5839_v16 }
 0x349   : > { %2143 = vst.msk [vmem:[%s5120_s25 + $0xca] sm:$0x1] %vm2089_vm3, %v2023_v55  ;;  %v5857_v56 = vadd.f32 %v5854_v13, %v2390_v43 }
 0x34a   : > { %2144 = vst.msk [vmem:[%s5120_s25 + $0xcc] sm:$0x1] %vm2089_vm3, %v2024_v14  ;;  %v1964_v37 = vrot.slane %v1963_v36, 2 }
 0x34b   : > { %2145 = vst.msk [vmem:[%s5120_s25 + $0xce] sm:$0x1] %vm2089_vm3, %v2025_v0  ;;  %v2407_v6 = vsel %vm296_vm14, %v5857_v56, 0.0  ;;  %v2424_v51 = vmul.f32 %v5857_v56, %v5857_v56  ;;  %v2499_v28 = vrot.slane %v5857_v56, 2  ;;  %v2500_v46 = vrot.slane %v5857_v56, 3 }
 0x34c   : > { %2608 = vst.msk [vmem:[%s5120_s25 + $0xa1] sm:$0x1] %vm2089_vm3, %v5697_v38  ;;  %v5873_v32 = vadd.f32 %v2407_v6, %v5713_v30  ;;  %v3429_v38 = vrot.slane %v5736_v17, 2  ;;  %v3430_v30 = vrot.slane %v5736_v17, 3  ;;  %v2501_v49 = vrot.slane %v5857_v56, 4 }
 0x34d   : > { %2609 = vst.msk [vmem:[%s5120_s25 + $0xa3] sm:$0x1] %vm2089_vm3, %v2491_v1  ;;  %v2437_v12 = vsel %vm296_vm14, %v2424_v51, 0.0  ;;  %v3339_v45 = vpop.f32.mrf.mxu3  ;;  %v2502_v44 = vrot.slane %v5857_v56, 5  ;;  %v2503_v2 = vrot.slane %v5857_v56, 6 }
 0x34e   : > { %2610 = vst.msk [vmem:[%s5120_s25 + $0xa5] sm:$0x1] %vm2089_vm3, %v2492_v33  ;;  %v5882_v22 = vadd.f32 %v2437_v12, %v5722_v20  ;;  %v3433_v20 = vrot.slane %v5736_v17, 6  ;;  %v5973_v53 = vadd.f32 %v5506_v21, %v3339_v45  ;;  %v6013_v6 = vld [vmem:[%s6255_s4] ss:$0 sm:$0xff] }
 0x34f   : > { %2611 = vst.msk [vmem:[%s5120_s25 + $0xa7] sm:$0x1] %vm2089_vm3, %v2493_v3 }
 0x350   : > { %2612 = vst.msk [vmem:[%s5120_s25 + $0xa9] sm:$0x1] %vm2089_vm3, %v2494_v15  ;;  %v3435_v0 = vrot.slane %v5973_v53, 1  ;;  %v3436_v1 = vrot.slane %v5973_v53, 2  ;;  %v3437_v43 = vrot.slane %v5973_v53, 3  ;;  %v1935_v15 = vadd.f32 %v1934_v50, %v1933_v9 }
 0x351   : > { %2613 = vst.msk [vmem:[%s5120_s25 + $0xab] sm:$0x1] %vm2089_vm3, %v2495_v63 }
 0x352   : > { %2614 = vst.msk [vmem:[%s5120_s25 + $0xad] sm:$0x1] %vm2089_vm3, %v2496_v7  ;;  %v3439_v7 = vrot.slane %v5973_v53, 5 }
 0x353   : > { %2615 = vst.msk [vmem:[%s5120_s25 + $0xaf] sm:$0x1] %vm2089_vm3, %v2497_v54  ;;  %v1965_v54 = vadd.f32 %v1964_v37, %v1963_v36 }
 0x354   : > { %3977 = vst.msk [vmem:[%s5120_s25 + $0x51] sm:$0x1] %vm2089_vm3, %v5736_v17  ;;  %v2966_v17 = vrot.slane %v5774_v39, 4 }
 0x355   : > { %3978 = vst.msk [vmem:[%s5120_s25 + $0x53] sm:$0x1] %vm2089_vm3, %v3428_v18 }
 0x356   : > { %3979 = vst.msk [vmem:[%s5120_s25 + $0x55] sm:$0x1] %vm2089_vm3, %v3429_v38  ;;  %v1936_v38 = vrot.slane %v1935_v15, 1 }
 0x357   : > { %3980 = vst.msk [vmem:[%s5120_s25 + $0x57] sm:$0x1] %vm2089_vm3, %v3430_v30 }
 0x358   : > { %3981 = vst.msk [vmem:[%s5120_s25 + $0x59] sm:$0x1] %vm2089_vm3, %v3431_v19 }
 0x359   : > { %3982 = vst.msk [vmem:[%s5120_s25 + $0x5b] sm:$0x1] %vm2089_vm3, %v3432_v60 }
 0x35a   : > { %3983 = vst.msk [vmem:[%s5120_s25 + $0x5d] sm:$0x1] %vm2089_vm3, %v3433_v20  ;;  %v2866_v16 = vpop.f32.mrf.mxu2  ;;  %v1966_v20 = vrot.slane %v1965_v54, 1 }
 0x35b   : > { %3984 = vst.msk [vmem:[%s5120_s25 + $0x5f] sm:$0x1] %vm2089_vm3, %v3434_v10  ;;  %v6016_v51 = vadd.f32 %v6013_v6, %v2866_v16 }
 0x35c   : > { %3917 = vst.msk [vmem:[%s5120_s25 + $0x90] sm:$0x1] %vm2089_vm3, %v5774_v39  ;;  %v2498_v39 = vrot.slane %v5857_v56, 1 }
 0x35d   : > { %3918 = vst.msk [vmem:[%s5120_s25 + $0x92] sm:$0x1] %vm2089_vm3, %v2963_v4  ;;  %v2970_v60 = vrot.slane %v6016_v51, 1  ;;  %v2971_v10 = vrot.slane %v6016_v51, 2 }
 0x35e   : > { %3919 = vst.msk [vmem:[%s5120_s25 + $0x94] sm:$0x1] %vm2089_vm3, %v2964_v25 }
 0x35f   : > { %3920 = vst.msk [vmem:[%s5120_s25 + $0x96] sm:$0x1] %vm2089_vm3, %v2965_v40  ;;  %v2972_v40 = vrot.slane %v6016_v51, 3 }
 0x360   : > { %3921 = vst.msk [vmem:[%s5120_s25 + $0x98] sm:$0x1] %vm2089_vm3, %v2966_v17  ;;  %v1937_v17 = vadd.f32 %v1936_v38, %v1935_v15 }
 0x361   : > { %3922 = vst.msk [vmem:[%s5120_s25 + $0x9a] sm:$0x1] %vm2089_vm3, %v2967_v26  ;;  %v2973_v26 = vrot.slane %v6016_v51, 4 }
 0x362   : > { %3923 = vst.msk [vmem:[%s5120_s25 + $0x9c] sm:$0x1] %vm2089_vm3, %v2968_v5 }
 0x363   : > { %3924 = vst.msk [vmem:[%s5120_s25 + $0x9e] sm:$0x1] %vm2089_vm3, %v2969_v61 }
 0x364   : > { %2146 = vst.msk [vmem:[%s5120_s25 + $0xe0] sm:$0x1] %vm2089_vm3, %v5814_v24  ;;  %v2504_v24 = vrot.slane %v5857_v56, 7 }
 0x365   : > { %2147 = vst.msk [vmem:[%s5120_s25 + $0xe2] sm:$0x1] %vm2089_vm3, %v2026_v48  ;;  %v2974_v48 = vrot.slane %v6016_v51, 5 }
 0x366   : > { %2148 = vst.msk [vmem:[%s5120_s25 + $0xe4] sm:$0x1] %vm2089_vm3, %v2027_v8  ;;  %v1967_v8 = vadd.f32 %v1966_v20, %v1965_v54 }
 0x367   : > { %2149 = vst.msk [vmem:[%s5120_s25 + $0xe6] sm:$0x1] %vm2089_vm3, %v2028_v29  ;;  %v2975_v29 = vrot.slane %v6016_v51, 6 }
 0x368   : > { %2150 = vst.msk [vmem:[%s5120_s25 + $0xe8] sm:$0x1] %vm2089_vm3, %v2029_v27 }
 0x369   : > { %2151 = vst.msk [vmem:[%s5120_s25 + $0xea] sm:$0x1] %vm2089_vm3, %v2030_v58 }
 0x36a   : > { %2152 = vst.msk [vmem:[%s5120_s25 + $0xec] sm:$0x1] %vm2089_vm3, %v2031_v62  ;;  %v2976_v62 = vrot.slane %v6016_v51, 7 }
 0x36b   : > { %2153 = vst.msk [vmem:[%s5120_s25 + $0xee] sm:$0x1] %vm2089_vm3, %v2032_v31 }
 0x36c   : > { %2616 = vst.msk [vmem:[%s5120_s25 + $0xc1] sm:$0x1] %vm2089_vm3, %v5857_v56  ;;  %v2393_v57 = vpop.f32.mrf.mxu1 }
 0x36d   : > { %2617 = vst.msk [vmem:[%s5120_s25 + $0xc3] sm:$0x1] %vm2089_vm3, %v2498_v39  ;;  %v5976_v42 = vadd.f32 %v5854_v13, %v2393_v57  ;;  %v3438_v13 = vrot.slane %v5973_v53, 4 }
 0x36e   : > { %2618 = vst.msk [vmem:[%s5120_s25 + $0xc5] sm:$0x1] %vm2089_vm3, %v2499_v28 }
 0x36f   : > { %2619 = vst.msk [vmem:[%s5120_s25 + $0xc7] sm:$0x1] %vm2089_vm3, %v2500_v46  ;;  %v2409_v55 = vsel %vm296_vm14, %v5976_v42, 0.0  ;;  %v2425_v14 = vmul.f32 %v5976_v42, %v5976_v42  ;;  %v2505_v34 = vrot.slane %v5976_v42, 1  ;;  %v2506_v39 = vrot.slane %v5976_v42, 2 }
 0x370   : > { %2620 = vst.msk [vmem:[%s5120_s25 + $0xc9] sm:$0x1] %vm2089_vm3, %v2501_v49  ;;  %v2410_v47 = vadd.f32 %v2409_v55, %v5873_v32  ;;  %v3440_v32 = vrot.slane %v5973_v53, 6  ;;  %v2507_v28 = vrot.slane %v5976_v42, 3  ;;  %v2508_v45 = vrot.slane %v5976_v42, 4 }
 0x371   : > { %2621 = vst.msk [vmem:[%s5120_s25 + $0xcb] sm:$0x1] %vm2089_vm3, %v2502_v44  ;;  %v2439_v11 = vsel %vm296_vm14, %v2425_v14, 0.0  ;;  %v3342_v35 = vpop.f32.mrf.mxu3  ;;  %v2509_v46 = vrot.slane %v5976_v42, 5  ;;  %v2510_v49 = vrot.slane %v5976_v42, 6  ;;  %v2511_v57 = vrot.slane %v5976_v42, 7 }
 0x372   : > { %2622 = vst.msk [vmem:[%s5120_s25 + $0xcd] sm:$0x1] %vm2089_vm3, %v2503_v2  ;;  %v2411_v33 = vrot.slane %v2410_v47, 4  ;;  %v2440_v3 = vadd.f32 %v2439_v11, %v5882_v22  ;;  %v3441_v22 = vrot.slane %v5973_v53, 7  ;;  %v6071_v9 = vadd.f32 %v5506_v21, %v3342_v35 }
 0x373   : > { %2623 = vst.msk [vmem:[%s5120_s25 + $0xcf] sm:$0x1] %vm2089_vm3, %v2504_v24 }
 0x374   : > { %3985 = vst.msk [vmem:[%s5120_s25 + $0x71] sm:$0x1] %vm2089_vm3, %v5973_v53  ;;  %v2412_v56 = vadd.f32 %v2411_v33, %v2410_v47  ;;  %v2441_v63 = vrot.slane %v2440_v3, 4  ;;  %v3442_v44 = vrot.slane %v6071_v9, 1  ;;  %v3443_v36 = vrot.slane %v6071_v9, 2 }
 0x375   : > { %3986 = vst.msk [vmem:[%s5120_s25 + $0x73] sm:$0x1] %vm2089_vm3, %v3435_v0  ;;  %v3445_v24 = vrot.slane %v6071_v9, 4  ;;  %v3446_v55 = vrot.slane %v6071_v9, 5  ;;  %v3447_v50 = vrot.slane %v6071_v9, 6  ;;  %v3448_v47 = vrot.slane %v6071_v9, 7 }
 0x376   : > { %3987 = vst.msk [vmem:[%s5120_s25 + $0x75] sm:$0x1] %vm2089_vm3, %v3436_v1  ;;  %v2413_v12 = vrot.slane %v2412_v56, 2  ;;  %v2442_v18 = vadd.f32 %v2441_v63, %v2440_v3 }
 0x377   : > { %3988 = vst.msk [vmem:[%s5120_s25 + $0x77] sm:$0x1] %vm2089_vm3, %v3437_v43 }
 0x378   : > { %3989 = vst.msk [vmem:[%s5120_s25 + $0x79] sm:$0x1] %vm2089_vm3, %v3438_v13  ;;  %v2414_v30 = vadd.f32 %v2413_v12, %v2412_v56  ;;  %v2443_v19 = vrot.slane %v2442_v18, 2  ;;  %v2902_v13 = vmul.f32 %v6016_v51, %v6016_v51 }
 0x379   : > { %3990 = vst.msk [vmem:[%s5120_s25 + $0x7b] sm:$0x1] %vm2089_vm3, %v3439_v7  ;;  %v2884_v7 = vsel %vm296_vm14, %v6016_v51, 0.0 }
 0x37a   : > { %3991 = vst.msk [vmem:[%s5120_s25 + $0x7d] sm:$0x1] %vm2089_vm3, %v3440_v32  ;;  %v2415_v4 = vrot.slane %v2414_v30, 1  ;;  %v2444_v25 = vadd.f32 %v2443_v19, %v2442_v18  ;;  %v2914_v18 = vsel %vm296_vm14, %v2902_v13, 0.0  ;;  %v3361_v13 = vsel %vm296_vm14, %v6071_v9, 0.0 }
 0x37b   : > { %3992 = vst.msk [vmem:[%s5120_s25 + $0x7f] sm:$0x1] %vm2089_vm3, %v3441_v22 }
 0x37c   : > { %3925 = vst.msk [vmem:[%s5120_s25 + $0xb0] sm:$0x1] %vm2089_vm3, %v6016_v51  ;;  %v2416_v5 = vadd.f32 %v2415_v4, %v2414_v30  ;;  %v2445_v61 = vrot.slane %v2444_v25, 1  ;;  %v2885_v51 = vadd.f32 %v2884_v7, %v5790_v23  ;;  %v2915_v4 = vadd.f32 %v2914_v18, %v5799_v52 }
 0x37d   : > { %3926 = vst.msk [vmem:[%s5120_s25 + $0xb2] sm:$0x1] %vm2089_vm3, %v2970_v60 }
 0x37e   : > { %3927 = vst.msk [vmem:[%s5120_s25 + $0xb4] sm:$0x1] %vm2089_vm3, %v2971_v10  ;;  %v6045_v27 = vadd.f32 %v2416_v5, %v1937_v17  ;;  %v2446_v58 = vadd.f32 %v2445_v61, %v2444_v25 }
 0x37f   : > { %3928 = vst.msk [vmem:[%s5120_s25 + $0xb6] sm:$0x1] %vm2089_vm3, %v2972_v40 }
 0x380   : > { %3929 = vst.msk [vmem:[%s5120_s25 + $0xb8] sm:$0x1] %vm2089_vm3, %v2973_v26  ;;  %v6052_v31 = vadd.f32 %v2446_v58, %v1967_v8 }
 0x381   : > { %3930 = vst.msk [vmem:[%s5120_s25 + $0xba] sm:$0x1] %vm2089_vm3, %v2974_v48 }
 0x382   : > { %3931 = vst.msk [vmem:[%s5120_s25 + $0xbc] sm:$0x1] %vm2089_vm3, %v2975_v29 }
 0x383   : > { %3932 = vst.msk [vmem:[%s5120_s25 + $0xbe] sm:$0x1] %vm2089_vm3, %v2976_v62 }
 0x384   : > { %2624 = vst.msk [vmem:[%s5120_s25 + $0xe1] sm:$0x1] %vm2089_vm3, %v5976_v42  ;;  %v3444_v42 = vrot.slane %v6071_v9, 3 }
 0x385   : > { %2625 = vst.msk [vmem:[%s5120_s25 + $0xe3] sm:$0x1] %vm2089_vm3, %v2505_v34 }
 0x386   : > { %2626 = vst.msk [vmem:[%s5120_s25 + $0xe5] sm:$0x1] %vm2089_vm3, %v2506_v39  ;;  %v2869_v2 = vpop.f32.mrf.mxu2 }
 0x387   : > { %2627 = vst.msk [vmem:[%s5120_s25 + $0xe7] sm:$0x1] %vm2089_vm3, %v2507_v28  ;;  %v2870_v14 = vadd.f32 %v6013_v6, %v2869_v2 }
 0x388   : > { %2628 = vst.msk [vmem:[%s5120_s25 + $0xe9] sm:$0x1] %vm2089_vm3, %v2508_v45 }
 0x389   : > { %2629 = vst.msk [vmem:[%s5120_s25 + $0xeb] sm:$0x1] %vm2089_vm3, %v2509_v46  ;;  %v2977_v0 = vrot.slane %v2870_v14, 1  ;;  %v2978_v11 = vrot.slane %v2870_v14, 2  ;;  %v2979_v1 = vrot.slane %v2870_v14, 3  ;;  %v2980_v16 = vrot.slane %v2870_v14, 4 }
 0x38a   : > { %2630 = vst.msk [vmem:[%s5120_s25 + $0xed] sm:$0x1] %vm2089_vm3, %v2510_v49  ;;  %v2981_v33 = vrot.slane %v2870_v14, 5  ;;  %v2982_v43 = vrot.slane %v2870_v14, 6  ;;  %v2983_v15 = vrot.slane %v2870_v14, 7  ;;  %v2903_v54 = vmul.f32 %v2870_v14, %v2870_v14 }
 0x38b   : > { %2631 = vst.msk [vmem:[%s5120_s25 + $0xef] sm:$0x1] %vm2089_vm3, %v2511_v57  ;;  %v2886_v22 = vsel %vm296_vm14, %v2870_v14, 0.0 }
 0x38c   : > { %3993 = vst.msk [vmem:[%s5120_s25 + $0x91] sm:$0x1] %vm2089_vm3, %v6071_v9  ;;  %v2916_v60 = vsel %vm296_vm14, %v2903_v54, 0.0  ;;  %v2887_v25 = vadd.f32 %v2886_v22, %v2885_v51 }
 0x38d   : > { %3994 = vst.msk [vmem:[%s5120_s25 + $0x93] sm:$0x1] %vm2089_vm3, %v3442_v44  ;;  %v2917_v26 = vadd.f32 %v2916_v60, %v2915_v4 }
 0x38e   : > { %3995 = vst.msk [vmem:[%s5120_s25 + $0x95] sm:$0x1] %vm2089_vm3, %v3443_v36 }
 0x38f   : > { %3996 = vst.msk [vmem:[%s5120_s25 + $0x97] sm:$0x1] %vm2089_vm3, %v3444_v42 }
 0x390   : > { %3997 = vst.msk [vmem:[%s5120_s25 + $0x99] sm:$0x1] %vm2089_vm3, %v3445_v24 }
 0x391   : > { %3998 = vst.msk [vmem:[%s5120_s25 + $0x9b] sm:$0x1] %vm2089_vm3, %v3446_v55 }
 0x392   : > { %3999 = vst.msk [vmem:[%s5120_s25 + $0x9d] sm:$0x1] %vm2089_vm3, %v3447_v50  ;;  %v3345_v37 = vpop.f32.mrf.mxu3 }
 0x393   : > { %4000 = vst.msk [vmem:[%s5120_s25 + $0x9f] sm:$0x1] %vm2089_vm3, %v3448_v47  ;;  %v6117_v3 = vadd.f32 %v5506_v21, %v3345_v37  ;;  %v3359_v37 = vsel %vm296_vm14, %v5973_v53, 0.0 }
 0x394   : > { %3933 = vst.msk [vmem:[%s5120_s25 + $0xd0] sm:$0x1] %vm2089_vm3, %v2870_v14  ;;  %v3379_v14 = vmul.f32 %v5973_v53, %v5973_v53 }
 0x395   : > { %3934 = vst.msk [vmem:[%s5120_s25 + $0xd2] sm:$0x1] %vm2089_vm3, %v2977_v0  ;;  %v3449_v56 = vrot.slane %v6117_v3, 1  ;;  %v3450_v63 = vrot.slane %v6117_v3, 2  ;;  %v3451_v32 = vrot.slane %v6117_v3, 3  ;;  %v3452_v12 = vrot.slane %v6117_v3, 4 }
 0x396   : > { %3935 = vst.msk [vmem:[%s5120_s25 + $0xd4] sm:$0x1] %vm2089_vm3, %v2978_v11  ;;  %v3453_v38 = vrot.slane %v6117_v3, 5  ;;  %v3454_v30 = vrot.slane %v6117_v3, 6  ;;  %v3455_v20 = vrot.slane %v6117_v3, 7  ;;  %v3381_v53 = vmul.f32 %v6117_v3, %v6117_v3 }
 0x397   : > { %3936 = vst.msk [vmem:[%s5120_s25 + $0xd6] sm:$0x1] %vm2089_vm3, %v2979_v1  ;;  %v3380_v1 = vmul.f32 %v6071_v9, %v6071_v9  ;;  %v3363_v7 = vsel %vm296_vm14, %v6117_v3, 0.0 }
 0x398   : > { %3937 = vst.msk [vmem:[%s5120_s25 + $0xd8] sm:$0x1] %vm2089_vm3, %v2980_v16 }
 0x399   : > { %3938 = vst.msk [vmem:[%s5120_s25 + $0xda] sm:$0x1] %vm2089_vm3, %v2981_v33 }
 0x39a   : > { %3939 = vst.msk [vmem:[%s5120_s25 + $0xdc] sm:$0x1] %vm2089_vm3, %v2982_v43 }
 0x39b   : > { %3940 = vst.msk [vmem:[%s5120_s25 + $0xde] sm:$0x1] %vm2089_vm3, %v2983_v15  ;;  %v3389_v15 = vsel %vm296_vm14, %v3379_v14, 0.0 }
 0x39c   : > { %4001 = vst.msk [vmem:[%s5120_s25 + $0xb1] sm:$0x1] %vm2089_vm3, %v6117_v3  ;;  %v3390_v9 = vadd.f32 %v3389_v15, %v5761_v59  ;;  %v4051_v3 = vld [vmem:[%s6255_s4] ss:$0 sm:$0xff] }
 0x39d   : > { %4002 = vst.msk [vmem:[%s5120_s25 + $0xb3] sm:$0x1] %vm2089_vm3, %v3449_v56  ;;  %v3360_v56 = vadd.f32 %v3359_v37, %v5752_v41 }
 0x39e   : > { %4003 = vst.msk [vmem:[%s5120_s25 + $0xb5] sm:$0x1] %vm2089_vm3, %v3450_v63  ;;  %v2872_v19 = vpop.f32.mrf.mxu2 }
 0x39f   : > { %4004 = vst.msk [vmem:[%s5120_s25 + $0xb7] sm:$0x1] %vm2089_vm3, %v3451_v32  ;;  %v2873_v10 = vadd.f32 %v6013_v6, %v2872_v19  ;;  %v3362_v32 = vadd.f32 %v3361_v13, %v3360_v56 }
 0x3a0   : > { %4005 = vst.msk [vmem:[%s5120_s25 + $0xb9] sm:$0x1] %vm2089_vm3, %v3452_v12  ;;  %v3393_v12 = vsel %vm296_vm14, %v3381_v53, 0.0 }
 0x3a1   : > { %4006 = vst.msk [vmem:[%s5120_s25 + $0xbb] sm:$0x1] %vm2089_vm3, %v3453_v38  ;;  %v2888_v23 = vsel %vm296_vm14, %v2873_v10, 0.0  ;;  %v2904_v40 = vmul.f32 %v2873_v10, %v2873_v10  ;;  %v2984_v17 = vrot.slane %v2873_v10, 1  ;;  %v2985_v61 = vrot.slane %v2873_v10, 2 }
 0x3a2   : > { %4007 = vst.msk [vmem:[%s5120_s25 + $0xbd] sm:$0x1] %vm2089_vm3, %v3454_v30  ;;  %v2889_v5 = vadd.f32 %v2888_v23, %v2887_v25  ;;  %v3348_v6 = vpop.f32.mrf.mxu3  ;;  %v2986_v48 = vrot.slane %v2873_v10, 3  ;;  %v2987_v58 = vrot.slane %v2873_v10, 4  ;;  %v2988_v62 = vrot.slane %v2873_v10, 5 }
 0x3a3   : > { %4008 = vst.msk [vmem:[%s5120_s25 + $0xbf] sm:$0x1] %vm2089_vm3, %v3455_v20  ;;  %v2918_v52 = vsel %vm296_vm14, %v2904_v40, 0.0  ;;  %v3349_v34 = vadd.f32 %v5506_v21, %v3348_v6  ;;  %v2989_v28 = vrot.slane %v2873_v10, 6  ;;  %v2990_v45 = vrot.slane %v2873_v10, 7 }
 0x3a4   : > { %v2890_v8 = vrot.slane %v2889_v5, 4  ;;  %v2919_v29 = vadd.f32 %v2918_v52, %v2917_v26  ;;  %3941 = vst.msk [vmem:[%s5120_s25 + $0xf0] sm:$0x1] %vm2089_vm3, %v2873_v10 }
 0x3a5   : > { %3942 = vst.msk [vmem:[%s5120_s25 + $0xf2] sm:$0x1] %vm2089_vm3, %v2984_v17  ;;  %v3456_v57 = vrot.slane %v3349_v34, 1  ;;  %v3457_v36 = vrot.slane %v3349_v34, 2  ;;  %v3458_v2 = vrot.slane %v3349_v34, 3  ;;  %v3459_v55 = vrot.slane %v3349_v34, 4 }
 0x3a6   : > { %v2891_v39 = vadd.f32 %v2890_v8, %v2889_v5  ;;  %v2920_v35 = vrot.slane %v2919_v29, 4  ;;  %3943 = vst.msk [vmem:[%s5120_s25 + $0xf4] sm:$0x1] %vm2089_vm3, %v2985_v61  ;;  %v3460_v50 = vrot.slane %v3349_v34, 5  ;;  %v3461_v11 = vrot.slane %v3349_v34, 6 }
 0x3a7   : > { %3944 = vst.msk [vmem:[%s5120_s25 + $0xf6] sm:$0x1] %vm2089_vm3, %v2986_v48  ;;  %v3462_v16 = vrot.slane %v3349_v34, 7  ;;  %v3382_v54 = vmul.f32 %v3349_v34, %v3349_v34  ;;  %v3365_v41 = vsel %vm296_vm14, %v3349_v34, 0.0 }
 0x3a8   : > { %v2892_v46 = vrot.slane %v2891_v39, 2  ;;  %v2921_v49 = vadd.f32 %v2920_v35, %v2919_v29  ;;  %3945 = vst.msk [vmem:[%s5120_s25 + $0xf8] sm:$0x1] %vm2089_vm3, %v2987_v58 }
 0x3a9   : > { %3946 = vst.msk [vmem:[%s5120_s25 + $0xfa] sm:$0x1] %vm2089_vm3, %v2988_v62  ;;  %v3395_v38 = vsel %vm296_vm14, %v3382_v54, 0.0 }
 0x3aa   : > { %v2893_v44 = vadd.f32 %v2892_v46, %v2891_v39  ;;  %v2922_v21 = vrot.slane %v2921_v49, 2  ;;  %3947 = vst.msk [vmem:[%s5120_s25 + $0xfc] sm:$0x1] %vm2089_vm3, %v2989_v28 }
 0x3ab   : > { %3948 = vst.msk [vmem:[%s5120_s25 + $0xfe] sm:$0x1] %vm2089_vm3, %v2990_v45 }
 0x3ac   : > { %v2894_v42 = vrot.slane %v2893_v44, 1  ;;  %v2923_v24 = vadd.f32 %v2922_v21, %v2921_v49  ;;  %4009 = vst.msk [vmem:[%s5120_s25 + $0xd1] sm:$0x1] %vm2089_vm3, %v3349_v34 }
 0x3ad   : > { %4010 = vst.msk [vmem:[%s5120_s25 + $0xd3] sm:$0x1] %vm2089_vm3, %v3456_v57 }
 0x3ae   : > { %v2895_v47 = vadd.f32 %v2894_v42, %v2893_v44  ;;  %v2924_v0 = vrot.slane %v2923_v24, 1  ;;  %4011 = vst.msk [vmem:[%s5120_s25 + $0xd5] sm:$0x1] %vm2089_vm3, %v3457_v36 }
 0x3af   : > { %4012 = vst.msk [vmem:[%s5120_s25 + $0xd7] sm:$0x1] %vm2089_vm3, %v3458_v2 }
 0x3b0   : > { %v2896_v33 = vadd.f32 %v2895_v47, %v6045_v27  ;;  %v2925_v43 = vadd.f32 %v2924_v0, %v2923_v24  ;;  %4013 = vst.msk [vmem:[%s5120_s25 + $0xd9] sm:$0x1] %vm2089_vm3, %v3459_v55  ;;  %v3391_v27 = vsel %vm296_vm14, %v3380_v1, 0.0 }
 0x3b1   : > { %4014 = vst.msk [vmem:[%s5120_s25 + $0xdb] sm:$0x1] %vm2089_vm3, %v3460_v50  ;;  %v3392_v18 = vadd.f32 %v3391_v27, %v3390_v9 }
 0x3b2   : > { %v2926_v63 = vadd.f32 %v2925_v43, %v6052_v31  ;;  %4015 = vst.msk [vmem:[%s5120_s25 + $0xdd] sm:$0x1] %vm2089_vm3, %v3461_v11  ;;  %v3364_v31 = vadd.f32 %v3363_v7, %v3362_v32 }
 0x3b3   : > { %4016 = vst.msk [vmem:[%s5120_s25 + $0xdf] sm:$0x1] %vm2089_vm3, %v3462_v16  ;;  %v3394_v30 = vadd.f32 %v3393_v12, %v3392_v18 }
 0x3b4   : > { %v3366_v19 = vadd.f32 %v3365_v41, %v3364_v31 }
 0x3b5   : > { %v3396_v4 = vadd.f32 %v3395_v38, %v3394_v30 }
 0x3b6   : > { %v3351_v22 = vpop.f32.mrf.mxu3 }
 0x3b7   : > { %v3352_v51 = vadd.f32 %v4051_v3, %v3351_v22 }
 0x3b9   : > { %v3367_v59 = vsel %vm296_vm14, %v3352_v51, 0.0  ;;  %v3383_v60 = vmul.f32 %v3352_v51, %v3352_v51  ;;  %v3463_v20 = vrot.slane %v3352_v51, 1  ;;  %v3464_v10 = vrot.slane %v3352_v51, 2  ;;  %4017 = vst.msk [vmem:[%s5120_s25 + $0xf1] sm:$0x1] %vm2089_vm3, %v3352_v51 }
 0x3ba   : > { %v3368_v25 = vadd.f32 %v3367_v59, %v3366_v19  ;;  %v3465_v23 = vrot.slane %v3352_v51, 3  ;;  %v3466_v40 = vrot.slane %v3352_v51, 4  ;;  %v3467_v26 = vrot.slane %v3352_v51, 5 }
 0x3bb   : > { %v3397_v17 = vsel %vm296_vm14, %v3383_v60, 0.0  ;;  %4018 = vst.msk [vmem:[%s5120_s25 + $0xf3] sm:$0x1] %vm2089_vm3, %v3463_v20  ;;  %v3468_v6 = vrot.slane %v3352_v51, 6  ;;  %v3469_v52 = vrot.slane %v3352_v51, 7 }
 0x3bc   : > { %v3369_v5 = vrot.slane %v3368_v25, 4  ;;  %v3398_v61 = vadd.f32 %v3397_v17, %v3396_v4  ;;  %4019 = vst.msk [vmem:[%s5120_s25 + $0xf5] sm:$0x1] %vm2089_vm3, %v3464_v10 }
 0x3bd   : > { %4020 = vst.msk [vmem:[%s5120_s25 + $0xf7] sm:$0x1] %vm2089_vm3, %v3465_v23 }
 0x3be   : > { %v3370_v48 = vadd.f32 %v3369_v5, %v3368_v25  ;;  %v3399_v8 = vrot.slane %v3398_v61, 4  ;;  %4021 = vst.msk [vmem:[%s5120_s25 + $0xf9] sm:$0x1] %vm2089_vm3, %v3466_v40 }
 0x3bf   : > { %4022 = vst.msk [vmem:[%s5120_s25 + $0xfb] sm:$0x1] %vm2089_vm3, %v3467_v26 }
 0x3c0   : > { %v3371_v29 = vrot.slane %v3370_v48, 2  ;;  %v3400_v58 = vadd.f32 %v3399_v8, %v3398_v61  ;;  %4023 = vst.msk [vmem:[%s5120_s25 + $0xfd] sm:$0x1] %vm2089_vm3, %v3468_v6 }
 0x3c1   : > { %4024 = vst.msk [vmem:[%s5120_s25 + $0xff] sm:$0x1] %vm2089_vm3, %v3469_v52 }
 0x3c2   : > { %v3372_v62 = vadd.f32 %v3371_v29, %v3370_v48  ;;  %v3401_v34 = vrot.slane %v3400_v58, 2 }
 0x3c4   : > { %v3373_v39 = vrot.slane %v3372_v62, 1  ;;  %v3402_v35 = vadd.f32 %v3401_v34, %v3400_v58 }
 0x3c6   : > { %v3374_v28 = vadd.f32 %v3373_v39, %v3372_v62  ;;  %v3403_v45 = vrot.slane %v3402_v35, 1 }
 0x3c8   : > { %v3375_v46 = vadd.f32 %v3374_v28, %v2896_v33  ;;  %v3404_v49 = vadd.f32 %v3403_v45, %v3402_v35 }
 0x3ca   : > { %v3405_v57 = vadd.f32 %v3404_v49, %v2926_v63  ;;  %3590 = vst.msk [vmem:[%s262_s19] sm:$0x1] %vm2089_vm3, %v3375_v46 }
 0x3cc   : > { %3591 = vst.msk [vmem:[%s262_s19 + $0x1] sm:$0x1] %vm2089_vm3, %v3405_v57 }
 0x3cd PF: > { %s17_s21 = sadd.s32 1, %s4058_s21  }
 0x3ce   : > { %p14_p4 = scmp.ge.s32.totalorder %s17_s21, 4  }
 0x3d0   :  { %16 = sbr.rel (!%p14_p4) target bundleno = 1 (0x1), region = 100 }

</bundles_post_ra>
